<compile_context>
chip_gen: v6e
topology: v6e:2x2x1
jax: 0.10.0
libtpu: 0.0.40
codegen_flags: <defaults>
</compile_context>

<pallas_src>
import jax
import jax.numpy as jnp
from jax import lax
from jax.experimental import pallas as pl
from jax.experimental.pallas import tpu as pltpu

BN_EPS = 1e-5


# ---------------- parameter layout ----------------

def _param_offsets(Ce, Cd):
    off = {}
    off["w1e"] = 0
    off["b1e"] = off["w1e"] + Ce * Ce
    off["w2e"] = off["b1e"] + Ce
    off["b2e"] = off["w2e"] + Ce
    off["w1d"] = off["b2e"] + 1
    off["b1d"] = off["w1d"] + Cd * Cd
    off["w2d"] = off["b1d"] + Cd
    off["b2d"] = off["w2d"] + Cd
    off["w7"] = off["b2d"] + 1          # 2*7*7 folded 7x7 weights (e then d)
    off["b7"] = off["w7"] + 2 * 7 * 7
    off["n"] = off["b7"] + 1
    return off


# ---------------- kernel ----------------

def _make_kernel(Ce, Cd, H, W):
    HW = H * W
    off = _param_offsets(Ce, Cd)

    def kernel(e_ref, d_ref, me_ref, md_ref, p_ref, out_ref):
        # e_ref:   (Bblk, Ce*HW)  VMEM
        # d_ref:   (Bblk, Cd*HW)  VMEM
        # me_ref:  (HW, HW)       VMEM  banded 7x7 operator for the e-saliency
        # md_ref:  (HW, HW)       VMEM  banded 7x7 operator for the d-saliency
        # p_ref:   (n_params,)    SMEM  flat folded parameters
        # out_ref: (Bblk, (Ce+Cd)*HW)
        f32 = jnp.float32

        def saliency(x_ref, C, ow1, ob1, ow2, ob2):
            # conv1x1(C->C) + folded BN + ReLU + conv1x1(C->1), as unrolled
            # scalar*slab FMAs on lane-dense (Bblk, HW) slabs.  Channel slabs
            # are re-read from the (VMEM-resident) ref to keep vreg pressure
            # low; biases are trailing scalar adds (no jnp.full splats).
            s = None
            for o in range(C):
                y = None
                for c in range(C):
                    xc = x_ref[:, c * HW:(c + 1) * HW].astype(f32)
                    t = p_ref[ow1 + o * C + c] * xc
                    y = t if y is None else y + t
                y = jnp.maximum(y + p_ref[ob1 + o], 0.0)
                t = p_ref[ow2 + o] * y
                s = t if s is None else s + t
            return s + p_ref[ob2]          # (Bblk, HW)

        es = saliency(e_ref, Ce, off["w1e"], off["b1e"], off["w2e"], off["b2e"])
        ds = saliency(d_ref, Cd, off["w1d"], off["b1d"], off["w2d"], off["b2d"])

        # 7x7 / pad=3 conv over the 2-channel (es, ds) map as two MXU matmuls
        # against precomputed banded operators (zero padding baked in), then
        # folded-BN bias + ReLU.
        s_pre = (
            jnp.dot(es, me_ref[...], preferred_element_type=f32,
                    precision=lax.Precision.HIGHEST)
            + jnp.dot(ds, md_ref[...], preferred_element_type=f32,
                      precision=lax.Precision.HIGHEST)
            + p_ref[off["b7"]]
        )
        s_att = jnp.maximum(s_pre, 0.0)    # (Bblk, HW) spatial attention map

        # gating + channel-concat: one full-width unmasked slab store per
        # channel (lane offsets are static multiples of HW=256).
        for c in range(Ce):
            out_ref[:, c * HW:(c + 1) * HW] = (
                e_ref[:, c * HW:(c + 1) * HW].astype(f32) * s_att
            ).astype(out_ref.dtype)
        for c in range(Cd):
            out_ref[:, (Ce + c) * HW:(Ce + c + 1) * HW] = (
                d_ref[:, c * HW:(c + 1) * HW].astype(f32) * s_att
            ).astype(out_ref.dtype)

    return kernel


# ---------------- banded 7x7 operator ----------------

def _band_matrix(w77, H, W):
    """(HW, HW) matrix M with  s_out = s_in_flat @ M  ==  conv2d(s_in, w77, pad=3)."""
    HW = H * W
    idx = jnp.arange(HW)
    r, c = idx // W, idx % W
    di = r[:, None] - r[None, :]      # input-row minus output-row
    dj = c[:, None] - c[None, :]      # input-col minus output-col
    valid = (jnp.abs(di) <= 3) & (jnp.abs(dj) <= 3)
    w = w77[jnp.clip(di + 3, 0, 6), jnp.clip(dj + 3, 0, 6)]
    return jnp.where(valid, w, 0.0).astype(jnp.float32)


# ---------------- wrapper ----------------

def daa_pallas(e, d, params_flat, *, block_b=None):
    B, Ce, H, W = e.shape
    Cd = d.shape[1]
    HW = H * W
    off = _param_offsets(Ce, Cd)
    assert params_flat.shape == (off["n"],)

    # Batch tiling: prefer >=2 grid steps (both v7x cores + DMA/compute
    # overlap on all generations), blocks a multiple of 8 (sublane rule),
    # capped at 64 rows per step.
    if block_b is None:
        if B <= 8:
            block_b = B
        else:
            block_b = max(8, min(64, 8 * (B // 16)))
    if block_b != B and block_b % 8 != 0:
        block_b = max(8, (block_b // 8) * 8)
    grid_b = pl.cdiv(B, block_b)

    kernel = _make_kernel(Ce, Cd, H, W)

    # flat lane-dense layout (free reshapes of contiguous NCHW)
    e2 = e.reshape(B, Ce * HW)
    d2 = d.reshape(B, Cd * HW)

    # banded operators built from the folded 7x7 weights
    w7e = params_flat[off["w7"]: off["w7"] + 49].reshape(7, 7)
    w7d = params_flat[off["w7"] + 49: off["w7"] + 98].reshape(7, 7)
    Me = _band_matrix(w7e, H, W)
    Md = _band_matrix(w7d, H, W)

    cost = pl.CostEstimate(
        flops=B * HW * (2 * Ce * Ce + 3 * Ce + 2 * Cd * Cd + 3 * Cd
                        + 4 * HW + (Ce + Cd)),
        transcendentals=0,
        bytes_accessed=8 * B * HW * (Ce + Cd) + grid_b * 8 * HW * HW
                       + 4 * off["n"],
    )

    grid_spec = pltpu.PrefetchScalarGridSpec(
        num_scalar_prefetch=0,
        grid=(grid_b,),
        in_specs=[
            pl.BlockSpec((block_b, Ce * HW), lambda b: (b, 0)),
            pl.BlockSpec((block_b, Cd * HW), lambda b: (b, 0)),
            pl.BlockSpec((HW, HW), lambda b: (0, 0)),
            pl.BlockSpec((HW, HW), lambda b: (0, 0)),
            pl.BlockSpec(memory_space=pltpu.MemorySpace.SMEM),
        ],
        out_specs=pl.BlockSpec((block_b, (Ce + Cd) * HW), lambda b: (b, 0)),
    )

    out = pl.pallas_call(
        kernel,
        out_shape=jax.ShapeDtypeStruct((B, (Ce + Cd) * HW), jnp.float32),
        grid_spec=grid_spec,
        compiler_params=pltpu.CompilerParams(
            dimension_semantics=("parallel",)),
        cost_estimate=cost,
    )(e2, d2, Me, Md, params_flat)

    return out.reshape(B, Ce + Cd, H, W)


# ---------------- parameter construction (deterministic, synthetic) ----------------

def _init_branch_params(key, C):
    ks = jax.random.split(key, 8)
    W1 = 0.2 * jax.random.normal(ks[0], (C, C, 1, 1), jnp.float32)
    b1 = 0.1 * jax.random.normal(ks[1], (C,), jnp.float32)
    gamma = 1.0 + 0.1 * jax.random.normal(ks[2], (C,), jnp.float32)
    beta = 0.1 * jax.random.normal(ks[3], (C,), jnp.float32)
    mean = 0.1 * jax.random.normal(ks[4], (C,), jnp.float32)
    var = jax.random.uniform(ks[5], (C,), jnp.float32, 0.5, 1.5)
    W2 = 0.2 * jax.random.normal(ks[6], (1, C, 1, 1), jnp.float32)
    b2 = 0.1 * jax.random.normal(ks[7], (1,), jnp.float32)
    return (W1, b1, gamma, beta, mean, var, W2, b2)


def _init_con7_params(key):
    ks = jax.random.split(key, 6)
    W7 = 0.1 * jax.random.normal(ks[0], (1, 2, 7, 7), jnp.float32)
    b7 = 0.1 * jax.random.normal(ks[1], (1,), jnp.float32)
    gamma = 1.0 + 0.1 * jax.random.normal(ks[2], (1,), jnp.float32)
    beta = 0.1 * jax.random.normal(ks[3], (1,), jnp.float32)
    mean = 0.1 * jax.random.normal(ks[4], (1,), jnp.float32)
    var = jax.random.uniform(ks[5], (1,), jnp.float32, 0.5, 1.5)
    return (W7, b7, gamma, beta, mean, var)


def _fold_branch(p):
    # conv1x1 + BN(eval) folded into effective weight/bias
    W1, b1, gamma, beta, mean, var, W2, b2 = p
    scale = gamma / jnp.sqrt(var + BN_EPS)          # (C,)
    W1_eff = W1[:, :, 0, 0] * scale[:, None]        # (C, C) [o, c]
    b1_eff = scale * (b1 - mean) + beta             # (C,)
    w2_vec = W2[0, :, 0, 0]                         # (C,)
    b2_sca = b2                                     # (1,)
    return W1_eff, b1_eff, w2_vec, b2_sca


def _fold_con7(p):
    W7, b7, gamma, beta, mean, var = p
    scale = gamma / jnp.sqrt(var + BN_EPS)          # (1,)
    W7_eff = W7[0] * scale[0]                       # (2, 7, 7)
    b7_eff = scale * (b7 - mean) + beta             # (1,)
    return W7_eff, b7_eff


def pack_params(p_e, p_d, p_7):
    W1e, b1e, w2e, b2e = _fold_branch(p_e)
    W1d, b1d, w2d, b2d = _fold_branch(p_d)
    W7e, b7e = _fold_con7(p_7)
    return jnp.concatenate([
        W1e.reshape(-1), b1e, w2e, b2e,
        W1d.reshape(-1), b1d, w2d, b2d,
        W7e.reshape(-1), b7e,
    ]).astype(jnp.float32)


# ---------------- pure-JAX reference (for self-check) ----------------

def daa_reference(e, d, p_e, p_d, p_7):
    def branch(x, p):
        W1, b1, g, bt, mu, var, W2, b2 = p
        y = jnp.einsum('bchw,oc->bohw', x, W1[:, :, 0, 0]) + b1[None, :, None, None]
        y = (y - mu[None, :, None, None]) * (g / jnp.sqrt(var + BN_EPS))[None, :, None, None] \
            + bt[None, :, None, None]
        y = jnp.maximum(y, 0.0)
        return jnp.einsum('bchw,oc->bohw', y, W2[:, :, 0, 0]) + b2[None, :, None, None]

    es = branch(e, p_e)
    ds = branch(d, p_d)
    s = jnp.concatenate([es, ds], axis=1)
    W7, b7, g7, bt7, mu7, var7 = p_7
    s = lax.conv_general_dilated(s, W7, (1, 1), ((3, 3), (3, 3)),
                                 dimension_numbers=('NCHW', 'OIHW', 'NCHW'))
    s = s + b7[None, :, None, None]
    s = (s - mu7[None, :, None, None]) * (g7 / jnp.sqrt(var7 + BN_EPS))[None, :, None, None] \
        + bt7[None, :, None, None]
    s = jnp.maximum(s, 0.0)
    return jnp.concatenate([e * s, d * s], axis=1)


if __name__ == "__main__":
    B, Ce, Cd, H, W = 2, 4, 6, 16, 16

    key = jax.random.PRNGKey(0)
    k_e, k_d, k_7, k_xe, k_xd = jax.random.split(key, 5)

    p_e = _init_branch_params(k_e, Ce)
    p_d = _init_branch_params(k_d, Cd)
    p_7 = _init_con7_params(k_7)
    params_flat = pack_params(p_e, p_d, p_7)

    e = jax.random.normal(k_xe, (B, Ce, H, W), jnp.float32)
    d = jax.random.normal(k_xd, (B, Cd, H, W), jnp.float32)

    out = jax.block_until_ready(daa_pallas(e, d, params_flat))
    ref = jax.block_until_ready(daa_reference(e, d, p_e, p_d, p_7))

    assert out.shape == (B, Ce + Cd, H, W), out.shape
    max_err = float(jnp.max(jnp.abs(out - ref)))
    assert max_err < 1e-3, f"mismatch vs reference, max_err={max_err}"

    print("KERNEL_OK")
</pallas_src>

<mosaic_0001>
module attributes {stable_mosaic.version = 11 : i64} {
  func.func @kernel(%arg0: i32, %arg1: memref<2x1024xf32, #tpu.memory_space<vmem>>, %arg2: memref<2x1536xf32, #tpu.memory_space<vmem>>, %arg3: memref<256x256xf32, #tpu.memory_space<vmem>>, %arg4: memref<256x256xf32, #tpu.memory_space<vmem>>, %arg5: memref<173xf32, #tpu.memory_space<smem>>, %arg6: memref<2x2560xf32, #tpu.memory_space<vmem>>) attributes {dimension_semantics = [#tpu.dimension_semantics<parallel>], iteration_bounds = array<i64: 1>, scalar_prefetch = 0 : i64, scratch_operands = 0 : i64, tpu.core_type = #tpu.core_type<tc>, window_params = [{transform_indices = @transform_0, window_bounds = array<i64: 2, 1024>}, {transform_indices = @transform_1, window_bounds = array<i64: 2, 1536>}, {pipeline_mode = #tpu.pipeline_mode<synchronous>, transform_indices = @transform_2, window_bounds = array<i64: 256, 256>}, {pipeline_mode = #tpu.pipeline_mode<synchronous>, transform_indices = @transform_3, window_bounds = array<i64: 256, 256>}, {transform_indices = @transform_4, window_bounds = array<i64: 173>}, {transform_indices = @transform_5, window_bounds = array<i64: 2, 2560>}]} {
    %c0 = arith.constant 0 : index
    %c0_0 = arith.constant 0 : index
    %0 = vector.load %arg1[%c0, %c0_0] : memref<2x1024xf32, #tpu.memory_space<vmem>>, vector<2x256xf32>
    %c0_1 = arith.constant 0 : index
    %1 = memref.load %arg5[%c0_1] : memref<173xf32, #tpu.memory_space<smem>>
    %2 = vector.broadcast %1 : f32 to vector<2x256xf32>
    %3 = arith.mulf %2, %0 : vector<2x256xf32>
    %c0_2 = arith.constant 0 : index
    %c256 = arith.constant 256 : index
    %4 = vector.load %arg1[%c0_2, %c256] : memref<2x1024xf32, #tpu.memory_space<vmem>>, vector<2x256xf32>
    %c1 = arith.constant 1 : index
    %5 = memref.load %arg5[%c1] : memref<173xf32, #tpu.memory_space<smem>>
    %6 = vector.broadcast %5 : f32 to vector<2x256xf32>
    %7 = arith.mulf %6, %4 : vector<2x256xf32>
    %8 = arith.addf %3, %7 : vector<2x256xf32>
    %c0_3 = arith.constant 0 : index
    %c512 = arith.constant 512 : index
    %9 = vector.load %arg1[%c0_3, %c512] : memref<2x1024xf32, #tpu.memory_space<vmem>>, vector<2x256xf32>
    %c2 = arith.constant 2 : index
    %10 = memref.load %arg5[%c2] : memref<173xf32, #tpu.memory_space<smem>>
    %11 = vector.broadcast %10 : f32 to vector<2x256xf32>
    %12 = arith.mulf %11, %9 : vector<2x256xf32>
    %13 = arith.addf %8, %12 : vector<2x256xf32>
    %c0_4 = arith.constant 0 : index
    %c768 = arith.constant 768 : index
    %14 = vector.load %arg1[%c0_4, %c768] : memref<2x1024xf32, #tpu.memory_space<vmem>>, vector<2x256xf32>
    %c3 = arith.constant 3 : index
    %15 = memref.load %arg5[%c3] : memref<173xf32, #tpu.memory_space<smem>>
    %16 = vector.broadcast %15 : f32 to vector<2x256xf32>
    %17 = arith.mulf %16, %14 : vector<2x256xf32>
    %18 = arith.addf %13, %17 : vector<2x256xf32>
    %c16 = arith.constant 16 : index
    %19 = memref.load %arg5[%c16] : memref<173xf32, #tpu.memory_space<smem>>
    %20 = vector.broadcast %19 : f32 to vector<2x256xf32>
    %21 = arith.addf %18, %20 : vector<2x256xf32>
    %cst = arith.constant 0.000000e+00 : f32
    %22 = vector.broadcast %cst : f32 to vector<2x256xf32>
    %23 = arith.maximumf %21, %22 : vector<2x256xf32>
    %c20 = arith.constant 20 : index
    %24 = memref.load %arg5[%c20] : memref<173xf32, #tpu.memory_space<smem>>
    %25 = vector.broadcast %24 : f32 to vector<2x256xf32>
    %26 = arith.mulf %25, %23 : vector<2x256xf32>
    %c0_5 = arith.constant 0 : index
    %c0_6 = arith.constant 0 : index
    %27 = vector.load %arg1[%c0_5, %c0_6] : memref<2x1024xf32, #tpu.memory_space<vmem>>, vector<2x256xf32>
    %c4 = arith.constant 4 : index
    %28 = memref.load %arg5[%c4] : memref<173xf32, #tpu.memory_space<smem>>
    %29 = vector.broadcast %28 : f32 to vector<2x256xf32>
    %30 = arith.mulf %29, %27 : vector<2x256xf32>
    %c0_7 = arith.constant 0 : index
    %c256_8 = arith.constant 256 : index
    %31 = vector.load %arg1[%c0_7, %c256_8] : memref<2x1024xf32, #tpu.memory_space<vmem>>, vector<2x256xf32>
    %c5 = arith.constant 5 : index
    %32 = memref.load %arg5[%c5] : memref<173xf32, #tpu.memory_space<smem>>
    %33 = vector.broadcast %32 : f32 to vector<2x256xf32>
    %34 = arith.mulf %33, %31 : vector<2x256xf32>
    %35 = arith.addf %30, %34 : vector<2x256xf32>
    %c0_9 = arith.constant 0 : index
    %c512_10 = arith.constant 512 : index
    %36 = vector.load %arg1[%c0_9, %c512_10] : memref<2x1024xf32, #tpu.memory_space<vmem>>, vector<2x256xf32>
    %c6 = arith.constant 6 : index
    %37 = memref.load %arg5[%c6] : memref<173xf32, #tpu.memory_space<smem>>
    %38 = vector.broadcast %37 : f32 to vector<2x256xf32>
    %39 = arith.mulf %38, %36 : vector<2x256xf32>
    %40 = arith.addf %35, %39 : vector<2x256xf32>
    %c0_11 = arith.constant 0 : index
    %c768_12 = arith.constant 768 : index
    %41 = vector.load %arg1[%c0_11, %c768_12] : memref<2x1024xf32, #tpu.memory_space<vmem>>, vector<2x256xf32>
    %c7 = arith.constant 7 : index
    %42 = memref.load %arg5[%c7] : memref<173xf32, #tpu.memory_space<smem>>
    %43 = vector.broadcast %42 : f32 to vector<2x256xf32>
    %44 = arith.mulf %43, %41 : vector<2x256xf32>
    %45 = arith.addf %40, %44 : vector<2x256xf32>
    %c17 = arith.constant 17 : index
    %46 = memref.load %arg5[%c17] : memref<173xf32, #tpu.memory_space<smem>>
    %47 = vector.broadcast %46 : f32 to vector<2x256xf32>
    %48 = arith.addf %45, %47 : vector<2x256xf32>
    %cst_13 = arith.constant 0.000000e+00 : f32
    %49 = vector.broadcast %cst_13 : f32 to vector<2x256xf32>
    %50 = arith.maximumf %48, %49 : vector<2x256xf32>
    %c21 = arith.constant 21 : index
    %51 = memref.load %arg5[%c21] : memref<173xf32, #tpu.memory_space<smem>>
    %52 = vector.broadcast %51 : f32 to vector<2x256xf32>
    %53 = arith.mulf %52, %50 : vector<2x256xf32>
    %54 = arith.addf %26, %53 : vector<2x256xf32>
    %c0_14 = arith.constant 0 : index
    %c0_15 = arith.constant 0 : index
    %55 = vector.load %arg1[%c0_14, %c0_15] : memref<2x1024xf32, #tpu.memory_space<vmem>>, vector<2x256xf32>
    %c8 = arith.constant 8 : index
    %56 = memref.load %arg5[%c8] : memref<173xf32, #tpu.memory_space<smem>>
    %57 = vector.broadcast %56 : f32 to vector<2x256xf32>
    %58 = arith.mulf %57, %55 : vector<2x256xf32>
    %c0_16 = arith.constant 0 : index
    %c256_17 = arith.constant 256 : index
    %59 = vector.load %arg1[%c0_16, %c256_17] : memref<2x1024xf32, #tpu.memory_space<vmem>>, vector<2x256xf32>
    %c9 = arith.constant 9 : index
    %60 = memref.load %arg5[%c9] : memref<173xf32, #tpu.memory_space<smem>>
    %61 = vector.broadcast %60 : f32 to vector<2x256xf32>
    %62 = arith.mulf %61, %59 : vector<2x256xf32>
    %63 = arith.addf %58, %62 : vector<2x256xf32>
    %c0_18 = arith.constant 0 : index
    %c512_19 = arith.constant 512 : index
    %64 = vector.load %arg1[%c0_18, %c512_19] : memref<2x1024xf32, #tpu.memory_space<vmem>>, vector<2x256xf32>
    %c10 = arith.constant 10 : index
    %65 = memref.load %arg5[%c10] : memref<173xf32, #tpu.memory_space<smem>>
    %66 = vector.broadcast %65 : f32 to vector<2x256xf32>
    %67 = arith.mulf %66, %64 : vector<2x256xf32>
    %68 = arith.addf %63, %67 : vector<2x256xf32>
    %c0_20 = arith.constant 0 : index
    %c768_21 = arith.constant 768 : index
    %69 = vector.load %arg1[%c0_20, %c768_21] : memref<2x1024xf32, #tpu.memory_space<vmem>>, vector<2x256xf32>
    %c11 = arith.constant 11 : index
    %70 = memref.load %arg5[%c11] : memref<173xf32, #tpu.memory_space<smem>>
    %71 = vector.broadcast %70 : f32 to vector<2x256xf32>
    %72 = arith.mulf %71, %69 : vector<2x256xf32>
    %73 = arith.addf %68, %72 : vector<2x256xf32>
    %c18 = arith.constant 18 : index
    %74 = memref.load %arg5[%c18] : memref<173xf32, #tpu.memory_space<smem>>
    %75 = vector.broadcast %74 : f32 to vector<2x256xf32>
    %76 = arith.addf %73, %75 : vector<2x256xf32>
    %cst_22 = arith.constant 0.000000e+00 : f32
    %77 = vector.broadcast %cst_22 : f32 to vector<2x256xf32>
    %78 = arith.maximumf %76, %77 : vector<2x256xf32>
    %c22 = arith.constant 22 : index
    %79 = memref.load %arg5[%c22] : memref<173xf32, #tpu.memory_space<smem>>
    %80 = vector.broadcast %79 : f32 to vector<2x256xf32>
    %81 = arith.mulf %80, %78 : vector<2x256xf32>
    %82 = arith.addf %54, %81 : vector<2x256xf32>
    %c0_23 = arith.constant 0 : index
    %c0_24 = arith.constant 0 : index
    %83 = vector.load %arg1[%c0_23, %c0_24] : memref<2x1024xf32, #tpu.memory_space<vmem>>, vector<2x256xf32>
    %c12 = arith.constant 12 : index
    %84 = memref.load %arg5[%c12] : memref<173xf32, #tpu.memory_space<smem>>
    %85 = vector.broadcast %84 : f32 to vector<2x256xf32>
    %86 = arith.mulf %85, %83 : vector<2x256xf32>
    %c0_25 = arith.constant 0 : index
    %c256_26 = arith.constant 256 : index
    %87 = vector.load %arg1[%c0_25, %c256_26] : memref<2x1024xf32, #tpu.memory_space<vmem>>, vector<2x256xf32>
    %c13 = arith.constant 13 : index
    %88 = memref.load %arg5[%c13] : memref<173xf32, #tpu.memory_space<smem>>
    %89 = vector.broadcast %88 : f32 to vector<2x256xf32>
    %90 = arith.mulf %89, %87 : vector<2x256xf32>
    %91 = arith.addf %86, %90 : vector<2x256xf32>
    %c0_27 = arith.constant 0 : index
    %c512_28 = arith.constant 512 : index
    %92 = vector.load %arg1[%c0_27, %c512_28] : memref<2x1024xf32, #tpu.memory_space<vmem>>, vector<2x256xf32>
    %c14 = arith.constant 14 : index
    %93 = memref.load %arg5[%c14] : memref<173xf32, #tpu.memory_space<smem>>
    %94 = vector.broadcast %93 : f32 to vector<2x256xf32>
    %95 = arith.mulf %94, %92 : vector<2x256xf32>
    %96 = arith.addf %91, %95 : vector<2x256xf32>
    %c0_29 = arith.constant 0 : index
    %c768_30 = arith.constant 768 : index
    %97 = vector.load %arg1[%c0_29, %c768_30] : memref<2x1024xf32, #tpu.memory_space<vmem>>, vector<2x256xf32>
    %c15 = arith.constant 15 : index
    %98 = memref.load %arg5[%c15] : memref<173xf32, #tpu.memory_space<smem>>
    %99 = vector.broadcast %98 : f32 to vector<2x256xf32>
    %100 = arith.mulf %99, %97 : vector<2x256xf32>
    %101 = arith.addf %96, %100 : vector<2x256xf32>
    %c19 = arith.constant 19 : index
    %102 = memref.load %arg5[%c19] : memref<173xf32, #tpu.memory_space<smem>>
    %103 = vector.broadcast %102 : f32 to vector<2x256xf32>
    %104 = arith.addf %101, %103 : vector<2x256xf32>
    %cst_31 = arith.constant 0.000000e+00 : f32
    %105 = vector.broadcast %cst_31 : f32 to vector<2x256xf32>
    %106 = arith.maximumf %104, %105 : vector<2x256xf32>
    %c23 = arith.constant 23 : index
    %107 = memref.load %arg5[%c23] : memref<173xf32, #tpu.memory_space<smem>>
    %108 = vector.broadcast %107 : f32 to vector<2x256xf32>
    %109 = arith.mulf %108, %106 : vector<2x256xf32>
    %110 = arith.addf %82, %109 : vector<2x256xf32>
    %c24 = arith.constant 24 : index
    %111 = memref.load %arg5[%c24] : memref<173xf32, #tpu.memory_space<smem>>
    %112 = vector.broadcast %111 : f32 to vector<2x256xf32>
    %113 = arith.addf %110, %112 : vector<2x256xf32>
    %c0_32 = arith.constant 0 : index
    %c0_33 = arith.constant 0 : index
    %114 = vector.load %arg2[%c0_32, %c0_33] : memref<2x1536xf32, #tpu.memory_space<vmem>>, vector<2x256xf32>
    %c25 = arith.constant 25 : index
    %115 = memref.load %arg5[%c25] : memref<173xf32, #tpu.memory_space<smem>>
    %116 = vector.broadcast %115 : f32 to vector<2x256xf32>
    %117 = arith.mulf %116, %114 : vector<2x256xf32>
    %c0_34 = arith.constant 0 : index
    %c256_35 = arith.constant 256 : index
    %118 = vector.load %arg2[%c0_34, %c256_35] : memref<2x1536xf32, #tpu.memory_space<vmem>>, vector<2x256xf32>
    %c26 = arith.constant 26 : index
    %119 = memref.load %arg5[%c26] : memref<173xf32, #tpu.memory_space<smem>>
    %120 = vector.broadcast %119 : f32 to vector<2x256xf32>
    %121 = arith.mulf %120, %118 : vector<2x256xf32>
    %122 = arith.addf %117, %121 : vector<2x256xf32>
    %c0_36 = arith.constant 0 : index
    %c512_37 = arith.constant 512 : index
    %123 = vector.load %arg2[%c0_36, %c512_37] : memref<2x1536xf32, #tpu.memory_space<vmem>>, vector<2x256xf32>
    %c27 = arith.constant 27 : index
    %124 = memref.load %arg5[%c27] : memref<173xf32, #tpu.memory_space<smem>>
    %125 = vector.broadcast %124 : f32 to vector<2x256xf32>
    %126 = arith.mulf %125, %123 : vector<2x256xf32>
    %127 = arith.addf %122, %126 : vector<2x256xf32>
    %c0_38 = arith.constant 0 : index
    %c768_39 = arith.constant 768 : index
    %128 = vector.load %arg2[%c0_38, %c768_39] : memref<2x1536xf32, #tpu.memory_space<vmem>>, vector<2x256xf32>
    %c28 = arith.constant 28 : index
    %129 = memref.load %arg5[%c28] : memref<173xf32, #tpu.memory_space<smem>>
    %130 = vector.broadcast %129 : f32 to vector<2x256xf32>
    %131 = arith.mulf %130, %128 : vector<2x256xf32>
    %132 = arith.addf %127, %131 : vector<2x256xf32>
    %c0_40 = arith.constant 0 : index
    %c1024 = arith.constant 1024 : index
    %133 = vector.load %arg2[%c0_40, %c1024] : memref<2x1536xf32, #tpu.memory_space<vmem>>, vector<2x256xf32>
    %c29 = arith.constant 29 : index
    %134 = memref.load %arg5[%c29] : memref<173xf32, #tpu.memory_space<smem>>
    %135 = vector.broadcast %134 : f32 to vector<2x256xf32>
    %136 = arith.mulf %135, %133 : vector<2x256xf32>
    %137 = arith.addf %132, %136 : vector<2x256xf32>
    %c0_41 = arith.constant 0 : index
    %c1280 = arith.constant 1280 : index
    %138 = vector.load %arg2[%c0_41, %c1280] : memref<2x1536xf32, #tpu.memory_space<vmem>>, vector<2x256xf32>
    %c30 = arith.constant 30 : index
    %139 = memref.load %arg5[%c30] : memref<173xf32, #tpu.memory_space<smem>>
    %140 = vector.broadcast %139 : f32 to vector<2x256xf32>
    %141 = arith.mulf %140, %138 : vector<2x256xf32>
    %142 = arith.addf %137, %141 : vector<2x256xf32>
    %c61 = arith.constant 61 : index
    %143 = memref.load %arg5[%c61] : memref<173xf32, #tpu.memory_space<smem>>
    %144 = vector.broadcast %143 : f32 to vector<2x256xf32>
    %145 = arith.addf %142, %144 : vector<2x256xf32>
    %cst_42 = arith.constant 0.000000e+00 : f32
    %146 = vector.broadcast %cst_42 : f32 to vector<2x256xf32>
    %147 = arith.maximumf %145, %146 : vector<2x256xf32>
    %c67 = arith.constant 67 : index
    %148 = memref.load %arg5[%c67] : memref<173xf32, #tpu.memory_space<smem>>
    %149 = vector.broadcast %148 : f32 to vector<2x256xf32>
    %150 = arith.mulf %149, %147 : vector<2x256xf32>
    %c0_43 = arith.constant 0 : index
    %c0_44 = arith.constant 0 : index
    %151 = vector.load %arg2[%c0_43, %c0_44] : memref<2x1536xf32, #tpu.memory_space<vmem>>, vector<2x256xf32>
    %c31 = arith.constant 31 : index
    %152 = memref.load %arg5[%c31] : memref<173xf32, #tpu.memory_space<smem>>
    %153 = vector.broadcast %152 : f32 to vector<2x256xf32>
    %154 = arith.mulf %153, %151 : vector<2x256xf32>
    %c0_45 = arith.constant 0 : index
    %c256_46 = arith.constant 256 : index
    %155 = vector.load %arg2[%c0_45, %c256_46] : memref<2x1536xf32, #tpu.memory_space<vmem>>, vector<2x256xf32>
    %c32 = arith.constant 32 : index
    %156 = memref.load %arg5[%c32] : memref<173xf32, #tpu.memory_space<smem>>
    %157 = vector.broadcast %156 : f32 to vector<2x256xf32>
    %158 = arith.mulf %157, %155 : vector<2x256xf32>
    %159 = arith.addf %154, %158 : vector<2x256xf32>
    %c0_47 = arith.constant 0 : index
    %c512_48 = arith.constant 512 : index
    %160 = vector.load %arg2[%c0_47, %c512_48] : memref<2x1536xf32, #tpu.memory_space<vmem>>, vector<2x256xf32>
    %c33 = arith.constant 33 : index
    %161 = memref.load %arg5[%c33] : memref<173xf32, #tpu.memory_space<smem>>
    %162 = vector.broadcast %161 : f32 to vector<2x256xf32>
    %163 = arith.mulf %162, %160 : vector<2x256xf32>
    %164 = arith.addf %159, %163 : vector<2x256xf32>
    %c0_49 = arith.constant 0 : index
    %c768_50 = arith.constant 768 : index
    %165 = vector.load %arg2[%c0_49, %c768_50] : memref<2x1536xf32, #tpu.memory_space<vmem>>, vector<2x256xf32>
    %c34 = arith.constant 34 : index
    %166 = memref.load %arg5[%c34] : memref<173xf32, #tpu.memory_space<smem>>
    %167 = vector.broadcast %166 : f32 to vector<2x256xf32>
    %168 = arith.mulf %167, %165 : vector<2x256xf32>
    %169 = arith.addf %164, %168 : vector<2x256xf32>
    %c0_51 = arith.constant 0 : index
    %c1024_52 = arith.constant 1024 : index
    %170 = vector.load %arg2[%c0_51, %c1024_52] : memref<2x1536xf32, #tpu.memory_space<vmem>>, vector<2x256xf32>
    %c35 = arith.constant 35 : index
    %171 = memref.load %arg5[%c35] : memref<173xf32, #tpu.memory_space<smem>>
    %172 = vector.broadcast %171 : f32 to vector<2x256xf32>
    %173 = arith.mulf %172, %170 : vector<2x256xf32>
    %174 = arith.addf %169, %173 : vector<2x256xf32>
    %c0_53 = arith.constant 0 : index
    %c1280_54 = arith.constant 1280 : index
    %175 = vector.load %arg2[%c0_53, %c1280_54] : memref<2x1536xf32, #tpu.memory_space<vmem>>, vector<2x256xf32>
    %c36 = arith.constant 36 : index
    %176 = memref.load %arg5[%c36] : memref<173xf32, #tpu.memory_space<smem>>
    %177 = vector.broadcast %176 : f32 to vector<2x256xf32>
    %178 = arith.mulf %177, %175 : vector<2x256xf32>
    %179 = arith.addf %174, %178 : vector<2x256xf32>
    %c62 = arith.constant 62 : index
    %180 = memref.load %arg5[%c62] : memref<173xf32, #tpu.memory_space<smem>>
    %181 = vector.broadcast %180 : f32 to vector<2x256xf32>
    %182 = arith.addf %179, %181 : vector<2x256xf32>
    %cst_55 = arith.constant 0.000000e+00 : f32
    %183 = vector.broadcast %cst_55 : f32 to vector<2x256xf32>
    %184 = arith.maximumf %182, %183 : vector<2x256xf32>
    %c68 = arith.constant 68 : index
    %185 = memref.load %arg5[%c68] : memref<173xf32, #tpu.memory_space<smem>>
    %186 = vector.broadcast %185 : f32 to vector<2x256xf32>
    %187 = arith.mulf %186, %184 : vector<2x256xf32>
    %188 = arith.addf %150, %187 : vector<2x256xf32>
    %c0_56 = arith.constant 0 : index
    %c0_57 = arith.constant 0 : index
    %189 = vector.load %arg2[%c0_56, %c0_57] : memref<2x1536xf32, #tpu.memory_space<vmem>>, vector<2x256xf32>
    %c37 = arith.constant 37 : index
    %190 = memref.load %arg5[%c37] : memref<173xf32, #tpu.memory_space<smem>>
    %191 = vector.broadcast %190 : f32 to vector<2x256xf32>
    %192 = arith.mulf %191, %189 : vector<2x256xf32>
    %c0_58 = arith.constant 0 : index
    %c256_59 = arith.constant 256 : index
    %193 = vector.load %arg2[%c0_58, %c256_59] : memref<2x1536xf32, #tpu.memory_space<vmem>>, vector<2x256xf32>
    %c38 = arith.constant 38 : index
    %194 = memref.load %arg5[%c38] : memref<173xf32, #tpu.memory_space<smem>>
    %195 = vector.broadcast %194 : f32 to vector<2x256xf32>
    %196 = arith.mulf %195, %193 : vector<2x256xf32>
    %197 = arith.addf %192, %196 : vector<2x256xf32>
    %c0_60 = arith.constant 0 : index
    %c512_61 = arith.constant 512 : index
    %198 = vector.load %arg2[%c0_60, %c512_61] : memref<2x1536xf32, #tpu.memory_space<vmem>>, vector<2x256xf32>
    %c39 = arith.constant 39 : index
    %199 = memref.load %arg5[%c39] : memref<173xf32, #tpu.memory_space<smem>>
    %200 = vector.broadcast %199 : f32 to vector<2x256xf32>
    %201 = arith.mulf %200, %198 : vector<2x256xf32>
    %202 = arith.addf %197, %201 : vector<2x256xf32>
    %c0_62 = arith.constant 0 : index
    %c768_63 = arith.constant 768 : index
    %203 = vector.load %arg2[%c0_62, %c768_63] : memref<2x1536xf32, #tpu.memory_space<vmem>>, vector<2x256xf32>
    %c40 = arith.constant 40 : index
    %204 = memref.load %arg5[%c40] : memref<173xf32, #tpu.memory_space<smem>>
    %205 = vector.broadcast %204 : f32 to vector<2x256xf32>
    %206 = arith.mulf %205, %203 : vector<2x256xf32>
    %207 = arith.addf %202, %206 : vector<2x256xf32>
    %c0_64 = arith.constant 0 : index
    %c1024_65 = arith.constant 1024 : index
    %208 = vector.load %arg2[%c0_64, %c1024_65] : memref<2x1536xf32, #tpu.memory_space<vmem>>, vector<2x256xf32>
    %c41 = arith.constant 41 : index
    %209 = memref.load %arg5[%c41] : memref<173xf32, #tpu.memory_space<smem>>
    %210 = vector.broadcast %209 : f32 to vector<2x256xf32>
    %211 = arith.mulf %210, %208 : vector<2x256xf32>
    %212 = arith.addf %207, %211 : vector<2x256xf32>
    %c0_66 = arith.constant 0 : index
    %c1280_67 = arith.constant 1280 : index
    %213 = vector.load %arg2[%c0_66, %c1280_67] : memref<2x1536xf32, #tpu.memory_space<vmem>>, vector<2x256xf32>
    %c42 = arith.constant 42 : index
    %214 = memref.load %arg5[%c42] : memref<173xf32, #tpu.memory_space<smem>>
    %215 = vector.broadcast %214 : f32 to vector<2x256xf32>
    %216 = arith.mulf %215, %213 : vector<2x256xf32>
    %217 = arith.addf %212, %216 : vector<2x256xf32>
    %c63 = arith.constant 63 : index
    %218 = memref.load %arg5[%c63] : memref<173xf32, #tpu.memory_space<smem>>
    %219 = vector.broadcast %218 : f32 to vector<2x256xf32>
    %220 = arith.addf %217, %219 : vector<2x256xf32>
    %cst_68 = arith.constant 0.000000e+00 : f32
    %221 = vector.broadcast %cst_68 : f32 to vector<2x256xf32>
    %222 = arith.maximumf %220, %221 : vector<2x256xf32>
    %c69 = arith.constant 69 : index
    %223 = memref.load %arg5[%c69] : memref<173xf32, #tpu.memory_space<smem>>
    %224 = vector.broadcast %223 : f32 to vector<2x256xf32>
    %225 = arith.mulf %224, %222 : vector<2x256xf32>
    %226 = arith.addf %188, %225 : vector<2x256xf32>
    %c0_69 = arith.constant 0 : index
    %c0_70 = arith.constant 0 : index
    %227 = vector.load %arg2[%c0_69, %c0_70] : memref<2x1536xf32, #tpu.memory_space<vmem>>, vector<2x256xf32>
    %c43 = arith.constant 43 : index
    %228 = memref.load %arg5[%c43] : memref<173xf32, #tpu.memory_space<smem>>
    %229 = vector.broadcast %228 : f32 to vector<2x256xf32>
    %230 = arith.mulf %229, %227 : vector<2x256xf32>
    %c0_71 = arith.constant 0 : index
    %c256_72 = arith.constant 256 : index
    %231 = vector.load %arg2[%c0_71, %c256_72] : memref<2x1536xf32, #tpu.memory_space<vmem>>, vector<2x256xf32>
    %c44 = arith.constant 44 : index
    %232 = memref.load %arg5[%c44] : memref<173xf32, #tpu.memory_space<smem>>
    %233 = vector.broadcast %232 : f32 to vector<2x256xf32>
    %234 = arith.mulf %233, %231 : vector<2x256xf32>
    %235 = arith.addf %230, %234 : vector<2x256xf32>
    %c0_73 = arith.constant 0 : index
    %c512_74 = arith.constant 512 : index
    %236 = vector.load %arg2[%c0_73, %c512_74] : memref<2x1536xf32, #tpu.memory_space<vmem>>, vector<2x256xf32>
    %c45 = arith.constant 45 : index
    %237 = memref.load %arg5[%c45] : memref<173xf32, #tpu.memory_space<smem>>
    %238 = vector.broadcast %237 : f32 to vector<2x256xf32>
    %239 = arith.mulf %238, %236 : vector<2x256xf32>
    %240 = arith.addf %235, %239 : vector<2x256xf32>
    %c0_75 = arith.constant 0 : index
    %c768_76 = arith.constant 768 : index
    %241 = vector.load %arg2[%c0_75, %c768_76] : memref<2x1536xf32, #tpu.memory_space<vmem>>, vector<2x256xf32>
    %c46 = arith.constant 46 : index
    %242 = memref.load %arg5[%c46] : memref<173xf32, #tpu.memory_space<smem>>
    %243 = vector.broadcast %242 : f32 to vector<2x256xf32>
    %244 = arith.mulf %243, %241 : vector<2x256xf32>
    %245 = arith.addf %240, %244 : vector<2x256xf32>
    %c0_77 = arith.constant 0 : index
    %c1024_78 = arith.constant 1024 : index
    %246 = vector.load %arg2[%c0_77, %c1024_78] : memref<2x1536xf32, #tpu.memory_space<vmem>>, vector<2x256xf32>
    %c47 = arith.constant 47 : index
    %247 = memref.load %arg5[%c47] : memref<173xf32, #tpu.memory_space<smem>>
    %248 = vector.broadcast %247 : f32 to vector<2x256xf32>
    %249 = arith.mulf %248, %246 : vector<2x256xf32>
    %250 = arith.addf %245, %249 : vector<2x256xf32>
    %c0_79 = arith.constant 0 : index
    %c1280_80 = arith.constant 1280 : index
    %251 = vector.load %arg2[%c0_79, %c1280_80] : memref<2x1536xf32, #tpu.memory_space<vmem>>, vector<2x256xf32>
    %c48 = arith.constant 48 : index
    %252 = memref.load %arg5[%c48] : memref<173xf32, #tpu.memory_space<smem>>
    %253 = vector.broadcast %252 : f32 to vector<2x256xf32>
    %254 = arith.mulf %253, %251 : vector<2x256xf32>
    %255 = arith.addf %250, %254 : vector<2x256xf32>
    %c64 = arith.constant 64 : index
    %256 = memref.load %arg5[%c64] : memref<173xf32, #tpu.memory_space<smem>>
    %257 = vector.broadcast %256 : f32 to vector<2x256xf32>
    %258 = arith.addf %255, %257 : vector<2x256xf32>
    %cst_81 = arith.constant 0.000000e+00 : f32
    %259 = vector.broadcast %cst_81 : f32 to vector<2x256xf32>
    %260 = arith.maximumf %258, %259 : vector<2x256xf32>
    %c70 = arith.constant 70 : index
    %261 = memref.load %arg5[%c70] : memref<173xf32, #tpu.memory_space<smem>>
    %262 = vector.broadcast %261 : f32 to vector<2x256xf32>
    %263 = arith.mulf %262, %260 : vector<2x256xf32>
    %264 = arith.addf %226, %263 : vector<2x256xf32>
    %c0_82 = arith.constant 0 : index
    %c0_83 = arith.constant 0 : index
    %265 = vector.load %arg2[%c0_82, %c0_83] : memref<2x1536xf32, #tpu.memory_space<vmem>>, vector<2x256xf32>
    %c49 = arith.constant 49 : index
    %266 = memref.load %arg5[%c49] : memref<173xf32, #tpu.memory_space<smem>>
    %267 = vector.broadcast %266 : f32 to vector<2x256xf32>
    %268 = arith.mulf %267, %265 : vector<2x256xf32>
    %c0_84 = arith.constant 0 : index
    %c256_85 = arith.constant 256 : index
    %269 = vector.load %arg2[%c0_84, %c256_85] : memref<2x1536xf32, #tpu.memory_space<vmem>>, vector<2x256xf32>
    %c50 = arith.constant 50 : index
    %270 = memref.load %arg5[%c50] : memref<173xf32, #tpu.memory_space<smem>>
    %271 = vector.broadcast %270 : f32 to vector<2x256xf32>
    %272 = arith.mulf %271, %269 : vector<2x256xf32>
    %273 = arith.addf %268, %272 : vector<2x256xf32>
    %c0_86 = arith.constant 0 : index
    %c512_87 = arith.constant 512 : index
    %274 = vector.load %arg2[%c0_86, %c512_87] : memref<2x1536xf32, #tpu.memory_space<vmem>>, vector<2x256xf32>
    %c51 = arith.constant 51 : index
    %275 = memref.load %arg5[%c51] : memref<173xf32, #tpu.memory_space<smem>>
    %276 = vector.broadcast %275 : f32 to vector<2x256xf32>
    %277 = arith.mulf %276, %274 : vector<2x256xf32>
    %278 = arith.addf %273, %277 : vector<2x256xf32>
    %c0_88 = arith.constant 0 : index
    %c768_89 = arith.constant 768 : index
    %279 = vector.load %arg2[%c0_88, %c768_89] : memref<2x1536xf32, #tpu.memory_space<vmem>>, vector<2x256xf32>
    %c52 = arith.constant 52 : index
    %280 = memref.load %arg5[%c52] : memref<173xf32, #tpu.memory_space<smem>>
    %281 = vector.broadcast %280 : f32 to vector<2x256xf32>
    %282 = arith.mulf %281, %279 : vector<2x256xf32>
    %283 = arith.addf %278, %282 : vector<2x256xf32>
    %c0_90 = arith.constant 0 : index
    %c1024_91 = arith.constant 1024 : index
    %284 = vector.load %arg2[%c0_90, %c1024_91] : memref<2x1536xf32, #tpu.memory_space<vmem>>, vector<2x256xf32>
    %c53 = arith.constant 53 : index
    %285 = memref.load %arg5[%c53] : memref<173xf32, #tpu.memory_space<smem>>
    %286 = vector.broadcast %285 : f32 to vector<2x256xf32>
    %287 = arith.mulf %286, %284 : vector<2x256xf32>
    %288 = arith.addf %283, %287 : vector<2x256xf32>
    %c0_92 = arith.constant 0 : index
    %c1280_93 = arith.constant 1280 : index
    %289 = vector.load %arg2[%c0_92, %c1280_93] : memref<2x1536xf32, #tpu.memory_space<vmem>>, vector<2x256xf32>
    %c54 = arith.constant 54 : index
    %290 = memref.load %arg5[%c54] : memref<173xf32, #tpu.memory_space<smem>>
    %291 = vector.broadcast %290 : f32 to vector<2x256xf32>
    %292 = arith.mulf %291, %289 : vector<2x256xf32>
    %293 = arith.addf %288, %292 : vector<2x256xf32>
    %c65 = arith.constant 65 : index
    %294 = memref.load %arg5[%c65] : memref<173xf32, #tpu.memory_space<smem>>
    %295 = vector.broadcast %294 : f32 to vector<2x256xf32>
    %296 = arith.addf %293, %295 : vector<2x256xf32>
    %cst_94 = arith.constant 0.000000e+00 : f32
    %297 = vector.broadcast %cst_94 : f32 to vector<2x256xf32>
    %298 = arith.maximumf %296, %297 : vector<2x256xf32>
    %c71 = arith.constant 71 : index
    %299 = memref.load %arg5[%c71] : memref<173xf32, #tpu.memory_space<smem>>
    %300 = vector.broadcast %299 : f32 to vector<2x256xf32>
    %301 = arith.mulf %300, %298 : vector<2x256xf32>
    %302 = arith.addf %264, %301 : vector<2x256xf32>
    %c0_95 = arith.constant 0 : index
    %c0_96 = arith.constant 0 : index
    %303 = vector.load %arg2[%c0_95, %c0_96] : memref<2x1536xf32, #tpu.memory_space<vmem>>, vector<2x256xf32>
    %c55 = arith.constant 55 : index
    %304 = memref.load %arg5[%c55] : memref<173xf32, #tpu.memory_space<smem>>
    %305 = vector.broadcast %304 : f32 to vector<2x256xf32>
    %306 = arith.mulf %305, %303 : vector<2x256xf32>
    %c0_97 = arith.constant 0 : index
    %c256_98 = arith.constant 256 : index
    %307 = vector.load %arg2[%c0_97, %c256_98] : memref<2x1536xf32, #tpu.memory_space<vmem>>, vector<2x256xf32>
    %c56 = arith.constant 56 : index
    %308 = memref.load %arg5[%c56] : memref<173xf32, #tpu.memory_space<smem>>
    %309 = vector.broadcast %308 : f32 to vector<2x256xf32>
    %310 = arith.mulf %309, %307 : vector<2x256xf32>
    %311 = arith.addf %306, %310 : vector<2x256xf32>
    %c0_99 = arith.constant 0 : index
    %c512_100 = arith.constant 512 : index
    %312 = vector.load %arg2[%c0_99, %c512_100] : memref<2x1536xf32, #tpu.memory_space<vmem>>, vector<2x256xf32>
    %c57 = arith.constant 57 : index
    %313 = memref.load %arg5[%c57] : memref<173xf32, #tpu.memory_space<smem>>
    %314 = vector.broadcast %313 : f32 to vector<2x256xf32>
    %315 = arith.mulf %314, %312 : vector<2x256xf32>
    %316 = arith.addf %311, %315 : vector<2x256xf32>
    %c0_101 = arith.constant 0 : index
    %c768_102 = arith.constant 768 : index
    %317 = vector.load %arg2[%c0_101, %c768_102] : memref<2x1536xf32, #tpu.memory_space<vmem>>, vector<2x256xf32>
    %c58 = arith.constant 58 : index
    %318 = memref.load %arg5[%c58] : memref<173xf32, #tpu.memory_space<smem>>
    %319 = vector.broadcast %318 : f32 to vector<2x256xf32>
    %320 = arith.mulf %319, %317 : vector<2x256xf32>
    %321 = arith.addf %316, %320 : vector<2x256xf32>
    %c0_103 = arith.constant 0 : index
    %c1024_104 = arith.constant 1024 : index
    %322 = vector.load %arg2[%c0_103, %c1024_104] : memref<2x1536xf32, #tpu.memory_space<vmem>>, vector<2x256xf32>
    %c59 = arith.constant 59 : index
    %323 = memref.load %arg5[%c59] : memref<173xf32, #tpu.memory_space<smem>>
    %324 = vector.broadcast %323 : f32 to vector<2x256xf32>
    %325 = arith.mulf %324, %322 : vector<2x256xf32>
    %326 = arith.addf %321, %325 : vector<2x256xf32>
    %c0_105 = arith.constant 0 : index
    %c1280_106 = arith.constant 1280 : index
    %327 = vector.load %arg2[%c0_105, %c1280_106] : memref<2x1536xf32, #tpu.memory_space<vmem>>, vector<2x256xf32>
    %c60 = arith.constant 60 : index
    %328 = memref.load %arg5[%c60] : memref<173xf32, #tpu.memory_space<smem>>
    %329 = vector.broadcast %328 : f32 to vector<2x256xf32>
    %330 = arith.mulf %329, %327 : vector<2x256xf32>
    %331 = arith.addf %326, %330 : vector<2x256xf32>
    %c66 = arith.constant 66 : index
    %332 = memref.load %arg5[%c66] : memref<173xf32, #tpu.memory_space<smem>>
    %333 = vector.broadcast %332 : f32 to vector<2x256xf32>
    %334 = arith.addf %331, %333 : vector<2x256xf32>
    %cst_107 = arith.constant 0.000000e+00 : f32
    %335 = vector.broadcast %cst_107 : f32 to vector<2x256xf32>
    %336 = arith.maximumf %334, %335 : vector<2x256xf32>
    %c72 = arith.constant 72 : index
    %337 = memref.load %arg5[%c72] : memref<173xf32, #tpu.memory_space<smem>>
    %338 = vector.broadcast %337 : f32 to vector<2x256xf32>
    %339 = arith.mulf %338, %336 : vector<2x256xf32>
    %340 = arith.addf %302, %339 : vector<2x256xf32>
    %c73 = arith.constant 73 : index
    %341 = memref.load %arg5[%c73] : memref<173xf32, #tpu.memory_space<smem>>
    %342 = vector.broadcast %341 : f32 to vector<2x256xf32>
    %343 = arith.addf %340, %342 : vector<2x256xf32>
    %c0_108 = arith.constant 0 : index
    %c0_109 = arith.constant 0 : index
    %344 = vector.load %arg3[%c0_108, %c0_109] : memref<256x256xf32, #tpu.memory_space<vmem>>, vector<256x256xf32>
    %cst_110 = arith.constant dense<0.000000e+00> : vector<2x256xf32>
    %345 = tpu.matmul %113, %344, %cst_110 {dimension_numbers = #tpu.dot_dimension_numbers<[1], [0], [0], [1], [0, 0, 1, 1], [], []>, precision = #tpu.contract_precision<fp32>} : vector<2x256xf32>, vector<256x256xf32>, vector<2x256xf32> -> vector<2x256xf32>
    %c0_111 = arith.constant 0 : index
    %c0_112 = arith.constant 0 : index
    %346 = vector.load %arg4[%c0_111, %c0_112] : memref<256x256xf32, #tpu.memory_space<vmem>>, vector<256x256xf32>
    %cst_113 = arith.constant dense<0.000000e+00> : vector<2x256xf32>
    %347 = tpu.matmul %343, %346, %cst_113 {dimension_numbers = #tpu.dot_dimension_numbers<[1], [0], [0], [1], [0, 0, 1, 1], [], []>, precision = #tpu.contract_precision<fp32>} : vector<2x256xf32>, vector<256x256xf32>, vector<2x256xf32> -> vector<2x256xf32>
    %348 = arith.addf %345, %347 : vector<2x256xf32>
    %c172 = arith.constant 172 : index
    %349 = memref.load %arg5[%c172] : memref<173xf32, #tpu.memory_space<smem>>
    %350 = vector.broadcast %349 : f32 to vector<2x256xf32>
    %351 = arith.addf %348, %350 : vector<2x256xf32>
    %cst_114 = arith.constant 0.000000e+00 : f32
    %352 = vector.broadcast %cst_114 : f32 to vector<2x256xf32>
    %353 = arith.maximumf %351, %352 : vector<2x256xf32>
    %c0_115 = arith.constant 0 : index
    %c0_116 = arith.constant 0 : index
    %354 = vector.load %arg1[%c0_115, %c0_116] : memref<2x1024xf32, #tpu.memory_space<vmem>>, vector<2x256xf32>
    %355 = arith.mulf %354, %353 : vector<2x256xf32>
    %c0_117 = arith.constant 0 : index
    %c0_118 = arith.constant 0 : index
    %356 = vector.load %arg6[%c0_117, %c0_118] : memref<2x2560xf32, #tpu.memory_space<vmem>>, vector<2x256xf32>
    tpu.vector_store %arg6[%c0_117, %c0_118], %355 {strides = array<i32>} : memref<2x2560xf32, #tpu.memory_space<vmem>>, vector<2x256xf32>,
    %c0_119 = arith.constant 0 : index
    %c256_120 = arith.constant 256 : index
    %357 = vector.load %arg1[%c0_119, %c256_120] : memref<2x1024xf32, #tpu.memory_space<vmem>>, vector<2x256xf32>
    %358 = arith.mulf %357, %353 : vector<2x256xf32>
    %c0_121 = arith.constant 0 : index
    %c256_122 = arith.constant 256 : index
    %359 = vector.load %arg6[%c0_121, %c256_122] : memref<2x2560xf32, #tpu.memory_space<vmem>>, vector<2x256xf32>
    tpu.vector_store %arg6[%c0_121, %c256_122], %358 {strides = array<i32>} : memref<2x2560xf32, #tpu.memory_space<vmem>>, vector<2x256xf32>,
    %c0_123 = arith.constant 0 : index
    %c512_124 = arith.constant 512 : index
    %360 = vector.load %arg1[%c0_123, %c512_124] : memref<2x1024xf32, #tpu.memory_space<vmem>>, vector<2x256xf32>
    %361 = arith.mulf %360, %353 : vector<2x256xf32>
    %c0_125 = arith.constant 0 : index
    %c512_126 = arith.constant 512 : index
    %362 = vector.load %arg6[%c0_125, %c512_126] : memref<2x2560xf32, #tpu.memory_space<vmem>>, vector<2x256xf32>
    tpu.vector_store %arg6[%c0_125, %c512_126], %361 {strides = array<i32>} : memref<2x2560xf32, #tpu.memory_space<vmem>>, vector<2x256xf32>,
    %c0_127 = arith.constant 0 : index
    %c768_128 = arith.constant 768 : index
    %363 = vector.load %arg1[%c0_127, %c768_128] : memref<2x1024xf32, #tpu.memory_space<vmem>>, vector<2x256xf32>
    %364 = arith.mulf %363, %353 : vector<2x256xf32>
    %c0_129 = arith.constant 0 : index
    %c768_130 = arith.constant 768 : index
    %365 = vector.load %arg6[%c0_129, %c768_130] : memref<2x2560xf32, #tpu.memory_space<vmem>>, vector<2x256xf32>
    tpu.vector_store %arg6[%c0_129, %c768_130], %364 {strides = array<i32>} : memref<2x2560xf32, #tpu.memory_space<vmem>>, vector<2x256xf32>,
    %c0_131 = arith.constant 0 : index
    %c0_132 = arith.constant 0 : index
    %366 = vector.load %arg2[%c0_131, %c0_132] : memref<2x1536xf32, #tpu.memory_space<vmem>>, vector<2x256xf32>
    %367 = arith.mulf %366, %353 : vector<2x256xf32>
    %c0_133 = arith.constant 0 : index
    %c1024_134 = arith.constant 1024 : index
    %368 = vector.load %arg6[%c0_133, %c1024_134] : memref<2x2560xf32, #tpu.memory_space<vmem>>, vector<2x256xf32>
    tpu.vector_store %arg6[%c0_133, %c1024_134], %367 {strides = array<i32>} : memref<2x2560xf32, #tpu.memory_space<vmem>>, vector<2x256xf32>,
    %c0_135 = arith.constant 0 : index
    %c256_136 = arith.constant 256 : index
    %369 = vector.load %arg2[%c0_135, %c256_136] : memref<2x1536xf32, #tpu.memory_space<vmem>>, vector<2x256xf32>
    %370 = arith.mulf %369, %353 : vector<2x256xf32>
    %c0_137 = arith.constant 0 : index
    %c1280_138 = arith.constant 1280 : index
    %371 = vector.load %arg6[%c0_137, %c1280_138] : memref<2x2560xf32, #tpu.memory_space<vmem>>, vector<2x256xf32>
    tpu.vector_store %arg6[%c0_137, %c1280_138], %370 {strides = array<i32>} : memref<2x2560xf32, #tpu.memory_space<vmem>>, vector<2x256xf32>,
    %c0_139 = arith.constant 0 : index
    %c512_140 = arith.constant 512 : index
    %372 = vector.load %arg2[%c0_139, %c512_140] : memref<2x1536xf32, #tpu.memory_space<vmem>>, vector<2x256xf32>
    %373 = arith.mulf %372, %353 : vector<2x256xf32>
    %c0_141 = arith.constant 0 : index
    %c1536 = arith.constant 1536 : index
    %374 = vector.load %arg6[%c0_141, %c1536] : memref<2x2560xf32, #tpu.memory_space<vmem>>, vector<2x256xf32>
    tpu.vector_store %arg6[%c0_141, %c1536], %373 {strides = array<i32>} : memref<2x2560xf32, #tpu.memory_space<vmem>>, vector<2x256xf32>,
    %c0_142 = arith.constant 0 : index
    %c768_143 = arith.constant 768 : index
    %375 = vector.load %arg2[%c0_142, %c768_143] : memref<2x1536xf32, #tpu.memory_space<vmem>>, vector<2x256xf32>
    %376 = arith.mulf %375, %353 : vector<2x256xf32>
    %c0_144 = arith.constant 0 : index
    %c1792 = arith.constant 1792 : index
    %377 = vector.load %arg6[%c0_144, %c1792] : memref<2x2560xf32, #tpu.memory_space<vmem>>, vector<2x256xf32>
    tpu.vector_store %arg6[%c0_144, %c1792], %376 {strides = array<i32>} : memref<2x2560xf32, #tpu.memory_space<vmem>>, vector<2x256xf32>,
    %c0_145 = arith.constant 0 : index
    %c1024_146 = arith.constant 1024 : index
    %378 = vector.load %arg2[%c0_145, %c1024_146] : memref<2x1536xf32, #tpu.memory_space<vmem>>, vector<2x256xf32>
    %379 = arith.mulf %378, %353 : vector<2x256xf32>
    %c0_147 = arith.constant 0 : index
    %c2048 = arith.constant 2048 : index
    %380 = vector.load %arg6[%c0_147, %c2048] : memref<2x2560xf32, #tpu.memory_space<vmem>>, vector<2x256xf32>
    tpu.vector_store %arg6[%c0_147, %c2048], %379 {strides = array<i32>} : memref<2x2560xf32, #tpu.memory_space<vmem>>, vector<2x256xf32>,
    %c0_148 = arith.constant 0 : index
    %c1280_149 = arith.constant 1280 : index
    %381 = vector.load %arg2[%c0_148, %c1280_149] : memref<2x1536xf32, #tpu.memory_space<vmem>>, vector<2x256xf32>
    %382 = arith.mulf %381, %353 : vector<2x256xf32>
    %c0_150 = arith.constant 0 : index
    %c2304 = arith.constant 2304 : index
    %383 = vector.load %arg6[%c0_150, %c2304] : memref<2x2560xf32, #tpu.memory_space<vmem>>, vector<2x256xf32>
    tpu.vector_store %arg6[%c0_150, %c2304], %382 {strides = array<i32>} : memref<2x2560xf32, #tpu.memory_space<vmem>>, vector<2x256xf32>,
    return
  }
  func.func @transform_0(%arg0: i32) -> (i32, i32) {
    %c0_i32 = arith.constant 0 : i32
    %c0_i32_0 = arith.constant 0 : i32
    return %arg0, %c0_i32 : i32, i32
  }
  func.func @transform_1(%arg0: i32) -> (i32, i32) {
    %c0_i32 = arith.constant 0 : i32
    %c0_i32_0 = arith.constant 0 : i32
    return %arg0, %c0_i32 : i32, i32
  }
  func.func @transform_2(%arg0: i32) -> (i32, i32) {
    %c0_i32 = arith.constant 0 : i32
    %c0_i32_0 = arith.constant 0 : i32
    %c0_i32_1 = arith.constant 0 : i32
    return %c0_i32, %c0_i32_0 : i32, i32
  }
  func.func @transform_3(%arg0: i32) -> (i32, i32) {
    %c0_i32 = arith.constant 0 : i32
    %c0_i32_0 = arith.constant 0 : i32
    %c0_i32_1 = arith.constant 0 : i32
    return %c0_i32, %c0_i32_0 : i32, i32
  }
  func.func @transform_4(%arg0: i32) -> i32 {
    %c0_i32 = arith.constant 0 : i32
    %c0_i32_0 = arith.constant 0 : i32
    return %c0_i32 : i32
  }
  func.func @transform_5(%arg0: i32) -> (i32, i32) {
    %c0_i32 = arith.constant 0 : i32
    %c0_i32_0 = arith.constant 0 : i32
    return %arg0, %c0_i32 : i32, i32
  }
}

</mosaic_0001>

<bundles_post_ra>
// kernel: tpu_custom_call.1
= control target key start
LH: loop header
LB: loop body
LE: loop exit
PB: predicated region body
PF: predicated region fallthrough
CT: control target
= control target key end

     0   :  { %10 = vsyncpa [#allocation3], 0  ;;  %s6196_s0 = inlined_call_operand.hbm [shape: f32[2,1024], index: 0, kind: input, shape index: {}]   ;;  %s6197_s1 = inlined_call_operand.hbm [shape: f32[2,1536], index: 1, kind: input, shape index: {}]   ;;  %s6198_s2 = inlined_call_operand.hbm [shape: f32[256,256], index: 2, kind: input, shape index: {}]   ;;  %s6199_s3 = inlined_call_operand.hbm [shape: f32[256,256], index: 3, kind: input, shape index: {}]   ;;  %s6200_s4 = inlined_call_operand.vmem [shape: f32[173], index: 4, kind: input, shape index: {}]   ;;  %s6201_s5 = inlined_call_operand.hbm [shape: f32[2,2560], index: 5, kind: output, shape index: {}]  }
   0x1   :  { %11 = vsyncpa [#allocation7], 0 }
   0x2   :  { %12 = vsyncpa [#allocation10], 0 }
   0x3   :  { %13 = vsyncpa [#allocation5], 0 }
   0x4   :  { %14 = vsyncpa [#allocation4], 0  ;;  %s3365_s18 = smov [#allocation6]   ;;  %s3366_s20 = smov [#allocation2]  }
   0x5   :  { %s31_s19 = sshll.u32 %s3365_s18, 4  ;;  %s21_s21 = sshll.u32 %s3366_s20, 4  ;;  %s32_s19 = int_to_ptr.vmem [resolvable:$true] %s31_s19  ;;  %s22_s21 = int_to_ptr.vmem [resolvable:$true] %s21_s21 }
   0x6   :  { %s3251_s22 = scalar_lea.vmem %s32_s19, 384  ;;  %p3256_p1 = scmp.lt.s32.totalorder %s32_s19, %s32_s19 }
   0x7   :  { %p3252_p0 = scmp.ne.s32.totalorder %s32_s19, %s3251_s22  ;;  %p3257_p2 = scmp.lt.s32.totalorder %s3251_s22, %s3251_s22 }
   0x9   :  { %p3258_p3 = por %p3257_p2, %p3256_p1 }
   0xb   :  { %p3259_p4 = pnand %p3258_p3, %p3252_p0 }
   0xd   :  { %3262 = shalt.err (!%p3259_p4)
}
   0xe   :  { %34 = dma.hbm_to_vmem [thread:$0]  %s6197_s1, 384, %s32_s19, [#allocation7]  }
   0xf   :  { %s3271_s25 = scalar_lea.vmem %s22_s21, 256  ;;  %p3276_p6 = scmp.lt.s32.totalorder %s22_s21, %s22_s21 }
  0x10   :  { %p3272_p5 = scmp.ne.s32.totalorder %s22_s21, %s3271_s25  ;;  %p3277_p7 = scmp.lt.s32.totalorder %s3271_s25, %s3271_s25 }
  0x12   :  { %p3278_p8 = por %p3277_p7, %p3276_p6 }
  0x14   :  { %p3279_p9 = pnand %p3278_p8, %p3272_p5 }
  0x16   :  { %3282 = shalt.err (!%p3279_p9)
}
  0x17   :  { %24 = dma.hbm_to_vmem [thread:$0]  %s6196_s0, 256, %s22_s21, [#allocation3]  }
  0x18   :  { %s3367_s28 = smov [#allocation8]  }
  0x19   :  { %s40_s29 = sshll.u32 %s3367_s28, 4  ;;  %s41_s29 = int_to_ptr.vmem [resolvable:$true] %s40_s29 }
  0x1a   :  { %s3291_s30 = scalar_lea.vmem %s41_s29, 8192  ;;  %p3296_p11 = scmp.lt.s32.totalorder %s41_s29, %s41_s29 }
  0x1b   :  { %p3292_p10 = scmp.ne.s32.totalorder %s41_s29, %s3291_s30  ;;  %p3297_p12 = scmp.lt.s32.totalorder %s3291_s30, %s3291_s30 }
  0x1d   :  { %p3298_p13 = por %p3297_p12, %p3296_p11 }
  0x1f   :  { %p3299_p0 = pnand %p3298_p13, %p3292_p10 }
  0x21   :  { %3302 = shalt.err (!%p3299_p0)
}
  0x22   :  { %s3368_s1 = smov 256   ;;  %s3369_s6 = smov 16  }
  0x23   :  { %46 = dma.hbm_to_vmem [thread:$0]  %s6198_s2, 8192, %s41_s29, [#allocation7], %s3368_s1, %s3368_s1, %s3369_s6  }
  0x24   :  { %s3370_s9 = smov [#allocation9]   ;;  %s65_s12 = sshll.u32 %s6200_s4, 4  ;;  %s66_s12 = int_to_ptr.vmem [resolvable:$true] %s65_s12 }
  0x25   :  { %s52_s10 = sshll.u32 %s3370_s9, 4  ;;  %s53_s10 = int_to_ptr.vmem [resolvable:$true] %s52_s10 }
  0x26   :  { %s3311_s13 = scalar_lea.vmem %s53_s10, 8192  ;;  %p3316_p2 = scmp.lt.s32.totalorder %s53_s10, %s53_s10 }
  0x27   :  { %p3312_p1 = scmp.ne.s32.totalorder %s53_s10, %s3311_s13  ;;  %p3317_p3 = scmp.lt.s32.totalorder %s3311_s13, %s3311_s13 }
  0x29   :  { %p3318_p4 = por %p3317_p3, %p3316_p2 }
  0x2b   :  { %p3319_p5 = pnand %p3318_p4, %p3312_p1 }
  0x2d   :  { %3322 = shalt.err (!%p3319_p5)
}
  0x2e   :  { %58 = dma.hbm_to_vmem [thread:$0]  %s6199_s3, 8192, %s53_s10, [#allocation10], %s3368_s1, %s3368_s1, %s3369_s6  }
  0x2f   :  { %s3323_s2 = scalar_lea.vmem %s66_s12, 32  ;;  %p3328_p7 = scmp.lt.s32.totalorder %s66_s12, %s66_s12 }
  0x30   :  { %p3324_p6 = scmp.ne.s32.totalorder %s66_s12, %s3323_s2  ;;  %p3329_p8 = scmp.lt.s32.totalorder %s3323_s2, %s3323_s2 }
  0x32   :  { %p3330_p9 = por %p3329_p8, %p3328_p7 }
  0x34   :  { %p3331_p10 = pnand %p3330_p9, %p3324_p6 }
  0x36   :  { %3334 = shalt.err (!%p3331_p10)
}
  0x37   :  { %s3371_s4 = smov [#allocation11]  }
  0x38   :  { %68 = dma.vmem_to_smem %s66_s12, 32, %s3371_s4, [#allocation5]  }
  0x39   :  { %3355 = dma.done.wait [#allocation3], 256  }
  0x3a   :  { %3356 = vsyncadd [#allocation3], 4294967040 }
  0x3b   :  { %3357 = dma.done.wait [#allocation7], 8576  }
  0x3c   :  { %3358 = vsyncadd [#allocation7], 4294958720 }
  0x3d   :  { %3359 = dma.done.wait [#allocation10], 8192  }
  0x3e   :  { %3360 = vsyncadd [#allocation10], 4294959104 }
  0x3f   :  { %3361 = dma.done.wait [#allocation5], 32  }
  0x40   :  { %3362 = vsyncadd [#allocation5], 4294967264 }
  0x41   :  { %84 = sfence }
  0x42   :  { %v472_v0 = vld [vmem:[#allocation9 + $0xf8] sm:$0xff]  ;;  %v471_v1 = vld [vmem:[#allocation9 + $0xf0] sm:$0xff]  ;;  %v470_v2 = vld [vmem:[#allocation9 + $0xe8] sm:$0xff]  ;;  %s3985_s3 = sld [smem:[#allocation11 + $0x19]] }
  0x43   :  { %v3419_v3 = vand.u32 4294901760, %v472_v0  ;;  %v3421_v4 = vand.u32 4294901760, %v471_v1  ;;  %v3423_v5 = vand.u32 4294901760, %v470_v2  ;;  %v469_v6 = vld [vmem:[#allocation9 + $0xe0] sm:$0xff]  ;;  %v468_v7 = vld [vmem:[#allocation9 + $0xd8] sm:$0xff]  ;;  %v467_v8 = vld [vmem:[#allocation9 + $0xd0] sm:$0xff] }
  0x44   :  { %v3425_v9 = vand.u32 4294901760, %v469_v6  ;;  %v3427_v10 = vand.u32 4294901760, %v468_v7  ;;  %v3429_v11 = vand.u32 4294901760, %v467_v8  ;;  %v466_v12 = vld [vmem:[#allocation9 + $0xc8] sm:$0xff]  ;;  %v465_v13 = vld [vmem:[#allocation9 + $0xc0] sm:$0xff]  ;;  %v464_v14 = vld [vmem:[#allocation9 + $0xb8] sm:$0xff] }
  0x45   :  { %517 = vmatprep.subr.mxu0 %v3419_v3  ;;  %v3432_v15 = vand.u32 4294901760, %v466_v12  ;;  %v3434_v16 = vand.u32 4294901760, %v465_v13  ;;  %v3436_v17 = vand.u32 4294901760, %v464_v14  ;;  %v3439_v18 = vsub.f32 %v472_v0, %v3419_v3  ;;  %v3441_v19 = vld [vmem:[#allocation9 + $0xb0] sm:$0xff]  ;;  %v3443_v20 = vld [vmem:[#allocation9 + $0xa8] sm:$0xff]  ;;  %v3445_v21 = vld [vmem:[#allocation9 + $0xa0] sm:$0xff] }
  0x46   :  { %519 = vmatpush1.msra.mxu0 %v3421_v4  ;;  %v3449_v22 = vand.u32 4294901760, %v3441_v19  ;;  %v3452_v23 = vsub.f32 %v471_v1, %v3421_v4  ;;  %v3455_v24 = vand.u32 4294901760, %v3443_v20  ;;  %v3458_v25 = vsub.f32 %v470_v2, %v3423_v5  ;;  %v3460_v26 = vld [vmem:[#allocation9 + $0x98] sm:$0xff]  ;;  %v3462_v27 = vld [vmem:[#allocation9 + $0x90] sm:$0xff]  ;;  %v3464_v28 = vld [vmem:[#allocation9 + $0x88] sm:$0xff]  ;;  %s3996_s16 = sld [smem:[#allocation11 + $0x1a]] }
  0x47   :  { %6653 = vst [vmem:[#allocation18_spill] sm:$0xff] %v3439_v18  ;;  %521 = vmatprep.subr.mxu0 %v3423_v5  ;;  %v6215_v29 = vand.u32 4294901760, %v3439_v18  ;;  %v3469_v30 = vand.u32 4294901760, %v3445_v21  ;;  %v3472_v31 = vsub.f32 %v469_v6, %v3425_v9  ;;  %v3475_v32 = vand.u32 4294901760, %v3460_v26  ;;  %v3486_v37 = vld [vmem:[#allocation9 + $0x80] sm:$0xff]  ;;  %v3510_v46 = vld [vmem:[#allocation9 + $0x78] sm:$0xff] }
  0x48   :  { %523 = vmatpush1.msra.mxu0 %v3425_v9  ;;  %v6213_v33 = vand.u32 4294901760, %v3452_v23  ;;  %v6212_v34 = vand.u32 4294901760, %v3458_v25  ;;  %v3481_v35 = vsub.f32 %v468_v7, %v3427_v10  ;;  %v3484_v36 = vand.u32 4294901760, %v3462_v27  ;;  %v3520_v51 = vld [vmem:[#allocation9 + $0x70] sm:$0xff]  ;;  %v3527_v56 = vld [vmem:[#allocation9 + $0x68] sm:$0xff]  ;;  %v3539_v61 = vld [vmem:[#allocation9 + $0x60] sm:$0xff] }
  0x49   :  { %525 = vmatprep.subr.mxu0 %v3427_v10  ;;  %v664_v38 = vsub.f32 %v3439_v18, %v6215_v29  ;;  %v6210_v39 = vand.u32 4294901760, %v3472_v31  ;;  %v3494_v40 = vsub.f32 %v467_v8, %v3429_v11  ;;  %v3497_v41 = vand.u32 4294901760, %v3464_v28  ;;  %v3551_v2 = vld [vmem:[#allocation9 + $0x58] sm:$0xff]  ;;  %s4009_s17 = sld [smem:[#allocation11 + $0x1b]] }
  0x4a   :  { %6654 = vst [vmem:[#allocation19_spill] sm:$0xff] %v3484_v36  ;;  %527 = vmatpush1.msra.mxu0 %v3429_v11  ;;  %v670_v42 = vsub.f32 %v3452_v23, %v6213_v33  ;;  %v676_v43 = vsub.f32 %v3458_v25, %v6212_v34  ;;  %v6208_v44 = vand.u32 4294901760, %v3481_v35  ;;  %v3508_v45 = vsub.f32 %v466_v12, %v3432_v15  ;;  %v3652_v34 = vld [vmem:[#allocation9 + $0x20] sm:$0xff]  ;;  %s4022_s18 = sld [smem:[#allocation11 + $0x1c]] }
  0x4b   :  { %6655 = vst [vmem:[#allocation20_spill] sm:$0xff] %v3494_v40  ;;  %6656 = vst [vmem:[#allocation21_spill] sm:$0xff] %v3497_v41  ;;  %529 = vmatprep.subr.mxu0 %v3432_v15  ;;  %v665_v47 = vand.u32 4294901760, %v664_v38  ;;  %v682_v48 = vsub.f32 %v3472_v31, %v6210_v39  ;;  %v6207_v49 = vand.u32 4294901760, %v3494_v40  ;;  %v3518_v50 = vand.u32 4294901760, %v3486_v37  ;;  %v3642_v39 = vld [vmem:[#allocation9 + $0x28] sm:$0xff] }
  0x4c   :  { %6657 = vst [vmem:[#allocation22_spill] sm:$0xff] %v3508_v45  ;;  %531 = vmatpush1.msra.mxu0 %v3434_v16  ;;  %v671_v52 = vand.u32 4294901760, %v670_v42  ;;  %v677_v53 = vand.u32 4294901760, %v676_v43  ;;  %v688_v54 = vsub.f32 %v3481_v35, %v6208_v44  ;;  %v6205_v55 = vand.u32 4294901760, %v3508_v45  ;;  %s4038_s19 = sld [smem:[#allocation11 + $0x1d]] }
  0x4d   :  { %6658 = vst [vmem:[#allocation23_spill] sm:$0xff] %v3518_v50  ;;  %533 = vmatprep.subr.mxu0 %v3436_v17  ;;  %666 = vmatprep.subr.mxu1 %v665_v47  ;;  %v683_v57 = vand.u32 4294901760, %v682_v48  ;;  %v694_v58 = vsub.f32 %v3494_v40, %v6207_v49  ;;  %v3534_v59 = vsub.f32 %v465_v13, %v3434_v16  ;;  %v3537_v60 = vand.u32 4294901760, %v3510_v46  ;;  %v3562_v13 = vld [vmem:[#allocation9 + $0x50] sm:$0xff]  ;;  %s4051_s20 = sld [smem:[#allocation11 + $0x1e]] }
  0x4e   :  { %535 = vmatpush1.msra.mxu0 %v3449_v22  ;;  %672 = vmatpush1.msra.mxu1 %v671_v52  ;;  %v689_v62 = vand.u32 4294901760, %v688_v54  ;;  %v700_v63 = vsub.f32 %v3508_v45, %v6205_v55  ;;  %v3546_v0 = vsub.f32 %v464_v14, %v3436_v17  ;;  %v3549_v1 = vand.u32 4294901760, %v3520_v51  ;;  %v3629_v49 = vld [vmem:[#allocation9 + $0x30] sm:$0xff]  ;;  %s4062_s21 = sld [smem:[#allocation11 + $0x3d]] }
  0x4f   :  { %6659 = vst [vmem:[#allocation24_spill] sm:$0xff] %v3534_v59  ;;  %6660 = vst [vmem:[#allocation25_spill] sm:$0xff] %v3537_v60  ;;  %537 = vmatprep.subr.mxu0 %v3455_v24  ;;  %678 = vmatprep.subr.mxu1 %v677_v53  ;;  %v695_v6 = vand.u32 4294901760, %v694_v58  ;;  %v6203_v7 = vand.u32 4294901760, %v3534_v59  ;;  %v3557_v8 = vsub.f32 %v3441_v19, %v3449_v22  ;;  %v3560_v12 = vand.u32 4294901760, %v3527_v56  ;;  %s4078_s22 = sld [smem:[#allocation11 + $0x43]] }
  0x50   :  { %6661 = vst [vmem:[#allocation26_spill] sm:$0xff] %v3546_v0  ;;  %6662 = vst [vmem:[#allocation27_spill] sm:$0xff] %v3549_v1  ;;  %539 = vmatpush1.msra.mxu0 %v3469_v30  ;;  %684 = vmatpush1.msra.mxu1 %v683_v57  ;;  %v701_v14 = vand.u32 4294901760, %v700_v63  ;;  %v6202_v38 = vand.u32 4294901760, %v3546_v0  ;;  %v3568_v42 = vsub.f32 %v3443_v20, %v3455_v24  ;;  %v3571_v43 = vand.u32 4294901760, %v3539_v61  ;;  %v3585_v20 = vld [vmem:[#allocation9 + $0x48] sm:$0xff] }
  0x51   :  { %6663 = vst [vmem:[#allocation28_spill] sm:$0xff] %v3557_v8  ;;  %6664 = vst [vmem:[#allocation29_spill] sm:$0xff] %v3560_v12  ;;  %541 = vmatprep.subr.mxu0 %v3475_v32  ;;  %690 = vmatprep.subr.mxu1 %v689_v62  ;;  %v706_v19 = vsub.f32 %v3534_v59, %v6203_v7  ;;  %v6204_v47 = vand.u32 4294901760, %v3557_v8  ;;  %v3580_v48 = vsub.f32 %v3445_v21, %v3469_v30  ;;  %s4089_s23 = sld [smem:[#allocation11 + $0x1f]] }
  0x52   :  { %6665 = vst [vmem:[#allocation30_spill] sm:$0xff] %v3568_v42  ;;  %6666 = vst [vmem:[#allocation31_spill] sm:$0xff] %v3571_v43  ;;  %v3583_v52 = vand.u32 4294901760, %v3551_v2  ;;  %543 = vmatpush1.msra.mxu0 %v3484_v36  ;;  %696 = vmatpush1.msra.mxu1 %v695_v6  ;;  %v712_v53 = vsub.f32 %v3546_v0, %v6202_v38  ;;  %v6206_v54 = vand.u32 4294901760, %v3568_v42  ;;  %v3597_v21 = vand.u32 4294901760, %v3562_v13  ;;  %v3608_v38 = vld [vmem:[#allocation9 + $0x40] sm:$0xff] }
  0x53   :  { %6667 = vst [vmem:[#allocation32_spill] sm:$0xff] %v3580_v48  ;;  %v3594_v57 = vsub.f32 %v3460_v26, %v3475_v32  ;;  %545 = vmatprep.subr.mxu0 %v3497_v41  ;;  %702 = vmatprep.subr.mxu1 %v701_v14  ;;  %v707_v58 = vand.u32 4294901760, %v706_v19  ;;  %v718_v62 = vsub.f32 %v3557_v8, %v6204_v47  ;;  %v6209_v63 = vand.u32 4294901760, %v3580_v48  ;;  %v3618_v47 = vld [vmem:[#allocation9 + $0x38] sm:$0xff]  ;;  %s4102_s24 = sld [smem:[#allocation11 + $0x20]] }
  0x54   :  { %6668 = vst [vmem:[#allocation33_spill] sm:$0xff] %v3583_v52  ;;  %6670 = vst [vmem:[#allocation35_spill] sm:$0xff] %v3597_v21  ;;  %v3606_v6 = vsub.f32 %v3462_v27, %v3484_v36  ;;  %547 = vmatpush1.msra.mxu0 %v3518_v50  ;;  %v713_v26 = vand.u32 4294901760, %v712_v53  ;;  %v724_v14 = vsub.f32 %v3568_v42, %v6206_v54  ;;  %v3616_v7 = vand.u32 4294901760, %v3585_v20  ;;  %s4117_s25 = sld [smem:[#allocation11 + $0x21]] }
  0x55   :  { %6669 = vst [vmem:[#allocation34_spill] sm:$0xff] %v3594_v57  ;;  %v6211_v19 = vand.u32 4294901760, %v3594_v57  ;;  %708 = vmatpush1.msra.mxu1 %v707_v58  ;;  %549 = vmatprep.subr.mxu0 %v3537_v60  ;;  %v719_v27 = vand.u32 4294901760, %v718_v62  ;;  %v730_v55 = vsub.f32 %v3580_v48, %v6209_v63  ;;  %v3627_v54 = vsub.f32 %v3464_v28, %v3497_v41  ;;  %s4128_s26 = sld [smem:[#allocation11 + $0x22]] }
  0x56   :  { %6671 = vst [vmem:[#allocation36_spill] sm:$0xff] %v3606_v6  ;;  %6672 = vst [vmem:[#allocation37_spill] sm:$0xff] %v3616_v7  ;;  %v6214_v53 = vand.u32 4294901760, %v3606_v6  ;;  %714 = vmatprep.subr.mxu1 %v713_v26  ;;  %551 = vmatpush1.msra.mxu0 %v3549_v1  ;;  %v725_v44 = vand.u32 4294901760, %v724_v14  ;;  %v3636_v62 = vand.u32 4294901760, %v3608_v38  ;;  %v3640_v63 = vsub.f32 %v3486_v37, %v3518_v50  ;;  %s4141_s27 = sld [smem:[#allocation11 + $0x23]] }
  0x57   :  { %6673 = vst [vmem:[#allocation38_spill] sm:$0xff] %v3627_v54  ;;  %v736_v58 = vsub.f32 %v3594_v57, %v6211_v19  ;;  %720 = vmatpush1.msra.mxu1 %v719_v27  ;;  %553 = vmatprep.subr.mxu0 %v3560_v12  ;;  %v731_v28 = vand.u32 4294901760, %v730_v55  ;;  %v6218_v14 = vand.u32 4294901760, %v3627_v54  ;;  %v3650_v19 = vand.u32 4294901760, %v3618_v47  ;;  %s4154_s28 = sld [smem:[#allocation11 + $0x24]] }
  0x58   :  { %6674 = vst [vmem:[#allocation39_spill] sm:$0xff] %v3636_v62  ;;  %6675 = vst [vmem:[#allocation40_spill] sm:$0xff] %v3640_v63  ;;  %v742_v26 = vsub.f32 %v3606_v6, %v6214_v53  ;;  %726 = vmatprep.subr.mxu1 %v725_v44  ;;  %555 = vmatpush1.msra.mxu0 %v3571_v43  ;;  %v6221_v27 = vand.u32 4294901760, %v3640_v63  ;;  %v3658_v55 = vsub.f32 %v3510_v46, %v3537_v60  ;;  %v3663_v53 = vld [vmem:[#allocation9 + $0x18] sm:$0xff]  ;;  %s4170_s29 = sld [smem:[#allocation11 + $0x3e]] }
  0x59   :  { %6676 = vst [vmem:[#allocation41_spill] sm:$0xff] %v3650_v19  ;;  %v737_v37 = vand.u32 4294901760, %v736_v58  ;;  %v3661_v33 = vand.u32 4294901760, %v3629_v49  ;;  %732 = vmatpush1.msra.mxu1 %v731_v28  ;;  %557 = vmatprep.subr.mxu0 %v3583_v52  ;;  %v748_v44 = vsub.f32 %v3627_v54, %v6218_v14  ;;  %v3671_v58 = vsub.f32 %v3520_v51, %v3549_v1  ;;  %v3688_v51 = vld [vmem:[#allocation9 + $0x10] sm:$0xff]  ;;  %s4183_s30 = sld [smem:[#allocation11 + $0x44]] }
  0x5a   :  { %6677 = vst [vmem:[#allocation42_spill] sm:$0xff] %v3658_v55  ;;  %v743_v29 = vand.u32 4294901760, %v742_v26  ;;  %v3674_v46 = vand.u32 4294901760, %v3642_v39  ;;  %559 = vmatpush1.msra.mxu0 %v3597_v21  ;;  %v754_v28 = vsub.f32 %v3640_v63, %v6221_v27  ;;  %v3683_v6 = vsub.f32 %v3527_v56, %v3560_v12  ;;  %v3699_v56 = vld [vmem:[#allocation9 + $0x8] sm:$0xff]  ;;  %s4194_s1 = sld [smem:[#allocation11 + $0x25]] }
  0x5b   :  { %6678 = vst [vmem:[#allocation43_spill] sm:$0xff] %v3661_v33  ;;  %6679 = vst [vmem:[#allocation44_spill] sm:$0xff] %v3671_v58  ;;  %738 = vmatprep.subr.mxu1 %v737_v37  ;;  %v3686_v14 = vand.u32 4294901760, %v3652_v34  ;;  %561 = vmatprep.subr.mxu0 %v3616_v7  ;;  %v749_v37 = vand.u32 4294901760, %v748_v44  ;;  %v3694_v27 = vsub.f32 %v3539_v61, %v3571_v43  ;;  %v3697_v26 = vand.u32 4294901760, %v3663_v53  ;;  %v3722_v44 = vld [vmem:[#allocation9] sm:$0xff] }
  0x5c   :  { %6680 = vst [vmem:[#allocation45_spill] sm:$0xff] %v3674_v46  ;;  %6681 = vst [vmem:[#allocation46_spill] sm:$0xff] %v3683_v6  ;;  %744 = vmatpush1.msra.mxu1 %v743_v29  ;;  %563 = vmatpush1.msra.mxu0 %v3636_v62  ;;  %v755_v63 = vand.u32 4294901760, %v754_v28  ;;  %v6685_v57 = vand.u32 4294901760, %v3658_v55  ;;  %v3708_v54 = vsub.f32 %v3551_v2, %v3583_v52  ;;  %v6687_v61 = vand.u32 4294901760, %v3671_v58  ;;  %s4210_s6 = sld [smem:[#allocation11 + $0x26]] }
  0x5d   :  { %6682 = vst [vmem:[#allocation47_spill] sm:$0xff] %v3686_v14  ;;  %6683 = vst [vmem:[#allocation48_spill] sm:$0xff] %v3694_v27  ;;  %750 = vmatprep.subr.mxu1 %v749_v37  ;;  %565 = vmatprep.subr.mxu0 %v3650_v19  ;;  %v3716_v28 = vand.u32 4294901760, %v3688_v51  ;;  %v6690_v37 = vand.u32 4294901760, %v3683_v6  ;;  %v3730_v48 = vand.u32 4294901760, %v3699_v56  ;;  %v3750_v12 = vand.u32 4294901760, %v3722_v44 }
  0x5e   :  { %6684 = vst [vmem:[#allocation49_spill] sm:$0xff] %v3697_v26  ;;  %v760_v29 = vsub.f32 %v3658_v55, %v6685_v57  ;;  %6686 = vst [vmem:[#allocation50_spill] sm:$0xff] %v3708_v54  ;;  %v766_v43 = vsub.f32 %v3671_v58, %v6687_v61  ;;  %v3720_v57 = vsub.f32 %v3562_v13, %v3597_v21  ;;  %756 = vmatpush1.msra.mxu1 %v755_v63  ;;  %v3732_v58 = vld [vmem:[#allocation9 + $0x1f8] sm:$0xff]  ;;  %s4219_s7 = sld [smem:[#allocation11 + $0x27]] }
  0x5f   :  { %6688 = vst [vmem:[#allocation51_spill] sm:$0xff] %v3716_v28  ;;  %567 = vmatpush1.msra.mxu0 %v3661_v33  ;;  %v772_v55 = vsub.f32 %v3683_v6, %v6690_v37  ;;  %6691 = vst [vmem:[#allocation53_spill] sm:$0xff] %v3730_v48  ;;  %v6692_v13 = vand.u32 4294901760, %v3694_v27  ;;  %v3741_v21 = vsub.f32 %v3585_v20, %v3616_v7  ;;  %v3743_v37 = vld [vmem:[#allocation9 + $0x1f0] sm:$0xff]  ;;  %s4232_s8 = sld [smem:[#allocation11 + $0x28]]  ;;  %v247_v59 = vstv %s4183_s30 }
  0x60   :  { %6689 = vst [vmem:[#allocation52_spill] sm:$0xff] %v3720_v57  ;;  %v761_v2 = vand.u32 4294901760, %v760_v29  ;;  %v767_v52 = vand.u32 4294901760, %v766_v43  ;;  %569 = vmatprep.subr.mxu0 %v3674_v46  ;;  %v6694_v43 = vand.u32 4294901760, %v3708_v54  ;;  %6695 = vst [vmem:[#allocation55_spill] sm:$0xff] %v3750_v12  ;;  %v3756_v29 = vld [vmem:[#allocation9 + $0x1e8] sm:$0xff] }
  0x61   :  { %v778_v63 = vsub.f32 %v3694_v27, %v6692_v13  ;;  %6693 = vst [vmem:[#allocation54_spill] sm:$0xff] %v3741_v21  ;;  %v773_v61 = vand.u32 4294901760, %v772_v55  ;;  %571 = vmatpush1.msra.mxu0 %v3686_v14  ;;  %v3754_v13 = vsub.f32 %v3608_v38, %v3636_v62  ;;  %v6697_v55 = vand.u32 4294901760, %v3720_v57  ;;  %s4247_s9 = sld [smem:[#allocation11 + $0x29]] }
  0x62   :  { %762 = vmatprep.subr.mxu1 %v761_v2  ;;  %v784_v6 = vsub.f32 %v3708_v54, %v6694_v43  ;;  %573 = vmatprep.subr.mxu0 %v3697_v26  ;;  %v3764_v43 = vand.u32 4294901760, %v3732_v58  ;;  %v3766_v54 = vld [vmem:[#allocation9 + $0x1e0] sm:$0xff]  ;;  %v3775_v62 = vand.u32 4294901760, %v3743_v37  ;;  %s4256_s10 = sld [smem:[#allocation11 + $0x2a]]  ;;  %v254_v0 = vstv %s4210_s6 }
  0x63   :  { %6696 = vst [vmem:[#allocation56_spill] sm:$0xff] %v3754_v13  ;;  %768 = vmatpush1.msra.mxu1 %v767_v52  ;;  %v779_v20 = vand.u32 4294901760, %v778_v63  ;;  %v790_v2 = vsub.f32 %v3720_v57, %v6697_v55  ;;  %575 = vmatpush1.msra.mxu0 %v3716_v28  ;;  %v3772_v63 = vsub.f32 %v3618_v47, %v3650_v19  ;;  %v3777_v55 = vld [vmem:[#allocation9 + $0x1d8] sm:$0xff]  ;;  %v3788_v47 = vand.u32 4294901760, %v3756_v29  ;;  %s4264_s11 = sld [smem:[#allocation11 + $0x3f]] }
  0x64   :  { %6698 = vst [vmem:[#allocation57_spill] sm:$0xff] %v3764_v43  ;;  %774 = vmatprep.subr.mxu1 %v773_v61  ;;  %v785_v38 = vand.u32 4294901760, %v784_v6  ;;  %6700 = vst [vmem:[#allocation59_spill] sm:$0xff] %v3775_v62  ;;  %577 = vmatprep.subr.mxu0 %v3730_v48  ;;  %v6701_v61 = vand.u32 4294901760, %v3741_v21  ;;  %v3785_v52 = vsub.f32 %v3629_v49, %v3661_v33  ;;  %v6704_v57 = vand.u32 4294901760, %v3754_v13  ;;  %v3802_v49 = vld [vmem:[#allocation9 + $0x1d0] sm:$0xff] }
  0x65   :  { %6699 = vst [vmem:[#allocation58_spill] sm:$0xff] %v3772_v63  ;;  %780 = vmatpush1.msra.mxu1 %v779_v20  ;;  %v791_v27 = vand.u32 4294901760, %v790_v2  ;;  %6703 = vst [vmem:[#allocation61_spill] sm:$0xff] %v3788_v47  ;;  %579 = vmatpush1.msra.mxu0 %v3750_v12  ;;  %v3797_v19 = vsub.f32 %v3642_v39, %v3674_v46  ;;  %v3811_v2 = vand.u32 4294901760, %v3777_v55  ;;  %v3813_v39 = vld [vmem:[#allocation9 + $0x1c8] sm:$0xff]  ;;  %v6709_v46 = vand.u32 4294901760, %v3772_v63 }
  0x66   :  { %v796_v6 = vsub.f32 %v3741_v21, %v6701_v61  ;;  %6702 = vst [vmem:[#allocation60_spill] sm:$0xff] %v3785_v52  ;;  %786 = vmatprep.subr.mxu1 %v785_v38  ;;  %v802_v20 = vsub.f32 %v3754_v13, %v6704_v57  ;;  %v3800_v61 = vand.u32 4294901760, %v3766_v54  ;;  %581 = vmatprep.subr.mxu0 %v3764_v43  ;;  %v6264_v38 = vand.u32 4294901760, %v3785_v52  ;;  %s4271_s0 = sld [smem:[#allocation11 + $0x45]] }
  0x67   :  { %6705 = vst [vmem:[#allocation62_spill] sm:$0xff] %v3797_v19  ;;  %792 = vmatpush1.msra.mxu1 %v791_v27  ;;  %v3808_v57 = vsub.f32 %v3652_v34, %v3686_v14  ;;  %6708 = vst [vmem:[#allocation65_spill] sm:$0xff] %v3811_v2  ;;  %v808_v33 = vsub.f32 %v3772_v63, %v6709_v46  ;;  %583 = vmatpush2.msra.mxu0 %v3775_v62  ;;  %v3830_v14 = vand.u32 4294901760, %v3802_v49  ;;  %v3836_v27 = vld [vmem:[#allocation9 + $0x1c0] sm:$0xff]  ;;  %s4282_s12 = sld [smem:[#allocation11 + $0x2b]] }
  0x68   :  { %6706 = vst [vmem:[#allocation63_spill] sm:$0xff] %v3800_v61  ;;  %v797_v21 = vand.u32 4294901760, %v796_v6  ;;  %v803_v13 = vand.u32 4294901760, %v802_v20  ;;  %v3822_v6 = vsub.f32 %v3663_v53, %v3697_v26  ;;  %v814_v34 = vsub.f32 %v3785_v52, %v6264_v38  ;;  %585 = vmatprep.subr.mxu0 %v3788_v47  ;;  %v3846_v52 = vld [vmem:[#allocation9 + $0x1b8] sm:$0xff]  ;;  %s4285_s13 = sld [smem:[#allocation11 + $0x2c]] }
  0x69   :  { %6707 = vst [vmem:[#allocation64_spill] sm:$0xff] %v3808_v57  ;;  %6711 = vst [vmem:[#allocation67_spill] sm:$0xff] %v3830_v14  ;;  %v3834_v46 = vsub.f32 %v3688_v51, %v3716_v28  ;;  %v809_v53 = vand.u32 4294901760, %v808_v33  ;;  %587 = vmatpush2.msra.mxu0 %v3800_v61  ;;  %v3844_v20 = vand.u32 4294901760, %v3813_v39  ;;  %v6715_v51 = vand.u32 4294901760, %v3808_v57  ;;  %s4290_s14 = sld [smem:[#allocation11 + $0x2d]] }
  0x6a   :  { %6710 = vst [vmem:[#allocation66_spill] sm:$0xff] %v3822_v6  ;;  %798 = vmatprep.subr.mxu1 %v797_v21  ;;  %v6713_v21 = vand.u32 4294901760, %v3797_v19  ;;  %v815_v26 = vand.u32 4294901760, %v814_v34  ;;  %589 = vmatprep.subr.mxu0 %v3811_v2  ;;  %v3868_v33 = vsub.f32 %v3722_v44, %v3750_v12  ;;  %s4295_s15 = sld [smem:[#allocation11 + $0x2e]] }
  0x6b   :  { %6712 = vst [vmem:[#allocation68_spill] sm:$0xff] %v3834_v46  ;;  %804 = vmatpush1.msra.mxu1 %v803_v13  ;;  %6714 = vst [vmem:[#allocation69_spill] sm:$0xff] %v3844_v20  ;;  %v826_v28 = vsub.f32 %v3808_v57, %v6715_v51  ;;  %v3855_v13 = vsub.f32 %v3699_v56, %v3730_v48  ;;  %591 = vmatpush2.msra.mxu0 %v3830_v14  ;;  %v3864_v51 = vand.u32 4294901760, %v3836_v27  ;;  %v3870_v57 = vld [vmem:[#allocation9 + $0x1a8] sm:$0xff]  ;;  %v3880_v48 = vld [vmem:[#allocation9 + $0x1a0] sm:$0xff]  ;;  %s4301_s2 = sld [smem:[#allocation11 + $0x2f]] }
  0x6c   :  { %v820_v63 = vsub.f32 %v3797_v19, %v6713_v21  ;;  %v3857_v21 = vld [vmem:[#allocation9 + $0x1b0] sm:$0xff]  ;;  %810 = vmatprep.subr.mxu1 %v809_v53  ;;  %v6717_v19 = vand.u32 4294901760, %v3822_v6  ;;  %6719 = vst [vmem:[#allocation72_spill] sm:$0xff] %v3868_v33  ;;  %v6720_v53 = vand.u32 4294901760, %v3834_v46  ;;  %593 = vmatprep.subr.mxu0 %v3844_v20  ;;  %s4306_s4 = sld [smem:[#allocation11 + $0x30]] }
  0x6d   :  { %6716 = vst [vmem:[#allocation70_spill] sm:$0xff] %v3855_v13  ;;  %6718 = vst [vmem:[#allocation71_spill] sm:$0xff] %v3864_v51  ;;  %816 = vmatpush1.msra.mxu1 %v815_v26  ;;  %v827_v56 = vand.u32 4294901760, %v826_v28  ;;  %595 = vmatpush2.msra.mxu0 %v3864_v51  ;;  %v6287_v26 = vand.u32 4294901760, %v3868_v33  ;;  %v3886_v28 = vsub.f32 %v3732_v58, %v3764_v43  ;;  %v6724_v12 = vand.u32 4294901760, %v3855_v13  ;;  %s4380_s30 = sld [smem:[#allocation11 + $0x47]] }
  0x6e   :  { %v821_v38 = vand.u32 4294901760, %v820_v63  ;;  %v832_v34 = vsub.f32 %v3822_v6, %v6717_v19  ;;  %v838_v63 = vsub.f32 %v3834_v46, %v6720_v53  ;;  %v3878_v6 = vand.u32 4294901760, %v3846_v52  ;;  %v3891_v46 = vld [vmem:[#allocation9 + $0x198] sm:$0xff]  ;;  %s4388_s6 = sld [smem:[#allocation11 + $0x48]] }
  0x6f   :  { %6722 = vst [vmem:[#allocation74_spill] sm:$0xff] %v3886_v28  ;;  %v3889_v53 = vand.u32 4294901760, %v3857_v21  ;;  %v3902_v58 = vand.u32 4294901760, %v3870_v57  ;;  %v850_v43 = vsub.f32 %v3868_v33, %v6287_v26  ;;  %v3922_v26 = vsub.f32 %v3766_v54, %v3800_v61 }
  0x70   :  { %6721 = vst [vmem:[#allocation73_spill] sm:$0xff] %v3878_v6  ;;  %822 = vmatprep.subr.mxu1 %v821_v38  ;;  %v833_v44 = vand.u32 4294901760, %v832_v34  ;;  %v839_v19 = vand.u32 4294901760, %v838_v63  ;;  %v844_v38 = vsub.f32 %v3855_v13, %v6724_v12  ;;  %597 = vmatprep.subr.mxu0 %v3878_v6  ;;  %v3899_v34 = vsub.f32 %v3743_v37, %v3775_v62  ;;  %v3916_v37 = vld [vmem:[#allocation9 + $0x190] sm:$0xff] }
  0x71   :  { %6723 = vst [vmem:[#allocation75_spill] sm:$0xff] %v3889_v53  ;;  %828 = vmatpush1.msra.mxu1 %v827_v56  ;;  %6726 = vst [vmem:[#allocation77_spill] sm:$0xff] %v3902_v58  ;;  %599 = vmatpush2.msra.mxu0 %v3889_v53  ;;  %v3911_v12 = vsub.f32 %v3756_v29, %v3788_v47  ;;  %v3914_v63 = vand.u32 4294901760, %v3880_v48  ;;  %v3925_v56 = vand.u32 4294901760, %v3891_v46  ;;  %v3927_v29 = vld [vmem:[#allocation9 + $0x188] sm:$0xff]  ;;  %v851_v33 = vand.u32 4294901760, %v850_v43 }
  0x72   :  { %6725 = vst [vmem:[#allocation76_spill] sm:$0xff] %v3899_v34  ;;  %834 = vmatprep.subr.mxu1 %v833_v44  ;;  %v845_v13 = vand.u32 4294901760, %v844_v38  ;;  %v6298_v44 = vand.u32 4294901760, %v3899_v34  ;;  %601 = vmatprep.subr.mxu0 %v3902_v58  ;;  %6729 = vst [vmem:[#allocation80_spill] sm:$0xff] %v3922_v26  ;;  %v6731_v47 = vand.u32 4294901760, %v3886_v28  ;;  %v3936_v38 = vsub.f32 %v3777_v55, %v3811_v2 }
  0x73   :  { %6727 = vst [vmem:[#allocation78_spill] sm:$0xff] %v3911_v12  ;;  %6728 = vst [vmem:[#allocation79_spill] sm:$0xff] %v3914_v63  ;;  %840 = vmatpush1.msra.mxu1 %v839_v19  ;;  %603 = vmatpush2.msra.mxu0 %v3914_v63  ;;  %v3944_v43 = vand.u32 4294901760, %v3916_v37  ;;  %v3950_v19 = vld [vmem:[#allocation9 + $0x180] sm:$0xff]  ;;  %v3957_v61 = vand.u32 4294901760, %v3927_v29  ;;  %v6737_v7 = vand.u32 4294901760, %v3922_v26  ;;  %v340_v40 = vstv %s4380_s30 }
  0x74   :  { %6730 = vst [vmem:[#allocation81_spill] sm:$0xff] %v3925_v56  ;;  %v856_v62 = vsub.f32 %v3886_v28, %v6731_v47  ;;  %6732 = vst [vmem:[#allocation82_spill] sm:$0xff] %v3936_v38  ;;  %846 = vmatprep.subr.mxu1 %v845_v13  ;;  %v862_v54 = vsub.f32 %v3899_v34, %v6298_v44  ;;  %605 = vmatprep.subr.mxu0 %v3925_v56  ;;  %v6735_v13 = vand.u32 4294901760, %v3911_v12  ;;  %v3959_v34 = vld [vmem:[#allocation9 + $0x178] sm:$0xff]  ;;  %s3373_s30 = smov [#allocation12]  }
  0x75   :  { %6733 = vst [vmem:[#allocation83_spill] sm:$0xff] %v3944_v43  ;;  %v3948_v47 = vsub.f32 %v3802_v49, %v3830_v14  ;;  %852 = vmatpush1.msra.mxu1 %v851_v33  ;;  %6736 = vst [vmem:[#allocation85_spill] sm:$0xff] %v3957_v61  ;;  %v874_v49 = vsub.f32 %v3922_v26, %v6737_v7  ;;  %607 = vmatpush2.msra.mxu0 %v3944_v43  ;;  %v3977_v7 = vand.u32 4294901760, %v3950_v19  ;;  %v3983_v26 = vld [vmem:[#allocation9 + $0x168] sm:$0xff]  ;;  %v4279_v14 = vld [vmem:[#allocation6 + $0x10] sm:$0xf] }
  0x76   :  { %v857_v55 = vand.u32 4294901760, %v856_v62  ;;  %v868_v28 = vsub.f32 %v3911_v12, %v6735_v13  ;;  %v863_v2 = vand.u32 4294901760, %v862_v54  ;;  %v3968_v33 = vsub.f32 %v3813_v39, %v3844_v20  ;;  %v3970_v13 = vld [vmem:[#allocation9 + $0x170] sm:$0xff]  ;;  %609 = vmatprep.subr.mxu0 %v3957_v61  ;;  %v3994_v20 = vld [vmem:[#allocation9 + $0x160] sm:$0xff] }
  0x77   :  { %6734 = vst [vmem:[#allocation84_spill] sm:$0xff] %v3948_v47  ;;  %v6739_v12 = vand.u32 4294901760, %v3936_v38  ;;  %6740 = vst [vmem:[#allocation87_spill] sm:$0xff] %v3977_v7  ;;  %v3981_v62 = vsub.f32 %v3836_v27, %v3864_v51  ;;  %v875_v39 = vand.u32 4294901760, %v874_v49  ;;  %611 = vmatpush2.msra.mxu0 %v3977_v7  ;;  %v4002_v49 = vsub.f32 %v3846_v52, %v3878_v6 }
  0x78   :  { %6738 = vst [vmem:[#allocation86_spill] sm:$0xff] %v3968_v33  ;;  %858 = vmatprep.subr.mxu1 %v857_v55  ;;  %v869_v44 = vand.u32 4294901760, %v868_v28  ;;  %v6742_v28 = vand.u32 4294901760, %v3948_v47  ;;  %v4020_v52 = vand.u32 4294901760, %v3983_v26 }
  0x79   :  { %v880_v54 = vsub.f32 %v3936_v38, %v6739_v12  ;;  %6741 = vst [vmem:[#allocation88_spill] sm:$0xff] %v3981_v62  ;;  %864 = vmatpush2.msra.mxu1 %v863_v2  ;;  %v3992_v38 = vand.u32 4294901760, %v3959_v34  ;;  %6744 = vst [vmem:[#allocation90_spill] sm:$0xff] %v4002_v49  ;;  %v4007_v12 = vld [vmem:[#allocation9 + $0x158] sm:$0xff]  ;;  %v4017_v2 = vsub.f32 %v3857_v21, %v3889_v53  ;;  %v6749_v6 = vand.u32 4294901760, %v3981_v62 }
  0x7a   :  { %v886_v55 = vsub.f32 %v3948_v47, %v6742_v28  ;;  %870 = vmatprep.subr.mxu1 %v869_v44  ;;  %v4005_v28 = vand.u32 4294901760, %v3970_v13  ;;  %v6746_v44 = vand.u32 4294901760, %v3968_v33  ;;  %6748 = vst [vmem:[#allocation93_spill] sm:$0xff] %v4020_v52  ;;  %v4034_v21 = vand.u32 4294901760, %v3994_v20 }
  0x7b   :  { %6743 = vst [vmem:[#allocation89_spill] sm:$0xff] %v3992_v38  ;;  %v881_v27 = vand.u32 4294901760, %v880_v54  ;;  %876 = vmatpush2.msra.mxu1 %v875_v39  ;;  %613 = vmatprep.subr.mxu0 %v3992_v38  ;;  %6747 = vst [vmem:[#allocation92_spill] sm:$0xff] %v4017_v2  ;;  %v898_v39 = vsub.f32 %v3981_v62, %v6749_v6  ;;  %v6329_v53 = vand.u32 4294901760, %v4017_v2 }
  0x7c   :  { %6745 = vst [vmem:[#allocation91_spill] sm:$0xff] %v4005_v28  ;;  %v887_v47 = vand.u32 4294901760, %v886_v55  ;;  %v892_v54 = vsub.f32 %v3968_v33, %v6746_v44  ;;  %615 = vmatpush2.msra.mxu0 %v4005_v28  ;;  %v4031_v44 = vsub.f32 %v3870_v57, %v3902_v58  ;;  %6751 = vst [vmem:[#allocation95_spill] sm:$0xff] %v4034_v21  ;;  %v4036_v33 = vld [vmem:[#allocation9 + $0x150] sm:$0xff]  ;;  %v4047_v57 = vand.u32 4294901760, %v4007_v12  ;;  %v4049_v55 = vld [vmem:[#allocation9 + $0x148] sm:$0xff] }
  0x7d   :  { %882 = vmatprep.subr.mxu1 %v881_v27  ;;  %617 = vmatprep.subr.mxu0 %v4020_v52  ;;  %v4044_v6 = vsub.f32 %v3880_v48, %v3914_v63  ;;  %v899_v62 = vand.u32 4294901760, %v898_v39  ;;  %v6754_v58 = vand.u32 4294901760, %v4002_v49  ;;  %v4060_v48 = vsub.f32 %v3891_v46, %v3925_v56  ;;  %v4076_v46 = vld [vmem:[#allocation9 + $0x140] sm:$0xff]  ;;  %v4087_v56 = vld [vmem:[#allocation9 + $0x138] sm:$0xff] }
  0x7e   :  { %6750 = vst [vmem:[#allocation94_spill] sm:$0xff] %v4031_v44  ;;  %888 = vmatpush2.msra.mxu1 %v887_v47  ;;  %v893_v27 = vand.u32 4294901760, %v892_v54  ;;  %6753 = vst [vmem:[#allocation97_spill] sm:$0xff] %v4047_v57  ;;  %619 = vmatpush2.msra.mxu0 %v4034_v21  ;;  %v910_v63 = vsub.f32 %v4017_v2, %v6329_v53  ;;  %v4074_v54 = vsub.f32 %v3916_v37, %v3944_v43 }
  0x7f   :  { %6752 = vst [vmem:[#allocation96_spill] sm:$0xff] %v4044_v6  ;;  %v904_v47 = vsub.f32 %v4002_v49, %v6754_v58  ;;  %6755 = vst [vmem:[#allocation98_spill] sm:$0xff] %v4060_v48  ;;  %621 = vmatprep.subr.mxu0 %v4047_v57  ;;  %v4070_v58 = vand.u32 4294901760, %v4036_v33  ;;  %v6758_v49 = vand.u32 4294901760, %v4031_v44  ;;  %v4085_v2 = vand.u32 4294901760, %v4049_v55 }
  0x80   :  { %894 = vmatprep.subr.mxu1 %v893_v27  ;;  %6757 = vst [vmem:[#allocation100_spill] sm:$0xff] %v4074_v54  ;;  %v911_v37 = vand.u32 4294901760, %v910_v63  ;;  %v6760_v43 = vand.u32 4294901760, %v4044_v6  ;;  %v6762_v63 = vand.u32 4294901760, %v4060_v48 }
  0x81   :  { %6756 = vst [vmem:[#allocation99_spill] sm:$0xff] %v4070_v58  ;;  %900 = vmatpush2.msra.mxu1 %v899_v62  ;;  %v905_v27 = vand.u32 4294901760, %v904_v47  ;;  %v916_v53 = vsub.f32 %v4031_v44, %v6758_v49  ;;  %6759 = vst [vmem:[#allocation101_spill] sm:$0xff] %v4085_v2  ;;  %623 = vmatpush2.msra.mxu0 %v4070_v58  ;;  %v4098_v49 = vsub.f32 %v3927_v29, %v3957_v61  ;;  %v4100_v47 = vld [vmem:[#allocation9 + $0x130] sm:$0xff]  ;;  %v4115_v29 = vld [vmem:[#allocation9 + $0x128] sm:$0xff] }
  0x82   :  { %v922_v51 = vsub.f32 %v4044_v6, %v6760_v43  ;;  %v928_v44 = vsub.f32 %v4060_v48, %v6762_v63  ;;  %625 = vmatprep.subr.mxu0 %v4085_v2  ;;  %v4109_v43 = vand.u32 4294901760, %v4076_v46  ;;  %v4113_v62 = vsub.f32 %v3950_v19, %v3977_v7  ;;  %v4126_v61 = vld [vmem:[#allocation9 + $0x120] sm:$0xff]  ;;  %v4139_v63 = vld [vmem:[#allocation9 + $0x118] sm:$0xff] }
  0x83   :  { %6761 = vst [vmem:[#allocation102_spill] sm:$0xff] %v4098_v49  ;;  %906 = vmatprep.subr.mxu1 %v905_v27  ;;  %v917_v39 = vand.u32 4294901760, %v916_v53  ;;  %v6765_v53 = vand.u32 4294901760, %v4074_v54  ;;  %v4124_v48 = vand.u32 4294901760, %v4087_v56  ;;  %v194_v7 = vstv %s4009_s17  ;;  %s4321_s17 = sld [smem:[#allocation11 + $0x31]] }
  0x84   :  { %6763 = vst [vmem:[#allocation103_spill] sm:$0xff] %v4109_v43  ;;  %6764 = vst [vmem:[#allocation104_spill] sm:$0xff] %v4113_v62  ;;  %912 = vmatpush2.msra.mxu1 %v911_v37  ;;  %v923_v27 = vand.u32 4294901760, %v922_v51  ;;  %v929_v19 = vand.u32 4294901760, %v928_v44  ;;  %627 = vmatpush2.msra.mxu0 %v4109_v43  ;;  %v4134_v51 = vsub.f32 %v3959_v34, %v3992_v38  ;;  %v4152_v34 = vand.u32 4294901760, %v4115_v29 }
  0x85   :  { %v934_v6 = vsub.f32 %v4074_v54, %v6765_v53  ;;  %6766 = vst [vmem:[#allocation105_spill] sm:$0xff] %v4124_v48  ;;  %918 = vmatprep.subr.mxu1 %v917_v39  ;;  %v4137_v53 = vand.u32 4294901760, %v4100_v47  ;;  %v6768_v39 = vand.u32 4294901760, %v4098_v49  ;;  %629 = vmatprep.subr.mxu0 %v4124_v48  ;;  %v4149_v37 = vsub.f32 %v3970_v13, %v4005_v28 }
  0x86   :  { %6767 = vst [vmem:[#allocation106_spill] sm:$0xff] %v4134_v51  ;;  %924 = vmatpush2.msra.mxu1 %v923_v27  ;;  %v6770_v38 = vand.u32 4294901760, %v4113_v62  ;;  %v4166_v13 = vand.u32 4294901760, %v4126_v61  ;;  %v4181_v27 = vld [vmem:[#allocation9 + $0x108] sm:$0xff] }
  0x87   :  { %v935_v54 = vand.u32 4294901760, %v934_v6  ;;  %v940_v44 = vsub.f32 %v4098_v49, %v6768_v39  ;;  %6769 = vst [vmem:[#allocation107_spill] sm:$0xff] %v4149_v37  ;;  %930 = vmatprep.subr.mxu1 %v929_v19  ;;  %631 = vmatpush2.msra.mxu0 %v4137_v53  ;;  %v4163_v39 = vsub.f32 %v3983_v26, %v4020_v52  ;;  %v4168_v49 = vld [vmem:[#allocation9 + $0x110] sm:$0xff]  ;;  %v6362_v28 = vand.u32 4294901760, %v4149_v37 }
  0x88   :  { %v946_v6 = vsub.f32 %v4113_v62, %v6770_v38  ;;  %6772 = vst [vmem:[#allocation109_spill] sm:$0xff] %v4166_v13  ;;  %633 = vmatprep.subr.mxu0 %v4152_v34  ;;  %v4176_v38 = vsub.f32 %v3994_v20, %v4034_v21  ;;  %v4179_v26 = vand.u32 4294901760, %v4139_v63  ;;  %v6774_v52 = vand.u32 4294901760, %v4134_v51 }
  0x89   :  { %6771 = vst [vmem:[#allocation108_spill] sm:$0xff] %v4163_v39  ;;  %936 = vmatpush2.msra.mxu1 %v935_v54  ;;  %v941_v19 = vand.u32 4294901760, %v940_v44  ;;  %635 = vmatpush2.msra.mxu0 %v4166_v13  ;;  %v4192_v20 = vsub.f32 %v4007_v12, %v4047_v57  ;;  %v958_v21 = vsub.f32 %v4149_v37, %v6362_v28  ;;  %v4208_v12 = vld [vmem:[#allocation9 + $0x100] sm:$0xff]  ;;  %v4217_v37 = vand.u32 4294901760, %v4181_v27 }
  0x8a   :  { %6773 = vst [vmem:[#allocation110_spill] sm:$0xff] %v4176_v38  ;;  %v947_v62 = vand.u32 4294901760, %v946_v6  ;;  %v952_v54 = vsub.f32 %v4134_v51, %v6774_v52  ;;  %637 = vmatprep.subr.mxu0 %v4179_v26  ;;  %v4202_v52 = vand.u32 4294901760, %v4168_v49  ;;  %v4206_v44 = vsub.f32 %v4036_v33, %v4070_v58 }
  0x8b   :  { %6775 = vst [vmem:[#allocation111_spill] sm:$0xff] %v4192_v20  ;;  %942 = vmatprep.subr.mxu1 %v941_v19  ;;  %v6777_v51 = vand.u32 4294901760, %v4163_v39  ;;  %v959_v57 = vand.u32 4294901760, %v958_v21  ;;  %v6778_v33 = vand.u32 4294901760, %v4176_v38  ;;  %v6780_v21 = vand.u32 4294901760, %v4192_v20 }
  0x8c   :  { %6776 = vst [vmem:[#allocation112_spill] sm:$0xff] %v4206_v44  ;;  %948 = vmatpush2.msra.mxu1 %v947_v62  ;;  %v953_v19 = vand.u32 4294901760, %v952_v54  ;;  %639 = vmatpush2.msra.mxu0 %v4202_v52  ;;  %v4230_v54 = vld [vmem:[#allocation6] sm:$0xf]  ;;  %v4245_v62 = vld [vmem:[#allocation6 + $0x4] sm:$0xf] }
  0x8d   :  { %v964_v28 = vsub.f32 %v4163_v39, %v6777_v51  ;;  %v970_v58 = vsub.f32 %v4176_v38, %v6778_v33  ;;  %v4228_v51 = vsub.f32 %v4049_v55, %v4085_v2  ;;  %v976_v39 = vsub.f32 %v4192_v20, %v6780_v21  ;;  %641 = vmatprep.subr.mxu0 %v4217_v37  ;;  %v4254_v2 = vld [vmem:[#allocation6 + $0x8] sm:$0xf] }
  0x8e   :  { %954 = vmatprep.subr.mxu1 %v953_v19  ;;  %v4239_v33 = vand.u32 4294901760, %v4208_v12  ;;  %v4243_v55 = vsub.f32 %v4076_v46, %v4109_v43  ;;  %v6782_v19 = vand.u32 4294901760, %v4206_v44  ;;  %v185_v38 = vstv %s3985_s3  ;;  %s4311_s3 = sld [smem:[#allocation11 + $0x40]] }
  0x8f   :  { %6779 = vst [vmem:[#allocation113_spill] sm:$0xff] %v4228_v51  ;;  %v965_v6 = vand.u32 4294901760, %v964_v28  ;;  %960 = vmatpush2.msra.mxu1 %v959_v57  ;;  %v971_v28 = vand.u32 4294901760, %v970_v58  ;;  %v977_v46 = vand.u32 4294901760, %v976_v39  ;;  %v186_v58 = vmul.f32 %v185_v38, %v4230_v54 }
  0x90   :  { %6781 = vst [vmem:[#allocation114_spill] sm:$0xff] %v4243_v55  ;;  %v982_v21 = vsub.f32 %v4206_v44, %v6782_v19  ;;  %643 = vmatpush2.msra.mxu0 %v4239_v33  ;;  %v6388_v57 = vand.u32 4294901760, %v4243_v55  ;;  %v189_v43 = vstv %s3996_s16  ;;  %v4262_v19 = vld [vmem:[#allocation6 + $0xc] sm:$0xf]  ;;  %v6783_v44 = vand.u32 4294901760, %v4228_v51  ;;  %s4316_s16 = sld [smem:[#allocation11 + $0x46]] }
  0x91   :  { %966 = vmatprep.subr.mxu1 %v965_v6  ;;  %v190_v39 = vmul.f32 %v189_v43, %v4245_v62  ;;  %1056 = vmatprep.subr.mxu0 %v3439_v18 }
  0x92   :  { %972 = vmatpush2.msra.mxu1 %v971_v28  ;;  %v983_v20 = vand.u32 4294901760, %v982_v21  ;;  %v988_v6 = vsub.f32 %v4228_v51, %v6783_v44  ;;  %v994_v38 = vsub.f32 %v4243_v55, %v6388_v57  ;;  %v195_v28 = vmul.f32 %v194_v7, %v4254_v2  ;;  %v4287_v57 = vld [vmem:[#allocation6 + $0x14] sm:$0xf] }
  0x93   :  { %978 = vmatprep.subr.mxu1 %v977_v46  ;;  %v199_v21 = vstv %s4022_s18  ;;  %v204_v44 = vstv %s4038_s19  ;;  %v191_v51 = vadd.f32 %v190_v39, %v186_v58  ;;  %v209_v7 = vstv %s4051_s20  ;;  %s4326_s18 = sld [smem:[#allocation11 + $0x32]] }
  0x94   :  { %984 = vmatpush2.msra.mxu1 %v983_v20  ;;  %v989_v43 = vand.u32 4294901760, %v988_v6  ;;  %v200_v18 = vmul.f32 %v199_v21, %v4262_v19  ;;  %v995_v46 = vand.u32 4294901760, %v994_v38  ;;  %v205_v20 = vmul.f32 %v204_v44, %v4279_v14  ;;  %s4331_s19 = sld [smem:[#allocation11 + $0x33]] }
  0x95   :  { %v196_v42 = vadd.f32 %v195_v28, %v191_v51  ;;  %v220_v58 = vstv %s4089_s23  ;;  %v223_v6 = vstv %s4102_s24  ;;  %v227_v21 = vstv %s4117_s25  ;;  %s4335_s20 = sld [smem:[#allocation11 + $0x34]] }
  0x96   :  { %990 = vmatprep.subr.mxu1 %v989_v43  ;;  %v221_v39 = vmul.f32 %v220_v58, %v4230_v54  ;;  %v224_v38 = vmul.f32 %v223_v6, %v4245_v62  ;;  %v231_v55 = vstv %s4128_s26  ;;  %v210_v28 = vmul.f32 %v209_v7, %v4287_v57  ;;  %s4349_s23 = sld [smem:[#allocation11 + $0x37]] }
  0x97   :  { %996 = vmatpush2.msra.mxu1 %v995_v46  ;;  %v201_v51 = vadd.f32 %v200_v18, %v196_v42  ;;  %v228_v44 = vmul.f32 %v227_v21, %v4254_v2  ;;  %v235_v43 = vstv %s4141_s27  ;;  %v213_v46 = vstv %s4062_s21  ;;  %s4340_s21 = sld [smem:[#allocation11 + $0x35]] }
  0x98   :  { %v217_v58 = vstv %s4078_s22  ;;  %v225_v1 = vadd.f32 %v224_v38, %v221_v39  ;;  %v232_v6 = vmul.f32 %v231_v55, %v4262_v19  ;;  %v236_v18 = vmul.f32 %v235_v43, %v4279_v14  ;;  %s4344_s22 = sld [smem:[#allocation11 + $0x36]] }
  0x99   :  { %v206_v8 = vadd.f32 %v205_v20, %v201_v51  ;;  %v239_v42 = vstv %s4154_s28  ;;  %v251_v7 = vstv %s4194_s1  ;;  %v258_v39 = vstv %s4219_s7  ;;  %s4354_s24 = sld [smem:[#allocation11 + $0x38]] }
  0x9a   :  { %v229_v21 = vadd.f32 %v228_v44, %v225_v1  ;;  %v252_v60 = vmul.f32 %v251_v7, %v4230_v54  ;;  %v255_v38 = vmul.f32 %v254_v0, %v4245_v62  ;;  %v259_v20 = vmul.f32 %v258_v39, %v4254_v2  ;;  %s4358_s25 = sld [smem:[#allocation11 + $0x39]] }
  0x9b   :  { %v211_v55 = vadd.f32 %v210_v28, %v206_v8  ;;  %v262_v51 = vstv %s4232_s8  ;;  %v240_v1 = vmul.f32 %v239_v42, %v4287_v57  ;;  %v243_v44 = vstv %s4170_s29  ;;  %s4362_s26 = sld [smem:[#allocation11 + $0x3a]] }
  0x9c   :  { %v233_v43 = vadd.f32 %v232_v6, %v229_v21  ;;  %v266_v7 = vstv %s4247_s9  ;;  %v256_v8 = vadd.f32 %v255_v38, %v252_v60  ;;  %v263_v0 = vmul.f32 %v262_v51, %v4262_v19  ;;  %s4366_s27 = sld [smem:[#allocation11 + $0x3b]] }
  0x9d   :  { %v214_v50 = vadd.f32 %v213_v46, %v211_v55  ;;  %v267_v39 = vmul.f32 %v266_v7, %v4279_v14  ;;  %v270_v6 = vstv %s4256_s10  ;;  %v282_v21 = vstv %s4282_s12  ;;  %s4371_s28 = sld [smem:[#allocation11 + $0x3c]] }
  0x9e   :  { %v237_v28 = vadd.f32 %v236_v18, %v233_v43  ;;  %v260_v41 = vadd.f32 %v259_v20, %v256_v8  ;;  %v283_v46 = vmul.f32 %v282_v21, %v4230_v54  ;;  %v285_v55 = vstv %s4285_s13  ;;  %s4375_s29 = sld [smem:[#allocation11 + $0x41]] }
  0x9f   :  { %v215_v42 = vmax.f32 %v214_v50, 0.0  ;;  %v286_v38 = vmul.f32 %v285_v55, %v4245_v62  ;;  %v289_v18 = vstv %s4290_s14  ;;  %v293_v51 = vstv %s4295_s15  ;;  %s4384_s1 = sld [smem:[#allocation11 + $0x42]] }
  0xa0   :  { %v241_v60 = vadd.f32 %v240_v1, %v237_v28  ;;  %v264_v43 = vadd.f32 %v263_v0, %v260_v41  ;;  %v271_v7 = vmul.f32 %v270_v6, %v4287_v57  ;;  %v290_v50 = vmul.f32 %v289_v18, %v4254_v2  ;;  %s4431_s7 = sld [smem:[#allocation11 + $0x49]] }
  0xa1   :  { %v294_v20 = vmul.f32 %v293_v51, %v4262_v19  ;;  %v287_v21 = vadd.f32 %v286_v38, %v283_v46  ;;  %v297_v1 = vstv %s4301_s2  ;;  %v301_v28 = vstv %s4306_s4  ;;  %s4871_s8 = sld [smem:[#allocation11]] }
  0xa2   :  { %v244_v8 = vadd.f32 %v243_v44, %v241_v60  ;;  %v218_v55 = vmul.f32 %v217_v58, %v215_v42  ;;  %v268_v45 = vadd.f32 %v267_v39, %v264_v43  ;;  %v274_v41 = vstv %s4264_s11  ;;  %s4884_s9 = sld [smem:[#allocation11 + $0x1]] }
  0xa3   :  { %v298_v0 = vmul.f32 %v297_v1, %v4279_v14  ;;  %v291_v18 = vadd.f32 %v290_v50, %v287_v21  ;;  %v302_v44 = vmul.f32 %v301_v28, %v4287_v57  ;;  %v313_v46 = vstv %s4321_s17  ;;  %s4898_s10 = sld [smem:[#allocation11 + $0x4]] }
  0xa4   :  { %v245_v6 = vmax.f32 %v244_v8, 0.0  ;;  %v272_v60 = vadd.f32 %v271_v7, %v268_v45  ;;  %v314_v58 = vmul.f32 %v313_v46, %v4230_v54  ;;  %v316_v39 = vstv %s4326_s18  ;;  %s4915_s11 = sld [smem:[#allocation11 + $0x5]] }
  0xa5   :  { %v320_v42 = vstv %s4331_s19  ;;  %v295_v51 = vadd.f32 %v294_v20, %v291_v18  ;;  %v317_v43 = vmul.f32 %v316_v39, %v4245_v62  ;;  %v324_v21 = vstv %s4335_s20  ;;  %s4942_s12 = sld [smem:[#allocation11 + $0x3]] }
  0xa6   :  { %v248_v38 = vmul.f32 %v247_v59, %v245_v6  ;;  %v321_v50 = vmul.f32 %v320_v42, %v4254_v2  ;;  %v275_v8 = vadd.f32 %v274_v41, %v272_v60  ;;  %v328_v1 = vstv %s4340_s21  ;;  %s4955_s13 = sld [smem:[#allocation11 + $0x6]] }
  0xa7   :  { %v332_v45 = vstv %s4344_s22  ;;  %v278_v7 = vstv %s4271_s0  ;;  %v299_v28 = vadd.f32 %v298_v0, %v295_v51  ;;  %v318_v59 = vadd.f32 %v317_v43, %v314_v58  ;;  %s4932_s0 = sld [smem:[#allocation11 + $0x2]] }
  0xa8   :  { %v325_v20 = vmul.f32 %v324_v21, %v4262_v19  ;;  %v249_v6 = vadd.f32 %v248_v38, %v218_v55  ;;  %v276_v18 = vmax.f32 %v275_v8, 0.0  ;;  %v305_v46 = vstv %s4311_s3  ;;  %s4969_s14 = sld [smem:[#allocation11 + $0x8]] }
  0xa9   :  { %v329_v41 = vmul.f32 %v328_v1, %v4279_v14  ;;  %v303_v60 = vadd.f32 %v302_v44, %v299_v28  ;;  %v322_v39 = vadd.f32 %v321_v50, %v318_v59  ;;  %v333_v0 = vmul.f32 %v332_v45, %v4287_v57  ;;  %s4985_s15 = sld [smem:[#allocation11 + $0x9]] }
  0xaa   :  { %v344_v58 = vstv %s4349_s23  ;;  %v279_v42 = vmul.f32 %v278_v7, %v276_v18  ;;  %v347_v55 = vstv %s4354_s24  ;;  %v351_v38 = vstv %s4358_s25  ;;  %s5005_s2 = sld [smem:[#allocation11 + $0x7]] }
  0xab   :  { %v345_v51 = vmul.f32 %v344_v58, %v4230_v54  ;;  %v306_v43 = vadd.f32 %v305_v46, %v303_v60  ;;  %v326_v8 = vadd.f32 %v325_v20, %v322_v39  ;;  %v348_v21 = vmul.f32 %v347_v55, %v4245_v62  ;;  %s5024_s4 = sld [smem:[#allocation11 + $0xa]] }
  0xac   :  { %v352_v1 = vmul.f32 %v351_v38, %v4254_v2  ;;  %v309_v36 = vstv %s4316_s16  ;;  %v355_v44 = vstv %s4362_s26  ;;  %v359_v50 = vstv %s4366_s27  ;;  %s5033_s3 = sld [smem:[#allocation11 + $0xc]] }
  0xad   :  { %v363_v45 = vstv %s4371_s28  ;;  %v307_v28 = vmax.f32 %v306_v43, 0.0  ;;  %v330_v7 = vadd.f32 %v329_v41, %v326_v8  ;;  %v349_v59 = vadd.f32 %v348_v21, %v345_v51  ;;  %s5049_s16 = sld [smem:[#allocation11 + $0xd]] }
  0xae   :  { %v356_v54 = vmul.f32 %v355_v44, %v4262_v19  ;;  %v280_v18 = vadd.f32 %v279_v42, %v249_v6  ;;  %v336_v58 = vstv %s4375_s29  ;;  %v360_v20 = vmul.f32 %v359_v50, %v4279_v14  ;;  %s5087_s17 = sld [smem:[#allocation11 + $0xb]] }
  0xaf   :  { %v334_v46 = vadd.f32 %v333_v0, %v330_v7  ;;  %v353_v62 = vadd.f32 %v352_v1, %v349_v59  ;;  %v364_v2 = vmul.f32 %v363_v45, %v4287_v57  ;;  %v367_v60 = vstv %s4384_s1  ;;  %s5096_s18 = sld [smem:[#allocation11 + $0xe]]  ;;  %s3147_s1 = sshll.u32 %s3373_s30, 4  ;;  %s3148_s1 = int_to_ptr.vmem [resolvable:$true] %s3147_s1 }
  0xb0   :  { %v371_v39 = vstv %s4388_s6  ;;  %v4410_v55 = vsub.f32 %v4087_v56, %v4124_v48  ;;  %v4414_v41 = vsub.f32 %v4100_v47, %v4137_v53  ;;  %v310_v19 = vmul.f32 %v309_v36, %v307_v28  ;;  %s5118_s19 = sld [smem:[#allocation11 + $0x10]]  ;;  %s3335_s6 = scalar_lea.vmem %s3148_s1, 640 }
  0xb1   :  { %v337_v6 = vadd.f32 %v336_v58, %v334_v46  ;;  %v357_v42 = vadd.f32 %v356_v54, %v353_v62  ;;  %v6784_v51 = vlaneseq  ;;  %v4421_v57 = vsub.f32 %v4115_v29, %v4152_v34  ;;  %s5127_s20 = sld [smem:[#allocation11 + $0x11]]  ;;  %p3336_p11 = scmp.ne.s32.totalorder %s3148_s1, %s3335_s6 }
  0xb2   :  { %v6420_v14 = vand.u32 4294901760, %v4410_v55  ;;  %v6419_v0 = vand.u32 4294901760, %v4414_v41  ;;  %v4425_v56 = vsub.f32 %v4126_v61, %v4166_v13  ;;  %v3372_v8 = vmov 1983009808   ;;  %s5143_s21 = sld [smem:[#allocation11 + $0xf]]  ;;  %p3340_p12 = scmp.lt.s32.totalorder %s3148_s1, %s3148_s1 }
  0xb3   :  { %v510_v38 = vshrl.u32 %v6784_v51, 7  ;;  %v338_v43 = vmax.f32 %v337_v6, 0.0  ;;  %v361_v47 = vadd.f32 %v360_v20, %v357_v42  ;;  %v507_v36 = vunpack.c.l.s4 %v3372_v8  ;;  %s5179_s22 = sld [smem:[#allocation11 + $0x12]]  ;;  %p3341_p13 = scmp.lt.s32.totalorder %s3335_s6, %s3335_s6 }
  0xb4   :  { %v4429_v21 = vsub.f32 %v4139_v63, %v4179_v26  ;;  %v1000_v1 = vsub.f32 %v4410_v55, %v6420_v14  ;;  %v1006_v29 = vsub.f32 %v4414_v41, %v6419_v0  ;;  %v6418_v61 = vand.u32 4294901760, %v4421_v57  ;;  %v6811_v0 = vld [vmem:[#allocation41_spill] sm:$0xff]  ;;  %v6812_v14 = vld [vmem:[#allocation44_spill] sm:$0xff]  ;;  %s5200_s23 = sld [smem:[#allocation11 + $0x14]] }
  0xb5   :  { %v6417_v44 = vand.u32 4294901760, %v4425_v56  ;;  %v311_v50 = vadd.f32 %v310_v19, %v280_v18  ;;  %v341_v45 = vmul.f32 %v340_v40, %v338_v43  ;;  %v365_v28 = vadd.f32 %v364_v2, %v361_v47  ;;  %s5207_s24 = sld [smem:[#allocation11 + $0x15]]  ;;  %p3342_p0 = por %p3341_p13, %p3340_p12 }
  0xb6   :  { %v6416_v63 = vand.u32 4294901760, %v4429_v21  ;;  %v1001_v7 = vand.u32 4294901760, %v1000_v1  ;;  %v1007_v59 = vand.u32 4294901760, %v1006_v29  ;;  %v1012_v54 = vsub.f32 %v4421_v57, %v6418_v61  ;;  %v6810_v61 = vld [vmem:[#allocation42_spill] sm:$0xff]  ;;  %s5227_s25 = sld [smem:[#allocation11 + $0x13]] }
  0xb7   :  { %v1018_v58 = vsub.f32 %v4425_v56, %v6417_v44  ;;  %v368_v20 = vadd.f32 %v367_v60, %v365_v28  ;;  %v508_v46 = vunpack.c.0.s8 %v507_v36  ;;  %v4453_v40 = vsub.f32 %v4168_v49, %v4202_v52  ;;  %v6809_v44 = vld [vmem:[#allocation39_spill] sm:$0xff]  ;;  %s5269_s26 = sld [smem:[#allocation11 + $0x16]]  ;;  %p3343_p1 = pnand %p3342_p0, %p3336_p11 }
  0xb8   :  { %v1024_v18 = vsub.f32 %v4429_v21, %v6416_v63  ;;  %1002 = vmatprep.subr.mxu1 %v1001_v7  ;;  %v1013_v62 = vand.u32 4294901760, %v1012_v54  ;;  %v4457_v19 = vsub.f32 %v4181_v27, %v4217_v37  ;;  %v4461_v60 = vsub.f32 %v4208_v12, %v4239_v33  ;;  %v6808_v63 = vld [vmem:[#allocation40_spill] sm:$0xff]  ;;  %s5313_s27 = sld [smem:[#allocation11 + $0x17]] }
  0xb9   :  { %v1019_v2 = vand.u32 4294901760, %v1018_v58  ;;  %v342_v6 = vadd.f32 %v341_v45, %v311_v50  ;;  %v369_v42 = vmax.f32 %v368_v20, 0.0  ;;  %1008 = vmatpush2.msra.mxu1 %v1007_v59  ;;  %v6415_v43 = vand.u32 4294901760, %v4453_v40  ;;  %s5405_s28 = sld [smem:[#allocation11 + $0x18]] }
  0xba   :  { %v1025_v51 = vand.u32 4294901760, %v1024_v18  ;;  %1014 = vmatprep.subr.mxu1 %v1013_v62  ;;  %v6414_v49 = vand.u32 4294901760, %v4457_v19  ;;  %v6413_v47 = vand.u32 4294901760, %v4461_v60  ;;  %v375_v36 = vstv %s4431_s7  ;;  %s3232_s29 = sld [smem:[#allocation11 + $0xac]] }
  0xbb   :  { %v372_v8 = vmul.f32 %v371_v39, %v369_v42  ;;  %1020 = vmatpush2.msra.mxu1 %v1019_v2  ;;  %v1030_v27 = vsub.f32 %v4453_v40, %v6415_v43  ;;  %v4476_v50 = vsub.s32 %v508_v46, %v510_v38  ;;  %v6807_v43 = vld [vmem:[#allocation37_spill] sm:$0xff] }
  0xbc   :  { %1026 = vmatprep.subr.mxu1 %v1025_v51  ;;  %v1036_v12 = vsub.f32 %v4457_v19, %v6414_v49  ;;  %v1042_v1 = vsub.f32 %v4461_v60, %v6413_v47  ;;  %v6805_v47 = vld [vmem:[#allocation35_spill] sm:$0xff]  ;;  %v6806_v49 = vld [vmem:[#allocation38_spill] sm:$0xff] }
  0xbd   :  { %v373_v29 = vadd.f32 %v372_v8, %v342_v6  ;;  %6785 = vst [vmem:[#allocation115_spill] sm:$0xff] %v4476_v50  ;;  %v1031_v45 = vand.u32 4294901760, %v1030_v27  ;;  %v6788_v8 = vld [vmem:[#allocation20_spill] sm:$0xff]  ;;  %v6789_v27 = vld [vmem:[#allocation19_spill] sm:$0xff] }
  0xbe   :  { %v1037_v39 = vand.u32 4294901760, %v1036_v12  ;;  %v1043_v28 = vand.u32 4294901760, %v1042_v1  ;;  %v6791_v12 = vld [vmem:[#allocation21_spill] sm:$0xff]  ;;  %v6792_v1 = vld [vmem:[#allocation24_spill] sm:$0xff] }
  0xbf   :  { %v376_v7 = vadd.f32 %v375_v36, %v373_v29  ;;  %1032 = vmatpush2.msra.mxu1 %v1031_v45  ;;  %v6790_v36 = vld [vmem:[#allocation22_spill] sm:$0xff]  ;;  %v6793_v29 = vld [vmem:[#allocation23_spill] sm:$0xff] }
  0xc0   :  { %1038 = vmatprep.subr.mxu1 %v1037_v39  ;;  %v6794_v45 = vld [vmem:[#allocation26_spill] sm:$0xff]  ;;  %v6795_v39 = vld [vmem:[#allocation25_spill] sm:$0xff] }
  0xc1   :  { %v512_v59 = vrot.slane %v376_v7, %v4476_v50  ;;  %1044 = vmatpush2.msra.mxu1 %v1043_v28  ;;  %v6796_v28 = vld [vmem:[#allocation28_spill] sm:$0xff]  ;;  %v6797_v7 = vld [vmem:[#allocation27_spill] sm:$0xff]  ;;  %v6814_v50 = vld [vmem:[#allocation46_spill] sm:$0xff] }
  0xc2   :  { %1258 = vmatprep.subr.mxu1 %v3419_v3 }
  0xc3   :  { %v513_v54 = vcombine.high %v512_v59, %v512_v59  ;;  %v4480_v58 = vand.u32 4294901760, %v512_v59 }
  0xc5   :  { %6786 = vst [vmem:[#allocation116_spill] sm:$0xff] %v4480_v58  ;;  %v4482_v20 = vand.u32 4294901760, %v513_v54  ;;  %v4485_v18 = vsub.f32 %v512_v59, %v4480_v58  ;;  %v6798_v59 = vld [vmem:[#allocation30_spill] sm:$0xff] }
  0xc7   :  { %6787 = vst [vmem:[#allocation117_spill] sm:$0xff] %v4482_v20  ;;  %v4488_v38 = vsub.f32 %v513_v54, %v4482_v20  ;;  %v6421_v46 = vand.u32 4294901760, %v4485_v18  ;;  %1046 = vmatprep.mubr.f32.mxu1 %v4482_v20  ;;  %v6799_v54 = vld [vmem:[#allocation29_spill] sm:$0xff]  ;;  %v6816_v20 = vld [vmem:[#allocation48_spill] sm:$0xff] }
  0xc8   :  { %1048 = vmatmul.mubr.f32.vlgmr.msra.gmra.mxu1 %v4480_v58  ;;  %v6815_v58 = vld [vmem:[#allocation45_spill] sm:$0xff] }
  0xc9   :  { %v646_v62 = vand.u32 4294901760, %v4488_v38  ;;  %v653_v2 = vsub.f32 %v4485_v18, %v6421_v46  ;;  %1260 = vmatpush1.msra.mxu1 %v3421_v4  ;;  %v6813_v46 = vld [vmem:[#allocation43_spill] sm:$0xff] }
  0xca   :  { %1262 = vmatprep.subr.mxu1 %v3423_v5 }
  0xcb   :  { %v647_v6 = vsub.f32 %v4488_v38, %v646_v62  ;;  %1264 = vmatpush1.msra.mxu1 %v3425_v9  ;;  %1388 = vmatprep.mubr.f32.mxu1 %v646_v62  ;;  %v654_v42 = vand.u32 4294901760, %v653_v2  ;;  %v6800_v62 = vld [vmem:[#allocation32_spill] sm:$0xff]  ;;  %v6801_v2 = vld [vmem:[#allocation31_spill] sm:$0xff] }
  0xcc   :  { %1266 = vmatprep.subr.mxu1 %v3427_v10 }
  0xcd   :  { %v648_v51 = vand.u32 4294901760, %v647_v6  ;;  %1268 = vmatpush1.msra.mxu1 %v3429_v11  ;;  %v6802_v6 = vld [vmem:[#allocation34_spill] sm:$0xff] }
  0xce   :  { %1270 = vmatprep.subr.mxu1 %v3432_v15 }
  0xcf   :  { %649 = vmatprep.mubr.f32.mxu0 %v648_v51  ;;  %1272 = vmatpush1.msra.mxu1 %v3434_v16  ;;  %v6804_v51 = vld [vmem:[#allocation36_spill] sm:$0xff] }
  0xd0   :  { %655 = vmatmul.mubr.f32.vlgmr.msra.gmra.mxu0 %v654_v42  ;;  %1274 = vmatprep.subr.mxu1 %v3436_v17  ;;  %v6803_v42 = vld [vmem:[#allocation33_spill] sm:$0xff] }
  0xd1   :  { %1059 = vmatpush1.msra.mxu0 %v3452_v23  ;;  %1276 = vmatpush1.msra.mxu1 %v3449_v22 }
  0xd2   :  { %1062 = vmatprep.subr.mxu0 %v3458_v25  ;;  %1278 = vmatprep.subr.mxu1 %v3455_v24 }
  0xd3   :  { %1065 = vmatpush1.msra.mxu0 %v3472_v31  ;;  %1280 = vmatpush1.msra.mxu1 %v3469_v30 }
  0xd4   :  { %1068 = vmatprep.subr.mxu0 %v3481_v35  ;;  %1282 = vmatprep.subr.mxu1 %v3475_v32 }
  0xd5   :  { %1071 = vmatpush1.msra.mxu0 %v6788_v8  ;;  %1284 = vmatpush1.msra.mxu1 %v6789_v27 }
  0xd6   :  { %1074 = vmatprep.subr.mxu0 %v6790_v36  ;;  %1286 = vmatprep.subr.mxu1 %v6791_v12 }
  0xd7   :  { %1077 = vmatpush1.msra.mxu0 %v6792_v1  ;;  %1288 = vmatpush1.msra.mxu1 %v6793_v29 }
  0xd8   :  { %1080 = vmatprep.subr.mxu0 %v6794_v45  ;;  %1290 = vmatprep.subr.mxu1 %v6795_v39 }
  0xd9   :  { %1083 = vmatpush1.msra.mxu0 %v6796_v28  ;;  %1292 = vmatpush1.msra.mxu1 %v6797_v7 }
  0xda   :  { %1086 = vmatprep.subr.mxu0 %v6798_v59  ;;  %1294 = vmatprep.subr.mxu1 %v6799_v54 }
  0xdb   :  { %1089 = vmatpush1.msra.mxu0 %v6800_v62  ;;  %1296 = vmatpush1.msra.mxu1 %v6801_v2 }
  0xdc   :  { %1092 = vmatprep.subr.mxu0 %v6802_v6  ;;  %1298 = vmatprep.subr.mxu1 %v6803_v42  ;;  %v6819_v42 = vld [vmem:[#allocation49_spill] sm:$0xff] }
  0xdd   :  { %1095 = vmatpush1.msra.mxu0 %v6804_v51  ;;  %1300 = vmatpush1.msra.mxu1 %v6805_v47  ;;  %v6817_v47 = vld [vmem:[#allocation47_spill] sm:$0xff] }
  0xde   :  { %1098 = vmatprep.subr.mxu0 %v6806_v49  ;;  %1302 = vmatprep.subr.mxu1 %v6807_v43  ;;  %v6818_v43 = vld [vmem:[#allocation50_spill] sm:$0xff] }
  0xdf   :  { %1101 = vmatpush1.msra.mxu0 %v6808_v63  ;;  %1304 = vmatpush1.msra.mxu1 %v6809_v44  ;;  %v6820_v44 = vld [vmem:[#allocation52_spill] sm:$0xff] }
  0xe0   :  { %1104 = vmatprep.subr.mxu0 %v6810_v61  ;;  %1306 = vmatprep.subr.mxu1 %v6811_v0  ;;  %v6821_v61 = vld [vmem:[#allocation51_spill] sm:$0xff]  ;;  %v6822_v0 = vld [vmem:[#allocation54_spill] sm:$0xff] }
  0xe1   :  { %1107 = vmatpush1.msra.mxu0 %v6812_v14  ;;  %1308 = vmatpush1.msra.mxu1 %v6813_v46  ;;  %v6823_v14 = vld [vmem:[#allocation53_spill] sm:$0xff]  ;;  %v6824_v46 = vld [vmem:[#allocation56_spill] sm:$0xff] }
  0xe2   :  { %1110 = vmatprep.subr.mxu0 %v6814_v50  ;;  %1310 = vmatprep.subr.mxu1 %v6815_v58  ;;  %v6825_v50 = vld [vmem:[#allocation55_spill] sm:$0xff]  ;;  %v6826_v58 = vld [vmem:[#allocation58_spill] sm:$0xff] }
  0xe3   :  { %1113 = vmatpush1.msra.mxu0 %v6816_v20  ;;  %1312 = vmatpush1.msra.mxu1 %v6817_v47  ;;  %v6827_v20 = vld [vmem:[#allocation57_spill] sm:$0xff]  ;;  %v6828_v47 = vld [vmem:[#allocation60_spill] sm:$0xff] }
  0xe4   :  { %1116 = vmatprep.subr.mxu0 %v6818_v43  ;;  %1314 = vmatprep.subr.mxu1 %v6819_v42  ;;  %v6829_v43 = vld [vmem:[#allocation59_spill] sm:$0xff]  ;;  %v6830_v42 = vld [vmem:[#allocation62_spill] sm:$0xff] }
  0xe5   :  { %1119 = vmatpush1.msra.mxu0 %v6820_v44  ;;  %1316 = vmatpush1.msra.mxu1 %v6821_v61  ;;  %v6831_v44 = vld [vmem:[#allocation61_spill] sm:$0xff]  ;;  %v6832_v61 = vld [vmem:[#allocation64_spill] sm:$0xff] }
  0xe6   :  { %1122 = vmatprep.subr.mxu0 %v6822_v0  ;;  %1318 = vmatprep.subr.mxu1 %v6823_v14  ;;  %v6833_v0 = vld [vmem:[#allocation63_spill] sm:$0xff]  ;;  %v6834_v14 = vld [vmem:[#allocation66_spill] sm:$0xff] }
  0xe7   :  { %1125 = vmatpush1.msra.mxu0 %v6824_v46  ;;  %1320 = vmatpush1.msra.mxu1 %v6825_v50  ;;  %v6835_v46 = vld [vmem:[#allocation65_spill] sm:$0xff]  ;;  %v6836_v50 = vld [vmem:[#allocation68_spill] sm:$0xff] }
  0xe8   :  { %1128 = vmatprep.subr.mxu0 %v6826_v58  ;;  %1322 = vmatprep.subr.mxu1 %v6827_v20  ;;  %v6837_v58 = vld [vmem:[#allocation67_spill] sm:$0xff]  ;;  %v6838_v20 = vld [vmem:[#allocation70_spill] sm:$0xff] }
  0xe9   :  { %1131 = vmatpush1.msra.mxu0 %v6828_v47  ;;  %1324 = vmatpush2.msra.mxu1 %v6829_v43  ;;  %v6839_v47 = vld [vmem:[#allocation69_spill] sm:$0xff]  ;;  %v6840_v43 = vld [vmem:[#allocation72_spill] sm:$0xff] }
  0xea   :  { %1134 = vmatprep.subr.mxu0 %v6830_v42  ;;  %1326 = vmatprep.subr.mxu1 %v6831_v44  ;;  %v6841_v42 = vld [vmem:[#allocation71_spill] sm:$0xff]  ;;  %v6842_v44 = vld [vmem:[#allocation74_spill] sm:$0xff] }
  0xeb   :  { %1137 = vmatpush1.msra.mxu0 %v6832_v61  ;;  %1328 = vmatpush2.msra.mxu1 %v6833_v0  ;;  %v6843_v61 = vld [vmem:[#allocation73_spill] sm:$0xff]  ;;  %v6844_v0 = vld [vmem:[#allocation76_spill] sm:$0xff] }
  0xec   :  { %1140 = vmatprep.subr.mxu0 %v6834_v14  ;;  %1330 = vmatprep.subr.mxu1 %v6835_v46  ;;  %v6845_v14 = vld [vmem:[#allocation75_spill] sm:$0xff]  ;;  %v6846_v46 = vld [vmem:[#allocation78_spill] sm:$0xff] }
  0xed   :  { %1143 = vmatpush1.msra.mxu0 %v6836_v50  ;;  %1332 = vmatpush2.msra.mxu1 %v6837_v58  ;;  %v6847_v50 = vld [vmem:[#allocation77_spill] sm:$0xff]  ;;  %v6848_v58 = vld [vmem:[#allocation80_spill] sm:$0xff] }
  0xee   :  { %1146 = vmatprep.subr.mxu0 %v6838_v20  ;;  %1334 = vmatprep.subr.mxu1 %v6839_v47  ;;  %v6849_v20 = vld [vmem:[#allocation79_spill] sm:$0xff]  ;;  %v6850_v47 = vld [vmem:[#allocation82_spill] sm:$0xff] }
  0xef   :  { %1149 = vmatpush1.msra.mxu0 %v6840_v43  ;;  %1336 = vmatpush2.msra.mxu1 %v6841_v42  ;;  %v6851_v43 = vld [vmem:[#allocation81_spill] sm:$0xff]  ;;  %v6852_v42 = vld [vmem:[#allocation84_spill] sm:$0xff] }
  0xf0   :  { %1152 = vmatprep.subr.mxu0 %v6842_v44  ;;  %1338 = vmatprep.subr.mxu1 %v6843_v61  ;;  %v6853_v44 = vld [vmem:[#allocation83_spill] sm:$0xff]  ;;  %v6854_v61 = vld [vmem:[#allocation86_spill] sm:$0xff] }
  0xf1   :  { %1155 = vmatpush2.msra.mxu0 %v6844_v0  ;;  %1340 = vmatpush2.msra.mxu1 %v6845_v14  ;;  %v6855_v0 = vld [vmem:[#allocation85_spill] sm:$0xff]  ;;  %v6856_v14 = vld [vmem:[#allocation88_spill] sm:$0xff] }
  0xf2   :  { %1158 = vmatprep.subr.mxu0 %v6846_v46  ;;  %1342 = vmatprep.subr.mxu1 %v6847_v50  ;;  %v6857_v46 = vld [vmem:[#allocation87_spill] sm:$0xff]  ;;  %v6858_v50 = vld [vmem:[#allocation90_spill] sm:$0xff] }
  0xf3   :  { %1161 = vmatpush2.msra.mxu0 %v6848_v58  ;;  %1344 = vmatpush2.msra.mxu1 %v6849_v20  ;;  %v6859_v58 = vld [vmem:[#allocation89_spill] sm:$0xff]  ;;  %v6860_v20 = vld [vmem:[#allocation92_spill] sm:$0xff] }
  0xf4   :  { %1164 = vmatprep.subr.mxu0 %v6850_v47  ;;  %1346 = vmatprep.subr.mxu1 %v6851_v43  ;;  %v6861_v47 = vld [vmem:[#allocation91_spill] sm:$0xff]  ;;  %v6862_v43 = vld [vmem:[#allocation94_spill] sm:$0xff] }
  0xf5   :  { %1167 = vmatpush2.msra.mxu0 %v6852_v42  ;;  %1348 = vmatpush2.msra.mxu1 %v6853_v44  ;;  %v6863_v42 = vld [vmem:[#allocation93_spill] sm:$0xff]  ;;  %v6864_v44 = vld [vmem:[#allocation96_spill] sm:$0xff] }
  0xf6   :  { %1170 = vmatprep.subr.mxu0 %v6854_v61  ;;  %1350 = vmatprep.subr.mxu1 %v6855_v0  ;;  %v6865_v61 = vld [vmem:[#allocation95_spill] sm:$0xff]  ;;  %v6866_v0 = vld [vmem:[#allocation98_spill] sm:$0xff] }
  0xf7   :  { %1173 = vmatpush2.msra.mxu0 %v6856_v14  ;;  %1352 = vmatpush2.msra.mxu1 %v6857_v46  ;;  %v6867_v14 = vld [vmem:[#allocation97_spill] sm:$0xff]  ;;  %v6868_v46 = vld [vmem:[#allocation100_spill] sm:$0xff] }
  0xf8   :  { %1176 = vmatprep.subr.mxu0 %v6858_v50  ;;  %1354 = vmatprep.subr.mxu1 %v6859_v58  ;;  %v6869_v50 = vld [vmem:[#allocation99_spill] sm:$0xff]  ;;  %v6870_v58 = vld [vmem:[#allocation102_spill] sm:$0xff] }
  0xf9   :  { %1179 = vmatpush2.msra.mxu0 %v6860_v20  ;;  %1356 = vmatpush2.msra.mxu1 %v6861_v47  ;;  %v6871_v20 = vld [vmem:[#allocation101_spill] sm:$0xff]  ;;  %v6872_v47 = vld [vmem:[#allocation104_spill] sm:$0xff] }
  0xfa   :  { %1182 = vmatprep.subr.mxu0 %v6862_v43  ;;  %1358 = vmatprep.subr.mxu1 %v6863_v42  ;;  %v6873_v42 = vld [vmem:[#allocation106_spill] sm:$0xff] }
  0xfb   :  { %1185 = vmatpush2.msra.mxu0 %v6864_v44  ;;  %1360 = vmatpush2.msra.mxu1 %v6865_v61  ;;  %v6874_v44 = vld [vmem:[#allocation103_spill] sm:$0xff] }
  0xfc   :  { %1188 = vmatprep.subr.mxu0 %v6866_v0  ;;  %1362 = vmatprep.subr.mxu1 %v6867_v14  ;;  %v6875_v61 = vld [vmem:[#allocation107_spill] sm:$0xff]  ;;  %v6876_v14 = vld [vmem:[#allocation108_spill] sm:$0xff] }
  0xfd   :  { %1191 = vmatpush2.msra.mxu0 %v6868_v46  ;;  %1364 = vmatpush2.msra.mxu1 %v6869_v50  ;;  %v6877_v50 = vld [vmem:[#allocation110_spill] sm:$0xff] }
  0xfe   :  { %1194 = vmatprep.subr.mxu0 %v6870_v58  ;;  %1366 = vmatprep.subr.mxu1 %v6871_v20  ;;  %v6878_v20 = vld [vmem:[#allocation111_spill] sm:$0xff] }
  0xff   :  { %1197 = vmatpush2.msra.mxu0 %v6872_v47  ;;  %1248 = vmatprep.mubr.f32.mxu0 %v4488_v38  ;;  %v6879_v38 = vld [vmem:[#allocation112_spill] sm:$0xff] }
 0x100   :  { %1200 = vmatprep.subr.mxu0 %v6873_v42  ;;  %1368 = vmatpush2.msra.mxu1 %v6874_v44  ;;  %v6880_v44 = vld [vmem:[#allocation113_spill] sm:$0xff] }
 0x101   :  { %1203 = vmatpush2.msra.mxu0 %v6875_v61  ;;  %1370 = vmatprep.subr.mxu1 %v4124_v48  ;;  %v6881_v48 = vld [vmem:[#allocation114_spill] sm:$0xff] }
 0x102   :  { %1206 = vmatprep.subr.mxu0 %v6876_v14  ;;  %1372 = vmatpush2.msra.mxu1 %v4137_v53 }
 0x103   :  { %1209 = vmatpush2.msra.mxu0 %v6877_v50  ;;  %1374 = vmatprep.subr.mxu1 %v4152_v34 }
 0x104   :  { %1212 = vmatprep.subr.mxu0 %v6878_v20  ;;  %1376 = vmatpush2.msra.mxu1 %v4166_v13  ;;  %v6882_v13 = vand.u32 4294901760, %v4485_v18 }
 0x105   :  { %1215 = vmatpush2.msra.mxu0 %v6879_v38  ;;  %1378 = vmatprep.subr.mxu1 %v4179_v26 }
 0x106   :  { %1218 = vmatprep.subr.mxu0 %v6880_v44  ;;  %1380 = vmatpush2.msra.mxu1 %v4202_v52 }
 0x107   :  { %1221 = vmatpush2.msra.mxu0 %v6881_v48  ;;  %1382 = vmatprep.subr.mxu1 %v4217_v37 }
 0x108   :  { %1224 = vmatprep.subr.mxu0 %v4410_v55  ;;  %1384 = vmatpush2.msra.mxu1 %v4239_v33 }
 0x109   :  { %1227 = vmatpush2.msra.mxu0 %v4414_v41  ;;  %1392 = vmatmul.mubr.f32.vlgmr.msra.gmra.mxu1 %v6882_v13  ;;  %v6885_v13 = vand.u32 4294901760, %v3452_v23  ;;  %v6894_v23 = vand.u32 4294901760, %v6798_v59  ;;  %v399_v59 = vld [vmem:[#allocation8 + $0xb0] sm:$0xff] }
 0x10a   :  { %1230 = vmatprep.subr.mxu0 %v4421_v57  ;;  %1664 = vmatprep.subr.mxu1 %v3419_v3  ;;  %v6883_v3 = vld [vmem:[#allocation18_spill] sm:$0xff] }
 0x10b   :  { %1233 = vmatpush2.msra.mxu0 %v4425_v56  ;;  %1666 = vmatpush1.msra.mxu1 %v3421_v4  ;;  %v6884_v4 = vand.u32 4294901760, %v6883_v3  ;;  %v400_v3 = vld [vmem:[#allocation8 + $0xb8] sm:$0xff] }
 0x10c   :  { %1236 = vmatprep.subr.mxu0 %v4429_v21  ;;  %1668 = vmatprep.subr.mxu1 %v3423_v5  ;;  %v6886_v5 = vand.u32 4294901760, %v3458_v25  ;;  %v407_v25 = vld [vmem:[#allocation8 + $0xf0] sm:$0xff] }
 0x10d   :  { %1239 = vmatpush2.msra.mxu0 %v4453_v40  ;;  %1670 = vmatpush1.msra.mxu1 %v3425_v9  ;;  %v6887_v9 = vand.u32 4294901760, %v3472_v31  ;;  %v6896_v31 = vand.u32 4294901760, %v6802_v6  ;;  %v6906_v6 = vld [vmem:[#allocation35_spill] sm:$0xff] }
 0x10e   :  { %1242 = vmatprep.subr.mxu0 %v4457_v19  ;;  %1672 = vmatprep.subr.mxu1 %v3427_v10  ;;  %v6888_v10 = vand.u32 4294901760, %v3481_v35  ;;  %v6897_v35 = vand.u32 4294901760, %v6804_v51 }
 0x10f   :  { %1245 = vmatpush2.msra.mxu0 %v4461_v60  ;;  %1674 = vmatpush1.msra.mxu1 %v3429_v11  ;;  %v6889_v11 = vand.u32 4294901760, %v6788_v8  ;;  %v4677_v8 = vand.u32 4294901760, %v407_v25 }
 0x110   :  { %1251 = vmatmul.mubr.f32.vlgmr.msra.gmra.mxu0 %v4485_v18  ;;  %1401 = vmatprep.subr.mxu0 %v6884_v4 }
 0x111   :  { %1405 = vmatpush1.msra.mxu0 %v6885_v13  ;;  %1676 = vmatprep.subr.mxu1 %v3432_v15  ;;  %v6890_v15 = vand.u32 4294901760, %v6790_v36  ;;  %6899 = vst [vmem:[#allocation19_spill] sm:$0xff] %v4677_v8  ;;  %v404_v36 = vld [vmem:[#allocation8 + $0xd8] sm:$0xff]  ;;  %v6912_v13 = vld [vmem:[#allocation37_spill] sm:$0xff] }
 0x112   :  { %1409 = vmatprep.subr.mxu0 %v6886_v5  ;;  %1678 = vmatpush1.msra.mxu1 %v3434_v16  ;;  %v6891_v16 = vand.u32 4294901760, %v6792_v1  ;;  %v6900_v1 = vand.u32 4294901760, %v6806_v49  ;;  %v4692_v49 = vand.u32 4294901760, %v404_v36  ;;  %v4700_v5 = vsub.f32 %v407_v25, %v4677_v8  ;;  %v7057_v8 = vld [vmem:[#allocation89_spill] sm:$0xff] }
 0x113   :  { %1413 = vmatpush1.msra.mxu0 %v6887_v9  ;;  %1680 = vmatprep.subr.mxu1 %v3436_v17  ;;  %v6892_v17 = vand.u32 4294901760, %v6794_v45  ;;  %v6901_v45 = vand.u32 4294901760, %v6808_v63  ;;  %v6910_v63 = vld [vmem:[#allocation44_spill] sm:$0xff]  ;;  %v4717_v25 = vand.u32 4294901760, %v400_v3 }
 0x114   :  { %1417 = vmatprep.subr.mxu0 %v6888_v10  ;;  %1682 = vmatpush1.msra.mxu1 %v3449_v22  ;;  %v6893_v22 = vand.u32 4294901760, %v6796_v28  ;;  %6908 = vst [vmem:[#allocation24_spill] sm:$0xff] %v4692_v49  ;;  %v6911_v4 = vand.u32 4294901760, %v6910_v63  ;;  %6913 = vst [vmem:[#allocation26_spill] sm:$0xff] %v4700_v5  ;;  %v4732_v63 = vsub.f32 %v404_v36, %v4692_v49 }
 0x115   :  { %1421 = vmatpush1.msra.mxu0 %v6889_v11  ;;  %1684 = vmatprep.subr.mxu1 %v3455_v24  ;;  %v408_v24 = vld [vmem:[#allocation8 + $0xf8] sm:$0xff]  ;;  %v6916_v11 = vld [vmem:[#allocation46_spill] sm:$0xff]  ;;  %6924 = vst [vmem:[#allocation29_spill] sm:$0xff] %v4717_v25 }
 0x116   :  { %1425 = vmatprep.subr.mxu0 %v6890_v15  ;;  %1686 = vmatpush1.msra.mxu1 %v3469_v30  ;;  %v6895_v30 = vand.u32 4294901760, %v6800_v62  ;;  %v4675_v18 = vand.u32 4294901760, %v408_v24  ;;  %v6917_v15 = vand.u32 4294901760, %v6916_v11  ;;  %6931 = vst [vmem:[#allocation36_spill] sm:$0xff] %v4732_v63 }
 0x117   :  { %1429 = vmatpush1.msra.mxu0 %v6891_v16  ;;  %1688 = vmatprep.subr.mxu1 %v3475_v32  ;;  %v406_v32 = vld [vmem:[#allocation8 + $0xe8] sm:$0xff]  ;;  %v6918_v16 = vld [vmem:[#allocation39_spill] sm:$0xff] }
 0x118   :  { %1433 = vmatprep.subr.mxu0 %v6892_v17  ;;  %1690 = vmatpush1.msra.mxu1 %v6789_v27  ;;  %6898 = vst [vmem:[#allocation20_spill] sm:$0xff] %v4675_v18  ;;  %v405_v27 = vld [vmem:[#allocation8 + $0xe0] sm:$0xff]  ;;  %v4685_v28 = vand.u32 4294901760, %v406_v32  ;;  %v4705_v10 = vsub.f32 %v408_v24, %v4675_v18 }
 0x119   :  { %1437 = vmatpush1.msra.mxu0 %v6893_v22  ;;  %1692 = vmatprep.subr.mxu1 %v6791_v12  ;;  %v403_v12 = vld [vmem:[#allocation8 + $0xd0] sm:$0xff]  ;;  %v4690_v51 = vand.u32 4294901760, %v405_v27  ;;  %v4712_v22 = vand.u32 4294901760, %v399_v59 }
 0x11a   :  { %1441 = vmatprep.subr.mxu0 %v6894_v23  ;;  %1694 = vmatpush1.msra.mxu1 %v6793_v29  ;;  %v401_v29 = vld [vmem:[#allocation8 + $0xc0] sm:$0xff]  ;;  %6903 = vst [vmem:[#allocation22_spill] sm:$0xff] %v4685_v28  ;;  %6915 = vst [vmem:[#allocation28_spill] sm:$0xff] %v4705_v10  ;;  %v6921_v23 = vld [vmem:[#allocation48_spill] sm:$0xff]  ;;  %v4720_v24 = vsub.f32 %v406_v32, %v4685_v28  ;;  %v91_v28 = vstv %s4884_s9 }
 0x11b   :  { %1445 = vmatpush1.msra.mxu0 %v6895_v30  ;;  %1696 = vmatprep.subr.mxu1 %v6795_v39  ;;  %v6902_v39 = vld [vmem:[#allocation33_spill] sm:$0xff]  ;;  %6907 = vst [vmem:[#allocation21_spill] sm:$0xff] %v4690_v51  ;;  %v4702_v9 = vand.u32 4294901760, %v401_v29  ;;  %6920 = vst [vmem:[#allocation30_spill] sm:$0xff] %v4712_v22  ;;  %v6922_v30 = vand.u32 4294901760, %v6921_v23  ;;  %v6936_v23 = vld [vmem:[#allocation54_spill] sm:$0xff]  ;;  %v4746_v36 = vsub.f32 %v399_v59, %v4712_v22 }
 0x11c   :  { %1449 = vmatprep.subr.mxu0 %v6896_v31  ;;  %1698 = vmatpush1.msra.mxu1 %v6797_v7  ;;  %v402_v7 = vld [vmem:[#allocation8 + $0xc8] sm:$0xff]  ;;  %v6923_v31 = vld [vmem:[#allocation41_spill] sm:$0xff]  ;;  %6925 = vst [vmem:[#allocation32_spill] sm:$0xff] %v4720_v24 }
 0x11d   :  { %1453 = vmatpush1.msra.mxu0 %v6897_v35  ;;  %1700 = vmatprep.subr.mxu1 %v6799_v54  ;;  %v6904_v54 = vld [vmem:[#allocation42_spill] sm:$0xff]  ;;  %6914 = vst [vmem:[#allocation25_spill] sm:$0xff] %v4702_v9  ;;  %v4710_v17 = vand.u32 4294901760, %v402_v7  ;;  %v6934_v32 = vld [vmem:[#allocation45_spill] sm:$0xff]  ;;  %6939 = vst [vmem:[#allocation40_spill] sm:$0xff] %v4746_v36 }
 0x11e   :  { %1457 = vmatprep.subr.mxu0 %v6900_v1  ;;  %1702 = vmatpush1.msra.mxu1 %v6801_v2  ;;  %v6905_v62 = vand.u32 4294901760, %v6904_v54  ;;  %v4694_v2 = vand.u32 4294901760, %v403_v12  ;;  %v398_v35 = vld [vmem:[#allocation8 + $0xa8] sm:$0xff]  ;;  %v397_v1 = vld [vmem:[#allocation8 + $0xa0] sm:$0xff]  ;;  %v6928_v54 = vld [vmem:[#allocation43_spill] sm:$0xff] }
 0x11f   :  { %1461 = vmatpush1.msra.mxu0 %v6901_v45  ;;  %1704 = vmatprep.subr.mxu1 %v6902_v39  ;;  %6919 = vst [vmem:[#allocation27_spill] sm:$0xff] %v4710_v17  ;;  %v6926_v45 = vld [vmem:[#allocation50_spill] sm:$0xff] }
 0x120   :  { %1465 = vmatprep.subr.mxu0 %v6905_v62  ;;  %1706 = vmatpush1.msra.mxu1 %v6906_v6  ;;  %6909 = vst [vmem:[#allocation23_spill] sm:$0xff] %v4694_v2  ;;  %v6927_v39 = vand.u32 4294901760, %v6926_v45  ;;  %v4726_v62 = vsub.f32 %v405_v27, %v4690_v51  ;;  %v4729_v6 = vsub.f32 %v403_v12, %v4694_v2  ;;  %v6938_v12 = vld [vmem:[#allocation47_spill] sm:$0xff]  ;;  %v4750_v45 = vand.u32 4294901760, %v397_v1  ;;  %v6948_v59 = vld [vmem:[#allocation58_spill] sm:$0xff]  ;;  %v396_v27 = vld [vmem:[#allocation8 + $0x98] sm:$0xff] }
 0x121   :  { %1469 = vmatpush1.msra.mxu0 %v6911_v4  ;;  %1708 = vmatprep.subr.mxu1 %v6912_v13  ;;  %v395_v4 = vld [vmem:[#allocation8 + $0x90] sm:$0xff]  ;;  %v6932_v13 = vld [vmem:[#allocation52_spill] sm:$0xff]  ;;  %v87_v51 = vstv %s4871_s8 }
 0x122   :  { %1473 = vmatprep.subr.mxu0 %v6917_v15  ;;  %1710 = vmatpush1.msra.mxu1 %v6918_v16  ;;  %6929 = vst [vmem:[#allocation31_spill] sm:$0xff] %v4726_v62  ;;  %6930 = vst [vmem:[#allocation34_spill] sm:$0xff] %v4729_v6  ;;  %v6933_v11 = vand.u32 4294901760, %v6932_v13  ;;  %v4738_v15 = vsub.f32 %v401_v29, %v4702_v9  ;;  %v6943_v29 = vld [vmem:[#allocation56_spill] sm:$0xff]  ;;  %v6945_v13 = vld [vmem:[#allocation49_spill] sm:$0xff] }
 0x123   :  { %1477 = vmatpush1.msra.mxu0 %v6922_v30  ;;  %1712 = vmatprep.subr.mxu1 %v6923_v31  ;;  %v6937_v30 = vand.u32 4294901760, %v6936_v23  ;;  %v4748_v31 = vand.u32 4294901760, %v398_v35  ;;  %6941 = vst [vmem:[#allocation98_spill] sm:$0xff] %v4750_v45  ;;  %v4762_v23 = vsub.f32 %v400_v3, %v4717_v25  ;;  %v6954_v3 = vand.u32 4294901760, %v4705_v10 }
 0x124   :  { %1481 = vmatprep.subr.mxu0 %v6927_v39  ;;  %1714 = vmatpush1.msra.mxu1 %v6928_v54  ;;  %6935 = vst [vmem:[#allocation38_spill] sm:$0xff] %v4738_v15  ;;  %v4753_v39 = vsub.f32 %v402_v7, %v4710_v17  ;;  %v6944_v54 = vand.u32 4294901760, %v6943_v29  ;;  %v6956_v7 = vld [vmem:[#allocation62_spill] sm:$0xff]  ;;  %v6963_v29 = vld [vmem:[#allocation57_spill] sm:$0xff] }
 0x125   :  { %1485 = vmatpush1.msra.mxu0 %v6933_v11  ;;  %1716 = vmatprep.subr.mxu1 %v6934_v32  ;;  %6940 = vst [vmem:[#allocation94_spill] sm:$0xff] %v4748_v31  ;;  %v4759_v32 = vand.u32 4294901760, %v395_v4  ;;  %6947 = vst [vmem:[#allocation104_spill] sm:$0xff] %v4762_v23  ;;  %v6953_v11 = vld [vmem:[#allocation53_spill] sm:$0xff]  ;;  %v4776_v22 = vsub.f32 %v4705_v10, %v6954_v3  ;;  %v4793_v25 = vsub.f32 %v398_v35, %v4748_v31  ;;  %v6986_v31 = vld [vmem:[#allocation63_spill] sm:$0xff] }
 0x126   :  { %1489 = vmatprep.subr.mxu0 %v6937_v30  ;;  %1718 = vmatpush1.msra.mxu1 %v6938_v12  ;;  %6942 = vst [vmem:[#allocation100_spill] sm:$0xff] %v4753_v39  ;;  %v6949_v30 = vand.u32 4294901760, %v6948_v59  ;;  %v6950_v12 = vld [vmem:[#allocation51_spill] sm:$0xff]  ;;  %v6955_v59 = vand.u32 4294901760, %v4700_v5  ;;  %v393_v3 = vld [vmem:[#allocation8 + $0x80] sm:$0xff] }
 0x127   :  { %1493 = vmatpush1.msra.mxu0 %v6944_v54  ;;  %1720 = vmatprep.subr.mxu1 %v6945_v13  ;;  %6946 = vst [vmem:[#allocation102_spill] sm:$0xff] %v4759_v32  ;;  %v6951_v13 = vld [vmem:[#allocation60_spill] sm:$0xff]  ;;  %v6957_v54 = vand.u32 4294901760, %v6956_v7  ;;  %6960 = vst [vmem:[#allocation107_spill] sm:$0xff] %v4793_v25  ;;  %v6964_v7 = vand.u32 4294901760, %v4720_v24 }
 0x128   :  { %1497 = vmatprep.subr.mxu0 %v6949_v30  ;;  %1722 = vmatpush1.msra.mxu1 %v6950_v12  ;;  %v6952_v16 = vand.u32 4294901760, %v6951_v13  ;;  %v4781_v30 = vsub.f32 %v4700_v5, %v6955_v59  ;;  %v394_v12 = vld [vmem:[#allocation8 + $0x88] sm:$0xff]  ;;  %v6958_v13 = vld [vmem:[#allocation55_spill] sm:$0xff]  ;;  %v6961_v59 = vld [vmem:[#allocation64_spill] sm:$0xff] }
 0x129   :  { %1724 = vmatprep.subr.mxu1 %v6953_v11  ;;  %v6962_v5 = vand.u32 4294901760, %v6961_v59  ;;  %v6968_v11 = vld [vmem:[#allocation66_spill] sm:$0xff]  ;;  %v6973_v59 = vand.u32 4294901760, %v4732_v63  ;;  %v4827_v10 = vand.u32 4294901760, %v394_v12 }
 0x12a   :  { %1501 = vmatpush1.msra.mxu0 %v6952_v16  ;;  %1726 = vmatpush1.msra.mxu1 %v6958_v13  ;;  %v4788_v16 = vsub.f32 %v397_v1, %v4750_v45  ;;  %v4803_v1 = vand.u32 4294901760, %v396_v27  ;;  %v4806_v13 = vsub.f32 %v395_v4, %v4759_v32  ;;  %v6969_v35 = vand.u32 4294901760, %v6968_v11  ;;  %v6970_v45 = vld [vmem:[#allocation59_spill] sm:$0xff]  ;;  %v6978_v11 = vld [vmem:[#allocation68_spill] sm:$0xff] }
 0x12b   :  { %1505 = vmatprep.subr.mxu0 %v6957_v54  ;;  %1728 = vmatprep.subr.mxu1 %v6963_v29  ;;  %v4801_v54 = vsub.f32 %v4720_v24, %v6964_v7  ;;  %v4820_v7 = vsub.f32 %v4732_v63, %v6973_v59  ;;  %v6975_v4 = vand.u32 4294901760, %v4729_v6  ;;  %6977 = vst [vmem:[#allocation18_spill] sm:$0xff] %v4827_v10  ;;  %v4834_v32 = vand.u32 4294901760, %v393_v3 }
 0x12c   :  { %6959 = vst [vmem:[#allocation106_spill] sm:$0xff] %v4788_v16  ;;  %1509 = vmatpush1.msra.mxu0 %v6962_v5  ;;  %6966 = vst [vmem:[#allocation110_spill] sm:$0xff] %v4803_v1  ;;  %1730 = vmatpush2.msra.mxu1 %v6970_v45  ;;  %v6971_v5 = vand.u32 4294901760, %v4726_v62  ;;  %v6980_v45 = vld [vmem:[#allocation61_spill] sm:$0xff]  ;;  %v6982_v59 = vand.u32 4294901760, %v4738_v15  ;;  %v4868_v2 = vsub.f32 %v396_v27, %v4803_v1  ;;  %v387_v1 = vld [vmem:[#allocation8 + $0x50] sm:$0xff] }
 0x12d   :  { %6965 = vst [vmem:[#allocation108_spill] sm:$0xff] %v4801_v54  ;;  %6967 = vst [vmem:[#allocation111_spill] sm:$0xff] %v4806_v13  ;;  %1513 = vmatprep.subr.mxu0 %v6969_v35  ;;  %v4825_v24 = vsub.f32 %v4729_v6, %v6975_v4  ;;  %v6979_v35 = vand.u32 4294901760, %v6978_v11  ;;  %1732 = vmatprep.subr.mxu1 %v6980_v45  ;;  %v6984_v4 = vld [vmem:[#allocation70_spill] sm:$0xff]  ;;  %v6987_v11 = vand.u32 4294901760, %v4753_v39  ;;  %v4849_v45 = vld [vmem:[#allocation8 + $0x78] sm:$0xff] }
 0x12e   :  { %v4815_v29 = vsub.f32 %v4726_v62, %v6971_v5  ;;  %6974 = vst [vmem:[#allocation113_spill] sm:$0xff] %v4820_v7  ;;  %6981 = vst [vmem:[#allocation33_spill] sm:$0xff] %v4834_v32  ;;  %v4839_v63 = vsub.f32 %v4738_v15, %v6982_v59  ;;  %v6985_v6 = vand.u32 4294901760, %v6984_v4  ;;  %1734 = vmatpush2.msra.mxu1 %v6986_v31  ;;  %v391_v62 = vld [vmem:[#allocation8 + $0x70] sm:$0xff]  ;;  %v6989_v5 = vand.u32 4294901760, %v4746_v36  ;;  %v6993_v31 = vld [vmem:[#allocation65_spill] sm:$0xff] }
 0x12f   :  { %6976 = vst [vmem:[#allocation114_spill] sm:$0xff] %v4825_v24  ;;  %1517 = vmatpush1.msra.mxu0 %v6979_v35  ;;  %v4847_v35 = vsub.f32 %v4753_v39, %v6987_v11  ;;  %1736 = vmatprep.subr.mxu1 %v6993_v31  ;;  %v6994_v39 = vand.u32 4294901760, %v4762_v23  ;;  %6996 = vst [vmem:[#allocation46_spill] sm:$0xff] %v4868_v2  ;;  %v6997_v4 = vld [vmem:[#allocation74_spill] sm:$0xff]  ;;  %v4882_v27 = vsub.f32 %v394_v12, %v4827_v10  ;;  %v383_v24 = vld [vmem:[#allocation8 + $0x30] sm:$0xff] }
 0x130   :  { %6972 = vst [vmem:[#allocation112_spill] sm:$0xff] %v4815_v29  ;;  %6983 = vst [vmem:[#allocation42_spill] sm:$0xff] %v4839_v63  ;;  %1521 = vmatprep.subr.mxu0 %v6985_v6  ;;  %v4854_v9 = vsub.f32 %v4746_v36, %v6989_v5  ;;  %v6991_v6 = vld [vmem:[#allocation72_spill] sm:$0xff]  ;;  %v6998_v59 = vand.u32 4294901760, %v6997_v4  ;;  %v7003_v4 = vld [vmem:[#allocation69_spill] sm:$0xff]  ;;  %v4894_v31 = vand.u32 4294901760, %v4849_v45 }
 0x131   :  { %6988 = vst [vmem:[#allocation35_spill] sm:$0xff] %v4847_v35  ;;  %v6992_v15 = vand.u32 4294901760, %v6991_v6  ;;  %v4865_v17 = vsub.f32 %v4762_v23, %v6994_v39  ;;  %v4879_v39 = vld [vmem:[#allocation8 + $0x68] sm:$0xff]  ;;  %7000 = vst [vmem:[#allocation39_spill] sm:$0xff] %v4882_v27  ;;  %v7001_v5 = vld [vmem:[#allocation76_spill] sm:$0xff]  ;;  %v4896_v11 = vand.u32 4294901760, %v391_v62 }
 0x132   :  { %6990 = vst [vmem:[#allocation44_spill] sm:$0xff] %v4854_v9  ;;  %v7002_v36 = vand.u32 4294901760, %v7001_v5  ;;  %7005 = vst [vmem:[#allocation41_spill] sm:$0xff] %v4894_v31  ;;  %v389_v6 = vld [vmem:[#allocation8 + $0x60] sm:$0xff]  ;;  %v7007_v12 = vld [vmem:[#allocation78_spill] sm:$0xff] }
 0x133   :  { %1525 = vmatpush1.msra.mxu0 %v6992_v15  ;;  %6995 = vst [vmem:[#allocation37_spill] sm:$0xff] %v4865_v17  ;;  %v6999_v15 = vld [vmem:[#allocation67_spill] sm:$0xff]  ;;  %7006 = vst [vmem:[#allocation50_spill] sm:$0xff] %v4896_v11  ;;  %v7008_v23 = vand.u32 4294901760, %v7007_v12  ;;  %v4939_v9 = vld [vmem:[#allocation8 + $0x48] sm:$0xff] }
 0x134   :  { %1529 = vmatprep.subr.mxu0 %v6998_v59  ;;  %1738 = vmatpush2.msra.mxu1 %v6999_v15  ;;  %v4890_v59 = vsub.f32 %v393_v3, %v4834_v32  ;;  %v7009_v5 = vld [vmem:[#allocation71_spill] sm:$0xff]  ;;  %v7012_v32 = vand.u32 4294901760, %v4788_v16  ;;  %v4937_v3 = vand.u32 4294901760, %v389_v6  ;;  %v385_v63 = vld [vmem:[#allocation8 + $0x40] sm:$0xff]  ;;  %v7029_v17 = vld [vmem:[#allocation86_spill] sm:$0xff] }
 0x135   :  { %1533 = vmatpush2.msra.mxu0 %v7002_v36  ;;  %1740 = vmatprep.subr.mxu1 %v7003_v4  ;;  %v7010_v4 = vand.u32 4294901760, %v4793_v25  ;;  %v4922_v36 = vand.u32 4294901760, %v4879_v39  ;;  %v7030_v49 = vand.u32 4294901760, %v7029_v17  ;;  %v7031_v7 = vld [vmem:[#allocation79_spill] sm:$0xff]  ;;  %v7036_v17 = vld [vmem:[#allocation81_spill] sm:$0xff] }
 0x136   :  { %7004 = vst [vmem:[#allocation48_spill] sm:$0xff] %v4890_v59  ;;  %1537 = vmatprep.subr.mxu0 %v7008_v23  ;;  %1742 = vmatpush2.msra.mxu1 %v7009_v5  ;;  %v4913_v10 = vsub.f32 %v4788_v16, %v7012_v32  ;;  %v7014_v23 = vld [vmem:[#allocation80_spill] sm:$0xff]  ;;  %v7016_v5 = vld [vmem:[#allocation73_spill] sm:$0xff]  ;;  %v7018_v32 = vand.u32 4294901760, %v4806_v13  ;;  %7023 = vst [vmem:[#allocation47_spill] sm:$0xff] %v4937_v3 }
 0x137   :  { %v4908_v15 = vsub.f32 %v4793_v25, %v7010_v4  ;;  %v7015_v12 = vand.u32 4294901760, %v7014_v23  ;;  %1744 = vmatprep.subr.mxu1 %v7016_v5  ;;  %7017 = vst [vmem:[#allocation45_spill] sm:$0xff] %v4922_v36  ;;  %v4924_v4 = vld [vmem:[#allocation8 + $0x58] sm:$0xff]  ;;  %v7020_v23 = vld [vmem:[#allocation82_spill] sm:$0xff]  ;;  %v7022_v5 = vld [vmem:[#allocation75_spill] sm:$0xff] }
 0x138   :  { %7013 = vst [vmem:[#allocation52_spill] sm:$0xff] %v4913_v10  ;;  %v4930_v16 = vsub.f32 %v4806_v13, %v7018_v32  ;;  %1746 = vmatpush2.msra.mxu1 %v7022_v5  ;;  %v7024_v25 = vld [vmem:[#allocation84_spill] sm:$0xff]  ;;  %v7026_v32 = vld [vmem:[#allocation77_spill] sm:$0xff]  ;;  %v4948_v13 = vsub.f32 %v391_v62, %v4896_v11  ;;  %v4963_v62 = vand.u32 4294901760, %v4924_v4  ;;  %v4983_v10 = vand.u32 4294901760, %v385_v63 }
 0x139   :  { %7011 = vst [vmem:[#allocation43_spill] sm:$0xff] %v4908_v15  ;;  %1541 = vmatpush2.msra.mxu0 %v7015_v12  ;;  %v7021_v12 = vand.u32 4294901760, %v7020_v23  ;;  %v7025_v35 = vand.u32 4294901760, %v7024_v25  ;;  %1748 = vmatprep.subr.mxu1 %v7026_v32  ;;  %v4950_v23 = vand.u32 4294901760, %v387_v1  ;;  %v4953_v5 = vld [vmem:[#allocation8 + $0x38] sm:$0xff]  ;;  %v4967_v32 = vsub.f32 %v4849_v45, %v4894_v31  ;;  %v7040_v45 = vld [vmem:[#allocation90_spill] sm:$0xff] }
 0x13a   :  { %7019 = vst [vmem:[#allocation54_spill] sm:$0xff] %v4930_v16  ;;  %7027 = vst [vmem:[#allocation56_spill] sm:$0xff] %v4948_v13  ;;  %1750 = vmatpush2.msra.mxu1 %v7031_v7  ;;  %v4981_v25 = vand.u32 4294901760, %v4939_v9  ;;  %v5001_v31 = vand.u32 4294901760, %v383_v24  ;;  %v5003_v16 = vld [vmem:[#allocation8 + $0x28] sm:$0xff] }
 0x13b   :  { %1545 = vmatprep.subr.mxu0 %v7021_v12  ;;  %7028 = vst [vmem:[#allocation49_spill] sm:$0xff] %v4950_v23  ;;  %7032 = vst [vmem:[#allocation58_spill] sm:$0xff] %v4963_v62  ;;  %v7034_v12 = vld [vmem:[#allocation88_spill] sm:$0xff]  ;;  %1752 = vmatprep.subr.mxu1 %v7036_v17  ;;  %v4991_v17 = vsub.f32 %v389_v6, %v4937_v3 }
 0x13c   :  { %1549 = vmatpush2.msra.mxu0 %v7025_v35  ;;  %7033 = vst [vmem:[#allocation51_spill] sm:$0xff] %v4967_v32  ;;  %v7035_v11 = vand.u32 4294901760, %v7034_v12  ;;  %7038 = vst [vmem:[#allocation60_spill] sm:$0xff] %v4981_v25  ;;  %v7041_v12 = vand.u32 4294901760, %v7040_v45  ;;  %v381_v45 = vld [vmem:[#allocation8 + $0x20] sm:$0xff] }
 0x13d   :  { %1553 = vmatprep.subr.mxu0 %v7030_v49  ;;  %v7037_v49 = vand.u32 4294901760, %v4868_v2  ;;  %7039 = vst [vmem:[#allocation53_spill] sm:$0xff] %v4983_v10  ;;  %7043 = vst [vmem:[#allocation62_spill] sm:$0xff] %v4991_v17  ;;  %v5018_v15 = vld [vmem:[#allocation2] sm:$0xf]  ;;  %v5055_v18 = vand.u32 4294901760, %v381_v45 }
 0x13e   :  { %1557 = vmatpush2.msra.mxu0 %v7035_v11  ;;  %v7042_v11 = vld [vmem:[#allocation83_spill] sm:$0xff]  ;;  %7046 = vst [vmem:[#allocation64_spill] sm:$0xff] %v5001_v31  ;;  %v5021_v29 = vld [vmem:[#allocation2 + $0x4] sm:$0xf] }
 0x13f   :  { %v4977_v7 = vsub.f32 %v4868_v2, %v7037_v49  ;;  %1561 = vmatprep.subr.mxu0 %v7041_v12  ;;  %1754 = vmatpush2.msra.mxu1 %v7042_v11  ;;  %v7044_v49 = vand.u32 4294901760, %v4882_v27  ;;  %v4999_v2 = vand.u32 4294901760, %v4953_v5  ;;  %v7047_v12 = vld [vmem:[#allocation92_spill] sm:$0xff]  ;;  %v7049_v11 = vld [vmem:[#allocation85_spill] sm:$0xff]  ;;  %7063 = vst [vmem:[#allocation70_spill] sm:$0xff] %v5055_v18 }
 0x140   :  { %v7048_v6 = vand.u32 4294901760, %v7047_v12  ;;  %1756 = vmatprep.subr.mxu1 %v7049_v11  ;;  %v7053_v12 = vand.u32 4294901760, %v6862_v43  ;;  %v5040_v43 = vsub.f32 %v385_v63, %v4983_v10  ;;  %v88_v63 = vmul.f32 %v87_v51, %v5018_v15 }
 0x141   :  { %v4996_v35 = vsub.f32 %v4882_v27, %v7044_v49  ;;  %7045 = vst [vmem:[#allocation55_spill] sm:$0xff] %v4999_v2  ;;  %v5011_v49 = vsub.f32 %v387_v1, %v4950_v23  ;;  %v7051_v27 = vand.u32 4294901760, %v4890_v59  ;;  %v112_v23 = vstv %s4898_s10 }
 0x142   :  { %1565 = vmatpush2.msra.mxu0 %v7048_v6  ;;  %v7054_v6 = vld [vmem:[#allocation87_spill] sm:$0xff]  ;;  %7058 = vst [vmem:[#allocation59_spill] sm:$0xff] %v5040_v43  ;;  %v92_v11 = vmul.f32 %v91_v28, %v5021_v29  ;;  %v7064_v1 = vand.u32 4294901760, %v6868_v46  ;;  %v5063_v10 = vsub.f32 %v383_v24, %v5001_v31  ;;  %v7067_v28 = vand.u32 4294901760, %v6870_v58 }
 0x143   :  { %7050 = vst [vmem:[#allocation57_spill] sm:$0xff] %v5011_v49  ;;  %v5016_v3 = vsub.f32 %v4890_v59, %v7051_v27  ;;  %1569 = vmatprep.subr.mxu0 %v7053_v12  ;;  %1758 = vmatpush2.msra.mxu1 %v7054_v6  ;;  %v115_v27 = vstv %s4915_s11  ;;  %v7055_v59 = vld [vmem:[#allocation96_spill] sm:$0xff]  ;;  %v5043_v12 = vand.u32 4294901760, %v5003_v16  ;;  %v5047_v6 = vsub.f32 %v4879_v39, %v4922_v36  ;;  %v7065_v39 = vld [vmem:[#allocation93_spill] sm:$0xff]  ;;  %v7068_v46 = vld [vmem:[#allocation95_spill] sm:$0xff] }
 0x144   :  { %v7056_v54 = vand.u32 4294901760, %v7055_v59  ;;  %1760 = vmatprep.subr.mxu1 %v7057_v8  ;;  %v7061_v59 = vand.u32 4294901760, %v6866_v0  ;;  %7066 = vst [vmem:[#allocation63_spill] sm:$0xff] %v5063_v10  ;;  %v5065_v0 = vld [vmem:[#allocation8 + $0x18] sm:$0xff]  ;;  %v113_v8 = vmul.f32 %v112_v23, %v5018_v15  ;;  %v116_v51 = vmul.f32 %v115_v27, %v5021_v29  ;;  %v7073_v27 = vld [vmem:[#allocation97_spill] sm:$0xff] }
 0x145   :  { %7052 = vst [vmem:[#allocation66_spill] sm:$0xff] %v5016_v3  ;;  %7059 = vst [vmem:[#allocation68_spill] sm:$0xff] %v5043_v12  ;;  %v7069_v24 = vand.u32 4294901760, %v4967_v32  ;;  %v7071_v31 = vand.u32 4294901760, %v4948_v13  ;;  %v119_v23 = vstv %s4955_s13  ;;  %v7072_v58 = vand.u32 4294901760, %v6872_v47 }
 0x146   :  { %1573 = vmatpush2.msra.mxu0 %v7056_v54  ;;  %7060 = vst [vmem:[#allocation61_spill] sm:$0xff] %v5047_v6  ;;  %v7062_v54 = vld [vmem:[#allocation91_spill] sm:$0xff]  ;;  %v5102_v47 = vsub.f32 %v381_v45, %v5055_v18  ;;  %v101_v45 = vstv %s4942_s12  ;;  %v142_v18 = vstv %s5024_s4  ;;  %v161_v3 = vstv %s5049_s16 }
 0x147   :  { %1577 = vmatprep.subr.mxu0 %v7061_v59  ;;  %1762 = vmatpush2.msra.mxu1 %v7062_v54  ;;  %v5067_v59 = vld [vmem:[#allocation2 + $0x8] sm:$0xf]  ;;  %v96_v54 = vstv %s4932_s0  ;;  %v5084_v36 = vsub.f32 %v4948_v13, %v7071_v31  ;;  %v7074_v31 = vand.u32 4294901760, %v6873_v42  ;;  %v7075_v13 = vld [vmem:[#allocation99_spill] sm:$0xff]  ;;  %v5113_v42 = vsub.f32 %v4924_v4, %v4963_v62 }
 0x148   :  { %1581 = vmatpush2.msra.mxu0 %v7064_v1  ;;  %1764 = vmatprep.subr.mxu1 %v7065_v39  ;;  %v5079_v39 = vsub.f32 %v4967_v32, %v7069_v24  ;;  %v135_v24 = vstv %s4969_s14  ;;  %v138_v1 = vstv %s4985_s15  ;;  %7076 = vst [vmem:[#allocation65_spill] sm:$0xff] %v5102_v47  ;;  %v7079_v32 = vld [vmem:[#allocation101_spill] sm:$0xff]  ;;  %v7083_v62 = vand.u32 4294901760, %v6877_v50 }
 0x149   :  { %1585 = vmatprep.subr.mxu0 %v7067_v28  ;;  %1766 = vmatpush2.msra.mxu1 %v7068_v46  ;;  %v97_v28 = vmul.f32 %v96_v54, %v5067_v59  ;;  %v7078_v46 = vand.u32 4294901760, %v6875_v61  ;;  %7080 = vst [vmem:[#allocation67_spill] sm:$0xff] %v5113_v42  ;;  %v7081_v61 = vand.u32 4294901760, %v6876_v14  ;;  %v7082_v54 = vld [vmem:[#allocation117_spill] sm:$0xff]  ;;  %v136_v4 = vmul.f32 %v135_v24, %v5018_v15  ;;  %v5154_v14 = vld [vmem:[#allocation8 + $0x8] sm:$0xff] }
 0x14a   :  { %7070 = vst [vmem:[#allocation72_spill] sm:$0xff] %v5079_v39  ;;  %1589 = vmatpush2.msra.mxu0 %v7072_v58  ;;  %1768 = vmatprep.subr.mxu1 %v7073_v27  ;;  %v5105_v58 = vand.u32 4294901760, %v5065_v0  ;;  %v93_v27 = vadd.f32 %v92_v11, %v88_v63  ;;  %v117_v11 = vadd.f32 %v116_v51, %v113_v8  ;;  %v7084_v8 = vld [vmem:[#allocation103_spill] sm:$0xff]  ;;  %v7085_v51 = vand.u32 4294901760, %v4991_v17 }
 0x14b   :  { %1593 = vmatprep.subr.mxu0 %v7074_v31  ;;  %1770 = vmatpush2.msra.mxu1 %v7075_v13  ;;  %v5115_v13 = vld [vmem:[#allocation2 + $0xc] sm:$0xf]  ;;  %v120_v63 = vmul.f32 %v119_v23, %v5067_v59  ;;  %v139_v31 = vmul.f32 %v138_v1, %v5021_v29  ;;  %v7086_v24 = vand.u32 4294901760, %v6878_v20  ;;  %v7089_v39 = vand.u32 4294901760, %v6879_v38 }
 0x14c   :  { %7077 = vst [vmem:[#allocation74_spill] sm:$0xff] %v5105_v58  ;;  %1597 = vmatpush2.msra.mxu0 %v7078_v46  ;;  %1772 = vmatprep.subr.mxu1 %v7079_v32  ;;  %v5124_v32 = vld [vmem:[#allocation8 + $0x10] sm:$0xff]  ;;  %v123_v46 = vstv %s5005_s2  ;;  %v5139_v23 = vsub.f32 %v4991_v17, %v7085_v51  ;;  %v7087_v1 = vld [vmem:[#allocation105_spill] sm:$0xff]  ;;  %v98_v51 = vadd.f32 %v97_v28, %v93_v27  ;;  %v146_v38 = vstv %s5087_s17 }
 0x14d   :  { %1601 = vmatprep.subr.mxu0 %v7081_v61  ;;  %1655 = vmatprep.mubr.f32.mxu0 %v7082_v54  ;;  %v158_v61 = vstv %s5033_s3  ;;  %v102_v17 = vmul.f32 %v101_v45, %v5115_v13  ;;  %v5161_v20 = vand.u32 4294901760, %v5124_v32  ;;  %v124_v50 = vmul.f32 %v123_v46, %v5115_v13  ;;  %v7093_v45 = vld [vmem:[#allocation109_spill] sm:$0xff] }
 0x14e   :  { %1605 = vmatpush2.msra.mxu0 %v7083_v62  ;;  %1774 = vmatpush2.msra.mxu1 %v7084_v8  ;;  %v7088_v62 = vand.u32 4294901760, %v5047_v6  ;;  %v140_v28 = vadd.f32 %v139_v31, %v136_v4  ;;  %v7092_v27 = vand.u32 4294901760, %v6881_v48  ;;  %v5187_v48 = vsub.f32 %v4939_v9, %v4981_v25 }
 0x14f   :  { %1609 = vmatprep.subr.mxu0 %v7086_v24  ;;  %1776 = vmatprep.subr.mxu1 %v7087_v1  ;;  %7090 = vst [vmem:[#allocation76_spill] sm:$0xff] %v5161_v20  ;;  %v377_v24 = vld [vmem:[#allocation8] sm:$0xff]  ;;  %v121_v1 = vadd.f32 %v120_v63, %v117_v11  ;;  %v6537_v11 = vand.u32 4294901760, %v5113_v42  ;;  %v7099_v63 = vand.u32 4294901760, %v4414_v41  ;;  %v105_v46 = vstv %s5118_s19 }
 0x150   :  { %v5152_v8 = vsub.f32 %v5047_v6, %v7088_v62  ;;  %1613 = vmatpush2.msra.mxu0 %v7089_v39  ;;  %1778 = vmatpush2.msra.mxu1 %v4137_v53  ;;  %v143_v62 = vmul.f32 %v142_v18, %v5067_v59  ;;  %v7091_v6 = vand.u32 4294901760, %v6880_v44  ;;  %v159_v39 = vmul.f32 %v158_v61, %v5018_v15  ;;  %v433_v61 = vld [vmem:[#allocation8 + $0x1c0] sm:$0xff] }
 0x151   :  { %1780 = vmatprep.subr.mxu1 %v4152_v34  ;;  %v162_v53 = vmul.f32 %v161_v3, %v5021_v29  ;;  %v6535_v18 = vand.u32 4294901760, %v5011_v49  ;;  %v5177_v44 = vand.u32 4294901760, %v5154_v14  ;;  %v165_v34 = vstv %s5096_s18  ;;  %7096 = vst [vmem:[#allocation78_spill] sm:$0xff] %v5187_v48  ;;  %1792 = vmatprep.mubr.f32.mxu1 %v7082_v54 }
 0x152   :  { %1617 = vmatprep.subr.mxu0 %v7091_v6  ;;  %1782 = vmatpush2.msra.mxu1 %v7093_v45  ;;  %v7095_v15 = vand.u32 4294901760, %v4410_v55  ;;  %v5189_v29 = vand.u32 4294901760, %v377_v24  ;;  %v6533_v3 = vand.u32 4294901760, %v5040_v43  ;;  %v5194_v6 = vsub.f32 %v4953_v5, %v4999_v2 }
 0x153   :  { %1621 = vmatpush2.msra.mxu0 %v7092_v27  ;;  %7094 = vst [vmem:[#allocation69_spill] sm:$0xff] %v5177_v44  ;;  %1784 = vmatprep.subr.mxu1 %v4179_v26  ;;  %v103_v55 = vadd.f32 %v102_v17, %v98_v51  ;;  %v125_v26 = vadd.f32 %v124_v50, %v121_v1  ;;  %v7100_v4 = vand.u32 4294901760, %v4421_v57  ;;  %v127_v5 = vstv %s5127_s20  ;;  %v5224_v50 = vld [vmem:[#allocation8 + $0x1f8] sm:$0xff] }
 0x154   :  { %1625 = vmatprep.subr.mxu0 %v7095_v15  ;;  %7097 = vst [vmem:[#allocation71_spill] sm:$0xff] %v5189_v29  ;;  %7098 = vst [vmem:[#allocation80_spill] sm:$0xff] %v5194_v6  ;;  %1786 = vmatpush2.msra.mxu1 %v4202_v52  ;;  %v147_v9 = vmul.f32 %v146_v38, %v5115_v13  ;;  %v144_v41 = vadd.f32 %v143_v62, %v140_v28  ;;  %v7101_v17 = vand.u32 4294901760, %v4425_v56  ;;  %v439_v28 = vld [vmem:[#allocation8 + $0x1f0] sm:$0xff] }
 0x155   :  { %1629 = vmatpush2.msra.mxu0 %v7099_v63  ;;  %1788 = vmatprep.subr.mxu1 %v4217_v37  ;;  %v163_v31 = vadd.f32 %v162_v53, %v159_v39  ;;  %v166_v52 = vmul.f32 %v165_v34, %v5067_v59  ;;  %v5217_v57 = vsub.f32 %v5113_v42, %v6537_v11  ;;  %v169_v59 = vstv %s5143_s21  ;;  %v7106_v39 = vld [vmem:[#allocation116_spill] sm:$0xff]  ;;  %v437_v34 = vld [vmem:[#allocation8 + $0x1e0] sm:$0xff] }
 0x156   :  { %1633 = vmatprep.subr.mxu0 %v7100_v4  ;;  %1790 = vmatpush2.msra.mxu1 %v4239_v33  ;;  %v5222_v37 = vsub.f32 %v5011_v49, %v6535_v18  ;;  %v7102_v56 = vand.u32 4294901760, %v4429_v21  ;;  %v5235_v51 = vsub.f32 %v5124_v32, %v5161_v20  ;;  %v6534_v1 = vand.u32 4294901760, %v5187_v48  ;;  %v5250_v32 = vld [vmem:[#allocation8 + $0x1e8] sm:$0xff]  ;;  %v7124_v18 = vld [vmem:[#allocation113_spill] sm:$0xff]  ;;  %v7144_v42 = vld [vmem:[#allocation44_spill] sm:$0xff] }
 0x157   :  { %1637 = vmatpush2.msra.mxu0 %v7101_v17  ;;  %v5239_v62 = vsub.f32 %v377_v24, %v5189_v29  ;;  %v7105_v38 = vand.u32 4294901760, %v4453_v40  ;;  %1794 = vmatmul.mubr.f32.vlgmr.msra.gmra.mxu1 %v7106_v39  ;;  %v5247_v21 = vsub.f32 %v5040_v43, %v6533_v3  ;;  %v6536_v54 = vand.u32 4294901760, %v5194_v6  ;;  %v7167_v49 = vld [vmem:[#allocation102_spill] sm:$0xff] }
 0x158   :  { %1641 = vmatprep.subr.mxu0 %v7102_v56  ;;  %7103 = vst [vmem:[#allocation73_spill] sm:$0xff] %v5235_v51  ;;  %v106_v53 = vadd.f32 %v105_v46, %v103_v55  ;;  %v128_v27 = vadd.f32 %v127_v5, %v125_v26  ;;  %v7107_v24 = vand.u32 4294901760, %v4457_v19  ;;  %v7108_v40 = vand.u32 4294901760, %v4776_v22 }
 0x159   :  { %7104 = vst [vmem:[#allocation82_spill] sm:$0xff] %v5239_v62  ;;  %1645 = vmatpush2.msra.mxu0 %v7105_v38  ;;  %v5257_v45 = vand.u32 4294901760, %v5224_v50  ;;  %v148_v15 = vadd.f32 %v147_v9, %v144_v41  ;;  %v167_v63 = vadd.f32 %v166_v52, %v163_v31  ;;  %v170_v4 = vmul.f32 %v169_v59, %v5115_v13  ;;  %v7113_v9 = vld [vmem:[#allocation20_spill] sm:$0xff]  ;;  %v7116_v41 = vld [vmem:[#allocation19_spill] sm:$0xff] }
 0x15a   :  { %1649 = vmatprep.subr.mxu0 %v7107_v24  ;;  %1961 = vmatprep.subr.mxu1 %v7108_v40  ;;  %v7110_v17 = vand.u32 4294901760, %v4461_v60  ;;  %v7111_v55 = vand.u32 4294901760, %v4781_v30  ;;  %v5266_v22 = vand.u32 4294901760, %v439_v28  ;;  %v150_v26 = vstv %s5179_s22  ;;  %v7117_v31 = vld [vmem:[#allocation108_spill] sm:$0xff] }
 0x15b   :  { %7109 = vst [vmem:[#allocation75_spill] sm:$0xff] %v5257_v45  ;;  %v5276_v60 = vsub.f32 %v5187_v48, %v6534_v1  ;;  %v6538_v30 = vand.u32 4294901760, %v5063_v10  ;;  %v5280_v13 = vand.u32 4294901760, %v5250_v32  ;;  %v5284_v5 = vsub.f32 %v5003_v16, %v5043_v12  ;;  %v7121_v24 = vld [vmem:[#allocation112_spill] sm:$0xff]  ;;  %v7123_v1 = vld [vmem:[#allocation21_spill] sm:$0xff]  ;;  %v431_v48 = vld [vmem:[#allocation8 + $0x1b0] sm:$0xff] }
 0x15c   :  { %1653 = vmatpush2.msra.mxu0 %v7110_v17  ;;  %1967 = vmatpush1.msra.mxu1 %v7111_v55  ;;  %7112 = vst [vmem:[#allocation84_spill] sm:$0xff] %v5266_v22  ;;  %v7118_v52 = vand.u32 4294901760, %v7117_v31  ;;  %v5293_v56 = vsub.f32 %v5194_v6, %v6536_v54  ;;  %v5295_v38 = vand.u32 4294901760, %v437_v34  ;;  %v6539_v16 = vand.u32 4294901760, %v5102_v47  ;;  %v5301_v17 = vld [vmem:[#allocation8 + $0x1d8] sm:$0xff]  ;;  %v7141_v6 = vld [vmem:[#allocation37_spill] sm:$0xff] }
 0x15d   :  { %1657 = vmatmul.mubr.f32.vlgmr.msra.gmra.mxu0 %v7106_v39  ;;  %1812 = vmatprep.subr.mxu0 %v7113_v9  ;;  %7114 = vst [vmem:[#allocation77_spill] sm:$0xff] %v5280_v13  ;;  %7115 = vst [vmem:[#allocation86_spill] sm:$0xff] %v5284_v5  ;;  %v7120_v39 = vld [vmem:[#allocation22_spill] sm:$0xff]  ;;  %v7122_v40 = vand.u32 4294901760, %v7121_v24  ;;  %v107_v55 = vmax.f32 %v106_v53, 0.0  ;;  %v129_v31 = vmax.f32 %v128_v27, 0.0  ;;  %v171_v3 = vadd.f32 %v170_v4, %v167_v63 }
 0x15e   :  { %1814 = vmatpush1.msra.mxu0 %v7116_v41  ;;  %1973 = vmatprep.subr.mxu1 %v7118_v52  ;;  %7119 = vst [vmem:[#allocation79_spill] sm:$0xff] %v5295_v38  ;;  %v151_v52 = vadd.f32 %v150_v26, %v148_v15  ;;  %v7125_v54 = vand.u32 4294901760, %v7124_v18  ;;  %v5308_v11 = vsub.f32 %v5065_v0, %v5105_v58  ;;  %v109_v59 = vstv %s5200_s23  ;;  %v7127_v24 = vld [vmem:[#allocation24_spill] sm:$0xff]  ;;  %v7128_v53 = vld [vmem:[#allocation114_spill] sm:$0xff]  ;;  %v7132_v4 = vld [vmem:[#allocation35_spill] sm:$0xff] }
 0x15f   :  { %1816 = vmatprep.subr.mxu0 %v7120_v39  ;;  %1979 = vmatpush1.msra.mxu1 %v7122_v40  ;;  %v131_v46 = vstv %s5207_s24  ;;  %v173_v19 = vstv %s5227_s25  ;;  %v7129_v27 = vand.u32 4294901760, %v7128_v53  ;;  %v5320_v63 = vsub.f32 %v439_v28, %v5266_v22  ;;  %v7137_v15 = vld [vmem:[#allocation27_spill] sm:$0xff] }
 0x160   :  { %1818 = vmatpush1.msra.mxu0 %v7123_v1  ;;  %1985 = vmatprep.subr.mxu1 %v7125_v54  ;;  %7126 = vst [vmem:[#allocation88_spill] sm:$0xff] %v5308_v11  ;;  %v5325_v0 = vsub.f32 %v5063_v10, %v6538_v30  ;;  %v7131_v54 = vld [vmem:[#allocation23_spill] sm:$0xff]  ;;  %v7133_v26 = vand.u32 4294901760, %v7132_v4  ;;  %v5332_v40 = vsub.f32 %v437_v34, %v5295_v38  ;;  %v5340_v53 = vand.u32 4294901760, %v5301_v17  ;;  %v7138_v4 = vld [vmem:[#allocation42_spill] sm:$0xff]  ;;  %v7140_v10 = vld [vmem:[#allocation25_spill] sm:$0xff] }
 0x161   :  { %1820 = vmatprep.subr.mxu0 %v7127_v24  ;;  %1991 = vmatpush1.msra.mxu1 %v7129_v27  ;;  %7130 = vst [vmem:[#allocation81_spill] sm:$0xff] %v5320_v63  ;;  %v5337_v28 = vsub.f32 %v5102_v47, %v6539_v16  ;;  %v435_v27 = vld [vmem:[#allocation8 + $0x1d0] sm:$0xff]  ;;  %v5344_v30 = vsub.f32 %v5154_v14, %v5177_v44  ;;  %v5349_v34 = vld [vmem:[#allocation8 + $0x1c8] sm:$0xff]  ;;  %v152_v18 = vmax.f32 %v151_v52, 0.0  ;;  %v7142_v43 = vand.u32 4294901760, %v7141_v6  ;;  %v7180_v24 = vld [vmem:[#allocation41_spill] sm:$0xff] }
 0x162   :  { %1822 = vmatpush1.msra.mxu0 %v7131_v54  ;;  %1997 = vmatprep.subr.mxu1 %v7133_v26  ;;  %7134 = vst [vmem:[#allocation90_spill] sm:$0xff] %v5332_v40  ;;  %7135 = vst [vmem:[#allocation83_spill] sm:$0xff] %v5340_v53  ;;  %v7139_v26 = vand.u32 4294901760, %v7138_v4  ;;  %v110_v33 = vmul.f32 %v109_v59, %v107_v55  ;;  %v132_v16 = vmul.f32 %v131_v46, %v129_v31  ;;  %v7149_v59 = vld [vmem:[#allocation30_spill] sm:$0xff]  ;;  %v7150_v55 = vld [vmem:[#allocation43_spill] sm:$0xff] }
 0x163   :  { %7136 = vst [vmem:[#allocation92_spill] sm:$0xff] %v5344_v30  ;;  %1824 = vmatprep.subr.mxu0 %v7137_v15  ;;  %v174_v47 = vadd.f32 %v173_v19, %v171_v3  ;;  %v154_v4 = vstv %s5269_s26  ;;  %v7145_v15 = vand.u32 4294901760, %v7144_v42  ;;  %v7146_v46 = vand.u32 4294901760, %v5284_v5  ;;  %v7154_v14 = vld [vmem:[#allocation94_spill] sm:$0xff] }
 0x164   :  { %2003 = vmatpush1.msra.mxu1 %v7139_v26  ;;  %1826 = vmatpush1.msra.mxu0 %v7140_v10  ;;  %v7143_v26 = vld [vmem:[#allocation29_spill] sm:$0xff]  ;;  %v5366_v19 = vand.u32 4294901760, %v435_v27  ;;  %v5371_v6 = vsub.f32 %v5224_v50, %v5257_v45  ;;  %v7151_v31 = vand.u32 4294901760, %v7150_v55  ;;  %v133_v55 = vadd.f32 %v132_v16, %v110_v33  ;;  %v7157_v42 = vld [vmem:[#allocation98_spill] sm:$0xff]  ;;  %v7177_v10 = vld [vmem:[#allocation72_spill] sm:$0xff] }
 0x165   :  { %2009 = vmatprep.subr.mxu1 %v7142_v43  ;;  %1828 = vmatprep.subr.mxu0 %v7143_v26  ;;  %v5364_v3 = vsub.f32 %v5284_v5, %v7146_v46  ;;  %v5381_v46 = vand.u32 4294901760, %v433_v61  ;;  %v7155_v43 = vld [vmem:[#allocation52_spill] sm:$0xff]  ;;  %v175_v5 = vmax.f32 %v174_v47, 0.0  ;;  %v7158_v52 = vand.u32 4294901760, %v4977_v7  ;;  %v7162_v16 = vld [vmem:[#allocation110_spill] sm:$0xff] }
 0x166   :  { %2015 = vmatpush1.msra.mxu1 %v7145_v15  ;;  %7147 = vst [vmem:[#allocation85_spill] sm:$0xff] %v5366_v19  ;;  %7148 = vst [vmem:[#allocation87_spill] sm:$0xff] %v5371_v6  ;;  %1830 = vmatpush1.msra.mxu0 %v7149_v59  ;;  %v5379_v15 = vand.u32 4294901760, %v5349_v34  ;;  %v7156_v50 = vand.u32 4294901760, %v7155_v43  ;;  %v7159_v59 = vand.u32 4294901760, %v5308_v11  ;;  %v5402_v33 = vsub.f32 %v5250_v32, %v5280_v13  ;;  %v7163_v7 = vld [vmem:[#allocation54_spill] sm:$0xff] }
 0x167   :  { %2021 = vmatprep.subr.mxu1 %v7151_v31  ;;  %7153 = vst [vmem:[#allocation89_spill] sm:$0xff] %v5381_v46  ;;  %1832 = vmatprep.subr.mxu0 %v7154_v14  ;;  %v155_v31 = vmul.f32 %v154_v4, %v152_v18  ;;  %v7160_v14 = vand.u32 4294901760, %v5235_v51  ;;  %v177_v47 = vstv %s5313_s27  ;;  %v7164_v18 = vand.u32 4294901760, %v7163_v7  ;;  %v432_v32 = vld [vmem:[#allocation8 + $0x1b8] sm:$0xff]  ;;  %v430_v4 = vld [vmem:[#allocation8 + $0x1a8] sm:$0xff] }
 0x168   :  { %7152 = vst [vmem:[#allocation96_spill] sm:$0xff] %v5379_v15  ;;  %2027 = vmatpush1.msra.mxu1 %v7156_v50  ;;  %1834 = vmatpush1.msra.mxu0 %v7157_v42  ;;  %v5393_v26 = vsub.f32 %v5308_v11, %v7159_v59  ;;  %7161 = vst [vmem:[#allocation91_spill] sm:$0xff] %v5402_v33  ;;  %v5412_v59 = vsub.f32 %v435_v27, %v5366_v19  ;;  %v429_v11 = vld [vmem:[#allocation8 + $0x1a0] sm:$0xff]  ;;  %v7173_v50 = vld [vmem:[#allocation66_spill] sm:$0xff]  ;;  %v7178_v54 = vand.u32 4294901760, %v7177_v10 }
 0x169   :  { %2033 = vmatprep.subr.mxu1 %v7158_v52  ;;  %v5398_v43 = vsub.f32 %v5235_v51, %v7160_v14  ;;  %1836 = vmatprep.subr.mxu0 %v7162_v16  ;;  %v7166_v14 = vand.u32 4294901760, %v5239_v62  ;;  %v7168_v51 = vand.u32 4294901760, %v4996_v35  ;;  %v5424_v7 = vsub.f32 %v433_v61, %v5381_v46  ;;  %v7176_v42 = vld [vmem:[#allocation33_spill] sm:$0xff] }
 0x16a   :  { %2039 = vmatpush1.msra.mxu1 %v7164_v18  ;;  %7165 = vst [vmem:[#allocation93_spill] sm:$0xff] %v5412_v59  ;;  %1838 = vmatpush1.msra.mxu0 %v7167_v49  ;;  %v5426_v18 = vand.u32 4294901760, %v431_v48  ;;  %v7174_v49 = vand.u32 4294901760, %v7173_v50  ;;  %v7175_v35 = vand.u32 4294901760, %v5344_v30  ;;  %v156_v16 = vadd.f32 %v155_v31, %v133_v55 }
 0x16b   :  { %v5417_v52 = vsub.f32 %v5239_v62, %v7166_v14  ;;  %2045 = vmatprep.subr.mxu1 %v7168_v51  ;;  %7169 = vst [vmem:[#allocation95_spill] sm:$0xff] %v5424_v7  ;;  %v5431_v14 = vsub.f32 %v5301_v17, %v5340_v53  ;;  %v7172_v62 = vld [vmem:[#allocation18_spill] sm:$0xff]  ;;  %v178_v27 = vmul.f32 %v177_v47, %v175_v5  ;;  %v5447_v50 = vand.u32 4294901760, %v432_v32  ;;  %v427_v47 = vld [vmem:[#allocation8 + $0x190] sm:$0xff] }
 0x16c   :  { %7170 = vst [vmem:[#allocation97_spill] sm:$0xff] %v5426_v18  ;;  %1840 = vmatprep.subr.mxu0 %v7172_v62  ;;  %2051 = vmatpush1.msra.mxu1 %v7174_v49  ;;  %v5439_v61 = vsub.f32 %v5344_v30, %v7175_v35  ;;  %v7181_v35 = vand.u32 4294901760, %v5084_v36  ;;  %v7182_v55 = vand.u32 4294901760, %v5371_v6  ;;  %v5461_v31 = vand.u32 4294901760, %v429_v11  ;;  %v7185_v62 = vld [vmem:[#allocation50_spill] sm:$0xff]  ;;  %v425_v30 = vld [vmem:[#allocation8 + $0x180] sm:$0xff] }
 0x16d   :  { %7171 = vst [vmem:[#allocation99_spill] sm:$0xff] %v5431_v14  ;;  %1842 = vmatpush1.msra.mxu0 %v7176_v42  ;;  %2057 = vmatprep.subr.mxu1 %v7178_v54  ;;  %7179 = vst [vmem:[#allocation101_spill] sm:$0xff] %v5447_v50  ;;  %v5459_v54 = vand.u32 4294901760, %v430_v4  ;;  %v7186_v17 = vand.u32 4294901760, %v5152_v8  ;;  %v5467_v36 = vsub.f32 %v431_v48, %v5426_v18  ;;  %v7191_v8 = vand.u32 4294901760, %v5139_v23  ;;  %v426_v48 = vld [vmem:[#allocation8 + $0x188] sm:$0xff] }
 0x16e   :  { %1844 = vmatprep.subr.mxu0 %v7180_v24  ;;  %2063 = vmatpush1.msra.mxu1 %v7181_v35  ;;  %v5457_v10 = vsub.f32 %v5371_v6, %v7182_v55  ;;  %7184 = vst [vmem:[#allocation103_spill] sm:$0xff] %v5461_v31  ;;  %v7188_v35 = vand.u32 4294901760, %v5320_v63  ;;  %v428_v55 = vld [vmem:[#allocation8 + $0x198] sm:$0xff]  ;;  %v5477_v51 = vsub.f32 %v5349_v34, %v5379_v15  ;;  %v7190_v6 = vld [vmem:[#allocation45_spill] sm:$0xff]  ;;  %v7194_v34 = vand.u32 4294901760, %v5217_v57  ;;  %v423_v57 = vld [vmem:[#allocation8 + $0x170] sm:$0xff] }
 0x16f   :  { %7183 = vst [vmem:[#allocation117_spill] sm:$0xff] %v5459_v54  ;;  %1846 = vmatpush1.msra.mxu0 %v7185_v62  ;;  %2069 = vmatprep.subr.mxu1 %v7186_v17  ;;  %7187 = vst [vmem:[#allocation105_spill] sm:$0xff] %v5467_v36  ;;  %v7192_v17 = vand.u32 4294901760, %v5332_v40  ;;  %v179_v49 = vadd.f32 %v178_v27, %v156_v16  ;;  %v7193_v62 = vld [vmem:[#allocation47_spill] sm:$0xff]  ;;  %v7198_v16 = vand.u32 4294901760, %v5222_v37  ;;  %v7208_v24 = vand.u32 4294901760, %v5293_v56 }
 0x170   :  { %v5472_v5 = vsub.f32 %v5320_v63, %v7188_v35  ;;  %7189 = vst [vmem:[#allocation109_spill] sm:$0xff] %v5477_v51  ;;  %1848 = vmatprep.subr.mxu0 %v7190_v6  ;;  %2075 = vmatpush1.msra.mxu1 %v7191_v8  ;;  %v7195_v6 = vand.u32 4294901760, %v5402_v33  ;;  %v5497_v8 = vand.u32 4294901760, %v427_v47  ;;  %v7197_v63 = vld [vmem:[#allocation58_spill] sm:$0xff]  ;;  %v5508_v27 = vsub.f32 %v429_v11, %v5461_v31 }
 0x171   :  { %v5486_v35 = vsub.f32 %v5332_v40, %v7192_v17  ;;  %1850 = vmatpush1.msra.mxu0 %v7193_v62  ;;  %2081 = vmatprep.subr.mxu1 %v7194_v34  ;;  %v5500_v17 = vsub.f32 %v432_v32, %v5447_v50  ;;  %v181_v40 = vstv %s5405_s28  ;;  %v5510_v34 = vand.u32 4294901760, %v428_v55 }
 0x172   :  { %v5495_v23 = vsub.f32 %v5402_v33, %v7195_v6  ;;  %1852 = vmatprep.subr.mxu0 %v7197_v63  ;;  %2087 = vmatpush1.msra.mxu1 %v7198_v16  ;;  %7199 = vst [vmem:[#allocation20_spill] sm:$0xff] %v5508_v27  ;;  %v7201_v33 = vld [vmem:[#allocation49_spill] sm:$0xff]  ;;  %v7202_v32 = vand.u32 4294901760, %v5276_v60  ;;  %v7203_v63 = vand.u32 4294901760, %v5431_v14  ;;  %v5523_v11 = vand.u32 4294901760, %v425_v30 }
 0x173   :  { %7196 = vst [vmem:[#allocation116_spill] sm:$0xff] %v5500_v17  ;;  %7200 = vst [vmem:[#allocation19_spill] sm:$0xff] %v5510_v34  ;;  %1854 = vmatpush1.msra.mxu0 %v7201_v33  ;;  %v7204_v6 = vand.u32 4294901760, %v5247_v21  ;;  %v7205_v60 = vand.u32 4294901760, %v5412_v59  ;;  %v5533_v62 = vand.u32 4294901760, %v426_v48  ;;  %v424_v33 = vld [vmem:[#allocation8 + $0x178] sm:$0xff]  ;;  %v182_v16 = vadd.f32 %v181_v40, %v179_v49 }
 0x174   :  { %2093 = vmatprep.subr.mxu1 %v7202_v32  ;;  %v5520_v37 = vsub.f32 %v5431_v14, %v7203_v63  ;;  %1856 = vmatprep.subr.mxu0 %v4981_v25  ;;  %v5536_v63 = vsub.f32 %v430_v4, %v5459_v54  ;;  %v7207_v14 = vld [vmem:[#allocation53_spill] sm:$0xff]  ;;  %v5544_v25 = vsub.f32 %v427_v47, %v5497_v8  ;;  %v7210_v4 = vand.u32 4294901760, %v5325_v0 }
 0x175   :  { %2099 = vmatpush1.msra.mxu1 %v7204_v6  ;;  %v5531_v32 = vsub.f32 %v5412_v59, %v7205_v60  ;;  %1858 = vmatpush1.msra.mxu0 %v7207_v14  ;;  %v7211_v40 = vand.u32 4294901760, %v5424_v7  ;;  %v5555_v56 = vand.u32 4294901760, %v423_v57  ;;  %v422_v6 = vld [vmem:[#allocation8 + $0x168] sm:$0xff]  ;;  %v421_v21 = vld [vmem:[#allocation8 + $0x160] sm:$0xff]  ;;  %v5559_v47 = vsub.f32 %v428_v55, %v5510_v34  ;;  %v7213_v60 = vld [vmem:[#allocation64_spill] sm:$0xff] }
 0x176   :  { %7206 = vst [vmem:[#allocation108_spill] sm:$0xff] %v5536_v63  ;;  %2105 = vmatprep.subr.mxu1 %v7208_v24  ;;  %7209 = vst [vmem:[#allocation112_spill] sm:$0xff] %v5544_v25  ;;  %1860 = vmatprep.subr.mxu0 %v4999_v2  ;;  %v7214_v59 = vand.u32 4294901760, %v5364_v3  ;;  %v7215_v0 = vand.u32 4294901760, %v5477_v51  ;;  %v7217_v55 = vand.u32 4294901760, %v5337_v28  ;;  %v2176_v3 = vand.u32 4294901760, %v5520_v37 }
 0x177   :  { %2111 = vmatpush1.msra.mxu1 %v7210_v4  ;;  %v5553_v49 = vsub.f32 %v5424_v7, %v7211_v40  ;;  %7212 = vst [vmem:[#allocation113_spill] sm:$0xff] %v5559_v47  ;;  %1862 = vmatpush1.msra.mxu0 %v7213_v60  ;;  %v5570_v40 = vsub.f32 %v425_v30, %v5523_v11  ;;  %v5572_v7 = vand.u32 4294901760, %v424_v33  ;;  %v7219_v30 = vld [vmem:[#allocation70_spill] sm:$0xff]  ;;  %v7220_v2 = vand.u32 4294901760, %v5393_v26 }
 0x178   :  { %2117 = vmatprep.subr.mxu1 %v7214_v59  ;;  %v5567_v4 = vsub.f32 %v5477_v51, %v7215_v0  ;;  %1864 = vmatprep.subr.mxu0 %v5043_v12  ;;  %v7218_v0 = vld [vmem:[#allocation115_spill] sm:$0xff]  ;;  %v7221_v24 = vand.u32 4294901760, %v5500_v17  ;;  %v5592_v28 = vand.u32 4294901760, %v422_v6  ;;  %v5594_v37 = vand.u32 4294901760, %v421_v21 }
 0x179   :  { %7216 = vst [vmem:[#allocation114_spill] sm:$0xff] %v5570_v40  ;;  %2123 = vmatpush1.msra.mxu1 %v7217_v55  ;;  %v5582_v51 = vrot.slane %v182_v16, %v7218_v0  ;;  %1866 = vmatpush1.msra.mxu0 %v7219_v30  ;;  %v419_v55 = vld [vmem:[#allocation8 + $0x150] sm:$0xff]  ;;  %v5597_v59 = vsub.f32 %v426_v48, %v5533_v62  ;;  %v7223_v16 = vand.u32 4294901760, %v5398_v43  ;;  %v420_v0 = vld [vmem:[#allocation8 + $0x158] sm:$0xff]  ;;  %v7226_v48 = vand.u32 4294901760, %v5439_v61 }
 0x17a   :  { %2129 = vmatprep.subr.mxu1 %v7220_v2  ;;  %v5590_v12 = vsub.f32 %v5500_v17, %v7221_v24  ;;  %1868 = vmatprep.subr.mxu0 %v5105_v58  ;;  %v5604_v26 = vsub.f32 %v423_v57, %v5555_v56  ;;  %v7225_v24 = vand.u32 4294901760, %v5467_v36  ;;  %v2188_v43 = vand.u32 4294901760, %v5567_v4  ;;  %v418_v58 = vld [vmem:[#allocation8 + $0x148] sm:$0xff] }
 0x17b   :  { %7222 = vst [vmem:[#allocation35_spill] sm:$0xff] %v5597_v59  ;;  %2135 = vmatpush1.msra.mxu1 %v7223_v16  ;;  %1870 = vmatpush1.msra.mxu0 %v5161_v20  ;;  %v7227_v16 = vand.u32 4294901760, %v5508_v27  ;;  %v7229_v17 = vand.u32 4294901760, %v5417_v52  ;;  %v7230_v61 = vand.u32 4294901760, %v5536_v63  ;;  %v1808_v2 = vcombine.high %v5582_v51, %v5582_v51 }
 0x17c   :  { %7224 = vst [vmem:[#allocation42_spill] sm:$0xff] %v5604_v26  ;;  %v5609_v60 = vsub.f32 %v5467_v36, %v7225_v24  ;;  %2141 = vmatprep.subr.mxu1 %v7226_v48  ;;  %v417_v24 = vld [vmem:[#allocation8 + $0x140] sm:$0xff]  ;;  %v5623_v36 = vsub.f32 %v424_v33, %v5572_v7  ;;  %1872 = vmatprep.subr.mxu0 %v5177_v44  ;;  %v5633_v48 = vand.u32 4294901760, %v419_v55  ;;  %v7231_v33 = vand.u32 4294901760, %v5457_v10 }
 0x17d   :  { %v5619_v57 = vsub.f32 %v5508_v27, %v7227_v16  ;;  %2147 = vmatpush1.msra.mxu1 %v7229_v17  ;;  %v5631_v4 = vsub.f32 %v5536_v63, %v7230_v61  ;;  %1874 = vmatpush1.msra.mxu0 %v5189_v29  ;;  %v2200_v52 = vand.u32 4294901760, %v5590_v12  ;;  %v5643_v17 = vsub.f32 %v421_v21, %v5594_v37  ;;  %v413_v44 = vld [vmem:[#allocation8 + $0x120] sm:$0xff] }
 0x17e   :  { %7228 = vst [vmem:[#allocation37_spill] sm:$0xff] %v5623_v36  ;;  %2153 = vmatprep.subr.mxu1 %v7231_v33  ;;  %v5645_v27 = vand.u32 4294901760, %v420_v0  ;;  %1876 = vmatprep.subr.mxu0 %v5257_v45  ;;  %v7232_v16 = vand.u32 4294901760, %v5472_v5  ;;  %v2206_v63 = vand.u32 4294901760, %v5609_v60  ;;  %v7233_v29 = vand.u32 4294901760, %v5559_v47  ;;  %v415_v33 = vld [vmem:[#allocation8 + $0x130] sm:$0xff] }
 0x17f   :  { %v5657_v12 = vand.u32 4294901760, %v418_v58  ;;  %v5659_v21 = vand.u32 4294901760, %v417_v24  ;;  %1878 = vmatpush2.msra.mxu0 %v5266_v22  ;;  %v7236_v61 = vand.u32 4294901760, %v5495_v23  ;;  %v2218_v5 = vand.u32 4294901760, %v5619_v57  ;;  %v416_v45 = vld [vmem:[#allocation8 + $0x138] sm:$0xff] }
 0x180   :  { %2159 = vmatpush2.msra.mxu1 %v7232_v16  ;;  %v5655_v10 = vsub.f32 %v5559_v47, %v7233_v29  ;;  %v7237_v16 = vand.u32 4294901760, %v5544_v25  ;;  %v5672_v47 = vsub.f32 %v422_v6, %v5592_v28  ;;  %1880 = vmatprep.subr.mxu0 %v5280_v13  ;;  %v7239_v22 = vand.u32 4294901760, %v5486_v35 }
 0x181   :  { %7234 = vst [vmem:[#allocation44_spill] sm:$0xff] %v5657_v12  ;;  %7235 = vst [vmem:[#allocation43_spill] sm:$0xff] %v5659_v21  ;;  %2165 = vmatprep.subr.mxu1 %v7236_v61  ;;  %v2212_v23 = vand.u32 4294901760, %v5631_v4  ;;  %v5679_v57 = vsub.f32 %v419_v55, %v5633_v48  ;;  %v7241_v61 = vand.u32 4294901760, %v5570_v40  ;;  %v5686_v29 = vand.u32 4294901760, %v1808_v2  ;;  %1882 = vmatpush2.msra.mxu0 %v5295_v38  ;;  %v414_v4 = vld [vmem:[#allocation8 + $0x128] sm:$0xff] }
 0x182   :  { %v5668_v60 = vsub.f32 %v5544_v25, %v7237_v16  ;;  %7238 = vst [vmem:[#allocation52_spill] sm:$0xff] %v5672_v47  ;;  %2171 = vmatpush2.msra.mxu1 %v7239_v22  ;;  %v7243_v6 = vand.u32 4294901760, %v5597_v59  ;;  %v5694_v22 = vand.u32 4294901760, %v415_v33  ;;  %v5698_v25 = vsub.f32 %v420_v0, %v5645_v27  ;;  %1884 = vmatprep.subr.mxu0 %v5340_v53  ;;  %v411_v38 = vld [vmem:[#allocation8 + $0x110] sm:$0xff] }
 0x183   :  { %7240 = vst [vmem:[#allocation54_spill] sm:$0xff] %v5679_v57  ;;  %v5684_v16 = vsub.f32 %v5570_v40, %v7241_v61  ;;  %7242 = vst [vmem:[#allocation66_spill] sm:$0xff] %v5686_v29  ;;  %2177 = vmatprep.subr.mxu1 %v2176_v3  ;;  %v7246_v61 = vand.u32 4294901760, %v5531_v32  ;;  %v2224_v3 = vand.u32 4294901760, %v5655_v10  ;;  %v5705_v40 = vsub.f32 %v417_v24, %v5659_v21 }
 0x184   :  { %v5692_v35 = vsub.f32 %v5597_v59, %v7243_v6  ;;  %7244 = vst [vmem:[#allocation72_spill] sm:$0xff] %v5694_v22  ;;  %7245 = vst [vmem:[#allocation118_spill] sm:$0xff] %v5698_v25  ;;  %v5707_v6 = vand.u32 4294901760, %v416_v45  ;;  %v5709_v59 = vand.u32 4294901760, %v413_v44  ;;  %1886 = vmatpush2.msra.mxu0 %v5366_v19  ;;  %v2230_v0 = vand.u32 4294901760, %v5668_v60  ;;  %2341 = vmatprep.mubr.f32.mxu1 %v5686_v29 }
 0x185   :  { %2183 = vmatpush2.msra.mxu1 %v7246_v61  ;;  %v7248_v55 = vand.u32 4294901760, %v5623_v36  ;;  %v412_v61 = vld [vmem:[#allocation8 + $0x118] sm:$0xff]  ;;  %v5718_v10 = vsub.f32 %v418_v58, %v5657_v12  ;;  %1888 = vmatprep.subr.mxu0 %v5379_v15  ;;  %v7249_v24 = vand.u32 4294901760, %v5553_v49  ;;  %v2242_v19 = vand.u32 4294901760, %v5684_v16 }
 0x186   :  { %7247 = vst [vmem:[#allocation119_spill] sm:$0xff] %v5709_v59  ;;  %2189 = vmatprep.subr.mxu1 %v2188_v43  ;;  %v5724_v43 = vand.u32 4294901760, %v414_v4  ;;  %1890 = vmatpush2.msra.mxu0 %v5381_v46  ;;  %v2236_v58 = vand.u32 4294901760, %v5692_v35  ;;  %v5733_v32 = vsub.f32 %v415_v33, %v5694_v22  ;;  %v7251_v49 = vand.u32 4294901760, %v5604_v26  ;;  %v409_v35 = vld [vmem:[#allocation8 + $0x100] sm:$0xff] }
 0x187   :  { %v2247_v53 = vsub.f32 %v5623_v36, %v7248_v55  ;;  %2195 = vmatpush2.msra.mxu1 %v7249_v24  ;;  %v5728_v55 = vsub.f32 %v1808_v2, %v5686_v29  ;;  %v410_v36 = vld [vmem:[#allocation8 + $0x108] sm:$0xff]  ;;  %1892 = vmatprep.subr.mxu0 %v5447_v50  ;;  %v5741_v2 = vsub.f32 %v413_v44, %v5709_v59  ;;  %v5743_v60 = vand.u32 4294901760, %v412_v61 }
 0x188   :  { %7250 = vst [vmem:[#allocation120_spill] sm:$0xff] %v5724_v43  ;;  %2201 = vmatprep.subr.mxu1 %v2200_v52  ;;  %v2253_v16 = vsub.f32 %v5604_v26, %v7251_v49  ;;  %v5747_v33 = vsub.f32 %v416_v45, %v5707_v6  ;;  %1894 = vmatpush2.msra.mxu0 %v5426_v18  ;;  %v7252_v24 = vand.u32 4294901760, %v5672_v47  ;;  %v7253_v52 = vand.u32 4294901760, %v5643_v17  ;;  %v7286_v29 = vld [vmem:[#allocation46_spill] sm:$0xff] }
 0x189   :  { %2207 = vmatpush2.msra.mxu1 %v2206_v63  ;;  %v2248_v49 = vand.u32 4294901760, %v2247_v53  ;;  %v5753_v63 = vand.u32 4294901760, %v411_v38  ;;  %1896 = vmatprep.subr.mxu0 %v5459_v54  ;;  %v5760_v50 = vand.u32 4294901760, %v410_v36  ;;  %v5764_v53 = vsub.f32 %v414_v4, %v5724_v43 }
 0x18a   :  { %2213 = vmatprep.subr.mxu1 %v2212_v23  ;;  %v2259_v26 = vsub.f32 %v5672_v47, %v7252_v24  ;;  %v2265_v45 = vsub.f32 %v5643_v17, %v7253_v52  ;;  %1898 = vmatpush2.msra.mxu0 %v5461_v31  ;;  %v2254_v24 = vand.u32 4294901760, %v2253_v16  ;;  %v7254_v44 = vand.u32 4294901760, %v5698_v25 }
 0x18b   :  { %2219 = vmatpush2.msra.mxu1 %v2218_v5  ;;  %v5770_v5 = vand.u32 4294901760, %v409_v35  ;;  %1900 = vmatprep.subr.mxu0 %v5510_v34  ;;  %v7255_v52 = vand.u32 4294901760, %v5679_v57  ;;  %v5778_v23 = vand.u32 4294901760, %v5582_v51  ;;  %v5782_v16 = vsub.f32 %v412_v61, %v5743_v60 }
 0x18c   :  { %2225 = vmatprep.subr.mxu1 %v2224_v3  ;;  %v2271_v47 = vsub.f32 %v5698_v25, %v7254_v44  ;;  %1902 = vmatpush2.msra.mxu0 %v5497_v8  ;;  %v2260_v44 = vand.u32 4294901760, %v2259_v26  ;;  %v5786_v54 = vsub.f32 %v411_v38, %v5753_v63  ;;  %v2266_v3 = vand.u32 4294901760, %v2265_v45 }
 0x18d   :  { %2231 = vmatpush2.msra.mxu1 %v2230_v0  ;;  %v2277_v4 = vsub.f32 %v5679_v57, %v7255_v52  ;;  %7256 = vst [vmem:[#allocation121_spill] sm:$0xff] %v5778_v23  ;;  %v7257_v0 = vand.u32 4294901760, %v5718_v10  ;;  %1904 = vmatprep.subr.mxu0 %v5533_v62  ;;  %v7258_v61 = vand.u32 4294901760, %v5728_v55  ;;  %v5798_v26 = vsub.f32 %v410_v36, %v5760_v50 }
 0x18e   :  { %2237 = vmatprep.subr.mxu1 %v2236_v58  ;;  %1906 = vmatpush2.msra.mxu0 %v5523_v11  ;;  %v2272_v38 = vand.u32 4294901760, %v2271_v47  ;;  %v7259_v52 = vand.u32 4294901760, %v5705_v40  ;;  %v5811_v36 = vsub.f32 %v5582_v51, %v5778_v23  ;;  %v7261_v45 = vand.u32 4294901760, %v5733_v32 }
 0x18f   :  { %v2283_v25 = vsub.f32 %v5718_v10, %v7257_v0  ;;  %2243 = vmatpush2.msra.mxu1 %v2242_v19  ;;  %v1942_v57 = vsub.f32 %v5728_v55, %v7258_v61  ;;  %v5802_v0 = vsub.f32 %v409_v35, %v5770_v5  ;;  %1908 = vmatprep.subr.mxu0 %v5572_v7  ;;  %v2278_v61 = vand.u32 4294901760, %v2277_v4 }
 0x190   :  { %2249 = vmatprep.subr.mxu1 %v2248_v49  ;;  %v2289_v19 = vsub.f32 %v5705_v40, %v7259_v52  ;;  %v7260_v49 = vand.u32 4294901760, %v5747_v33  ;;  %1910 = vmatpush2.msra.mxu0 %v5555_v56  ;;  %v2301_v58 = vsub.f32 %v5733_v32, %v7261_v45  ;;  %v7262_v4 = vand.u32 4294901760, %v5764_v53 }
 0x191   :  { %2255 = vmatpush2.msra.mxu1 %v2254_v24  ;;  %v2284_v52 = vand.u32 4294901760, %v2283_v25  ;;  %1912 = vmatprep.subr.mxu0 %v5592_v28  ;;  %v1943_v51 = vand.u32 4294901760, %v1942_v57  ;;  %v7267_v57 = vand.u32 4294901760, %v5802_v0 }
 0x192   :  { %v2295_v47 = vsub.f32 %v5747_v33, %v7260_v49  ;;  %2261 = vmatprep.subr.mxu1 %v2260_v44  ;;  %v2307_v49 = vsub.f32 %v5764_v53, %v7262_v4  ;;  %1914 = vmatpush2.msra.mxu0 %v5594_v37  ;;  %v2290_v25 = vand.u32 4294901760, %v2289_v19  ;;  %v7263_v44 = vand.u32 4294901760, %v5741_v2 }
 0x193   :  { %2267 = vmatpush2.msra.mxu1 %v2266_v3  ;;  %1916 = vmatprep.subr.mxu0 %v5645_v27  ;;  %v7264_v4 = vand.u32 4294901760, %v5782_v16  ;;  %v7265_v19 = vand.u32 4294901760, %v5786_v54 }
 0x194   :  { %2273 = vmatprep.subr.mxu1 %v2272_v38  ;;  %v2313_v45 = vsub.f32 %v5741_v2, %v7263_v44  ;;  %v2296_v3 = vand.u32 4294901760, %v2295_v47  ;;  %1918 = vmatpush2.msra.mxu0 %v5633_v48  ;;  %v2302_v38 = vand.u32 4294901760, %v2301_v58  ;;  %v2308_v24 = vand.u32 4294901760, %v2307_v49 }
 0x195   :  { %2279 = vmatpush2.msra.mxu1 %v2278_v61  ;;  %v2319_v35 = vsub.f32 %v5782_v16, %v7264_v4  ;;  %v2325_v44 = vsub.f32 %v5786_v54, %v7265_v19  ;;  %1920 = vmatprep.subr.mxu0 %v5657_v12  ;;  %v7266_v61 = vand.u32 4294901760, %v5798_v26  ;;  %v2337_v58 = vsub.f32 %v5802_v0, %v7267_v57 }
 0x196   :  { %2285 = vmatprep.subr.mxu1 %v2284_v52  ;;  %1944 = vmatprep.mubr.f32.mxu0 %v1943_v51  ;;  %v2314_v4 = vand.u32 4294901760, %v2313_v45  ;;  %v7268_v52 = vand.u32 4294901760, %v5811_v36 }
 0x197   :  { %v2331_v47 = vsub.f32 %v5798_v26, %v7266_v61  ;;  %1922 = vmatpush2.msra.mxu0 %v5659_v21  ;;  %2291 = vmatpush2.msra.mxu1 %v2290_v25  ;;  %v2320_v51 = vand.u32 4294901760, %v2319_v35  ;;  %v2326_v49 = vand.u32 4294901760, %v2325_v44  ;;  %v2338_v45 = vand.u32 4294901760, %v2337_v58  ;;  %v7269_v35 = vld [vmem:[#allocation28_spill] sm:$0xff]  ;;  %v7274_v61 = vld [vmem:[#allocation34_spill] sm:$0xff] }
 0x198   :  { %1924 = vmatprep.subr.mxu0 %v5707_v6  ;;  %v1948_v19 = vsub.f32 %v5811_v36, %v7268_v52  ;;  %2297 = vmatprep.subr.mxu1 %v2296_v3  ;;  %v7271_v3 = vld [vmem:[#allocation32_spill] sm:$0xff] }
 0x199   :  { %1926 = vmatpush2.msra.mxu0 %v5694_v22  ;;  %2303 = vmatpush2.msra.mxu1 %v2302_v38  ;;  %v2332_v25 = vand.u32 4294901760, %v2331_v47  ;;  %v7272_v38 = vld [vmem:[#allocation31_spill] sm:$0xff]  ;;  %v7273_v44 = vld [vmem:[#allocation36_spill] sm:$0xff] }
 0x19a   :  { %1928 = vmatprep.subr.mxu0 %v5724_v43  ;;  %2309 = vmatprep.subr.mxu1 %v2308_v24  ;;  %v1949_v57 = vand.u32 4294901760, %v1948_v19  ;;  %v7270_v24 = vld [vmem:[#allocation26_spill] sm:$0xff]  ;;  %v7275_v47 = vld [vmem:[#allocation100_spill] sm:$0xff]  ;;  %v7279_v19 = vld [vmem:[#allocation23_spill] sm:$0xff] }
 0x19b   :  { %1930 = vmatpush2.msra.mxu0 %v5709_v59  ;;  %2315 = vmatpush2.msra.mxu1 %v2314_v4  ;;  %v7276_v4 = vld [vmem:[#allocation38_spill] sm:$0xff]  ;;  %v7277_v58 = vld [vmem:[#allocation24_spill] sm:$0xff] }
 0x19c   :  { %1932 = vmatprep.subr.mxu0 %v5743_v60  ;;  %2321 = vmatprep.subr.mxu1 %v2320_v51  ;;  %v7278_v52 = vld [vmem:[#allocation104_spill] sm:$0xff] }
 0x19d   :  { %1934 = vmatpush2.msra.mxu0 %v5753_v63  ;;  %2327 = vmatpush2.msra.mxu1 %v2326_v49  ;;  %v7280_v51 = vld [vmem:[#allocation40_spill] sm:$0xff]  ;;  %v7281_v49 = vld [vmem:[#allocation27_spill] sm:$0xff] }
 0x19e   :  { %1936 = vmatprep.subr.mxu0 %v5760_v50  ;;  %2333 = vmatprep.subr.mxu1 %v2332_v25  ;;  %v7282_v25 = vld [vmem:[#allocation107_spill] sm:$0xff] }
 0x19f   :  { %1938 = vmatpush2.msra.mxu0 %v5770_v5  ;;  %2339 = vmatpush2.msra.mxu1 %v2338_v45  ;;  %v7283_v45 = vld [vmem:[#allocation25_spill] sm:$0xff] }
 0x1a0   :  { %1950 = vmatmul.mubr.f32.vlgmr.msra.gmra.mxu0 %v1949_v57  ;;  %2351 = vmatprep.subr.mxu0 %v7269_v35  ;;  %v7284_v57 = vld [vmem:[#allocation106_spill] sm:$0xff] }
 0x1a1   :  { %2354 = vmatpush1.msra.mxu0 %v7270_v24  ;;  %2343 = vmatmul.mubr.f32.vlgmr.msra.gmra.mxu1 %v5778_v23  ;;  %v7285_v23 = vld [vmem:[#allocation29_spill] sm:$0xff] }
 0x1a2   :  { %2357 = vmatprep.subr.mxu0 %v7271_v3  ;;  %2553 = vmatprep.subr.mxu1 %v7113_v9 }
 0x1a3   :  { %2360 = vmatpush1.msra.mxu0 %v7272_v38  ;;  %2555 = vmatpush1.msra.mxu1 %v7116_v41 }
 0x1a4   :  { %2363 = vmatprep.subr.mxu0 %v7273_v44  ;;  %2557 = vmatprep.subr.mxu1 %v7120_v39  ;;  %v7289_v39 = vld [vmem:[#allocation94_spill] sm:$0xff] }
 0x1a5   :  { %2366 = vmatpush1.msra.mxu0 %v7274_v61  ;;  %2559 = vmatpush1.msra.mxu1 %v7123_v1  ;;  %v7287_v1 = vld [vmem:[#allocation30_spill] sm:$0xff] }
 0x1a6   :  { %2369 = vmatprep.subr.mxu0 %v7275_v47  ;;  %2561 = vmatprep.subr.mxu1 %v7277_v58  ;;  %v7288_v58 = vld [vmem:[#allocation111_spill] sm:$0xff] }
 0x1a7   :  { %2372 = vmatpush1.msra.mxu0 %v7276_v4  ;;  %2563 = vmatpush1.msra.mxu1 %v7279_v19  ;;  %v7290_v19 = vld [vmem:[#allocation39_spill] sm:$0xff] }
 0x1a8   :  { %2375 = vmatprep.subr.mxu0 %v7278_v52  ;;  %2565 = vmatprep.subr.mxu1 %v7281_v49  ;;  %v7292_v49 = vld [vmem:[#allocation48_spill] sm:$0xff] }
 0x1a9   :  { %2378 = vmatpush1.msra.mxu0 %v7280_v51  ;;  %2567 = vmatpush1.msra.mxu1 %v7283_v45  ;;  %v7291_v51 = vld [vmem:[#allocation98_spill] sm:$0xff]  ;;  %v7294_v45 = vld [vmem:[#allocation51_spill] sm:$0xff] }
 0x1aa   :  { %2381 = vmatprep.subr.mxu0 %v7282_v25  ;;  %2569 = vmatprep.subr.mxu1 %v7285_v23  ;;  %v7293_v25 = vld [vmem:[#allocation110_spill] sm:$0xff]  ;;  %v7296_v23 = vld [vmem:[#allocation56_spill] sm:$0xff] }
 0x1ab   :  { %2384 = vmatpush1.msra.mxu0 %v7284_v57  ;;  %2571 = vmatpush1.msra.mxu1 %v7287_v1  ;;  %v7295_v57 = vld [vmem:[#allocation102_spill] sm:$0xff]  ;;  %v7298_v1 = vld [vmem:[#allocation61_spill] sm:$0xff] }
 0x1ac   :  { %2387 = vmatprep.subr.mxu0 %v7286_v29  ;;  %2573 = vmatprep.subr.mxu1 %v7289_v39  ;;  %v7297_v29 = vld [vmem:[#allocation18_spill] sm:$0xff] }
 0x1ad   :  { %2390 = vmatpush1.msra.mxu0 %v7288_v58  ;;  %2575 = vmatpush1.msra.mxu1 %v7291_v51  ;;  %v7299_v39 = vld [vmem:[#allocation62_spill] sm:$0xff]  ;;  %v7301_v51 = vld [vmem:[#allocation67_spill] sm:$0xff] }
 0x1ae   :  { %2393 = vmatprep.subr.mxu0 %v7290_v19  ;;  %2577 = vmatprep.subr.mxu1 %v7293_v25  ;;  %v7300_v19 = vld [vmem:[#allocation41_spill] sm:$0xff] }
 0x1af   :  { %2396 = vmatpush1.msra.mxu0 %v7292_v49  ;;  %2579 = vmatpush1.msra.mxu1 %v7295_v57  ;;  %v7302_v49 = vld [vmem:[#allocation50_spill] sm:$0xff]  ;;  %v7303_v25 = vld [vmem:[#allocation57_spill] sm:$0xff] }
 0x1b0   :  { %2399 = vmatprep.subr.mxu0 %v7294_v45  ;;  %2581 = vmatprep.subr.mxu1 %v7297_v29  ;;  %v7304_v45 = vld [vmem:[#allocation45_spill] sm:$0xff]  ;;  %v7305_v57 = vld [vmem:[#allocation78_spill] sm:$0xff]  ;;  %v7307_v29 = vld [vmem:[#allocation59_spill] sm:$0xff] }
 0x1b1   :  { %2402 = vmatpush1.msra.mxu0 %v7296_v23  ;;  %2583 = vmatpush1.msra.mxu1 %v7176_v42  ;;  %v7306_v23 = vld [vmem:[#allocation47_spill] sm:$0xff]  ;;  %v7309_v42 = vld [vmem:[#allocation80_spill] sm:$0xff] }
 0x1b2   :  { %2405 = vmatprep.subr.mxu0 %v7298_v1  ;;  %2585 = vmatprep.subr.mxu1 %v7300_v19  ;;  %v7308_v1 = vld [vmem:[#allocation58_spill] sm:$0xff]  ;;  %v7311_v19 = vld [vmem:[#allocation63_spill] sm:$0xff] }
 0x1b3   :  { %2408 = vmatpush1.msra.mxu0 %v7299_v39  ;;  %2587 = vmatpush1.msra.mxu1 %v7302_v49  ;;  %v7310_v39 = vld [vmem:[#allocation49_spill] sm:$0xff]  ;;  %v7313_v49 = vld [vmem:[#allocation86_spill] sm:$0xff] }
 0x1b4   :  { %2411 = vmatprep.subr.mxu0 %v7301_v51  ;;  %2589 = vmatprep.subr.mxu1 %v7304_v45  ;;  %v7312_v51 = vld [vmem:[#allocation60_spill] sm:$0xff]  ;;  %v7314_v45 = vld [vmem:[#allocation65_spill] sm:$0xff] }
 0x1b5   :  { %2414 = vmatpush1.msra.mxu0 %v7303_v25  ;;  %2591 = vmatpush1.msra.mxu1 %v7306_v23  ;;  %v7316_v23 = vld [vmem:[#allocation88_spill] sm:$0xff] }
 0x1b6   :  { %2417 = vmatprep.subr.mxu0 %v7305_v57  ;;  %2593 = vmatprep.subr.mxu1 %v7308_v1  ;;  %v7315_v57 = vld [vmem:[#allocation55_spill] sm:$0xff]  ;;  %v7318_v1 = vld [vmem:[#allocation73_spill] sm:$0xff] }
 0x1b7   :  { %2420 = vmatpush1.msra.mxu0 %v7307_v29  ;;  %2595 = vmatpush1.msra.mxu1 %v7310_v39  ;;  %v7317_v29 = vld [vmem:[#allocation64_spill] sm:$0xff] }
 0x1b8   :  { %2423 = vmatprep.subr.mxu0 %v7309_v42  ;;  %2597 = vmatprep.subr.mxu1 %v7312_v51  ;;  %v7319_v42 = vld [vmem:[#allocation68_spill] sm:$0xff]  ;;  %v7321_v51 = vld [vmem:[#allocation82_spill] sm:$0xff] }
 0x1b9   :  { %2426 = vmatpush1.msra.mxu0 %v7311_v19  ;;  %2599 = vmatpush1.msra.mxu1 %v7207_v14  ;;  %v7320_v39 = vld [vmem:[#allocation92_spill] sm:$0xff]  ;;  %v7323_v14 = vld [vmem:[#allocation87_spill] sm:$0xff] }
 0x1ba   :  { %2429 = vmatprep.subr.mxu0 %v7313_v49  ;;  %2601 = vmatprep.subr.mxu1 %v7315_v57  ;;  %v7322_v49 = vld [vmem:[#allocation74_spill] sm:$0xff]  ;;  %v7324_v57 = vld [vmem:[#allocation81_spill] sm:$0xff] }
 0x1bb   :  { %2432 = vmatpush1.msra.mxu0 %v7314_v45  ;;  %2603 = vmatpush1.msra.mxu1 %v7317_v29  ;;  %v7326_v29 = vld [vmem:[#allocation91_spill] sm:$0xff] }
 0x1bc   :  { %2435 = vmatprep.subr.mxu0 %v7316_v23  ;;  %2605 = vmatprep.subr.mxu1 %v7319_v42  ;;  %v7325_v23 = vld [vmem:[#allocation69_spill] sm:$0xff]  ;;  %v7328_v42 = vld [vmem:[#allocation90_spill] sm:$0xff] }
 0x1bd   :  { %2438 = vmatpush1.msra.mxu0 %v7318_v1  ;;  %2607 = vmatpush1.msra.mxu1 %v7219_v30  ;;  %v7327_v1 = vld [vmem:[#allocation71_spill] sm:$0xff] }
 0x1be   :  { %2441 = vmatprep.subr.mxu0 %v7320_v39  ;;  %2609 = vmatprep.subr.mxu1 %v7322_v49  ;;  %v7329_v39 = vld [vmem:[#allocation75_spill] sm:$0xff]  ;;  %v7332_v49 = vld [vmem:[#allocation93_spill] sm:$0xff] }
 0x1bf   :  { %2444 = vmatpush1.msra.mxu0 %v7321_v51  ;;  %2611 = vmatpush1.msra.mxu1 %v5161_v20  ;;  %v7330_v30 = vld [vmem:[#allocation99_spill] sm:$0xff]  ;;  %v7331_v51 = vld [vmem:[#allocation84_spill] sm:$0xff]  ;;  %v7333_v20 = vld [vmem:[#allocation109_spill] sm:$0xff] }
 0x1c0   :  { %2447 = vmatprep.subr.mxu0 %v7323_v14  ;;  %2613 = vmatprep.subr.mxu1 %v7325_v23  ;;  %v7335_v23 = vld [vmem:[#allocation95_spill] sm:$0xff] }
 0x1c1   :  { %2450 = vmatpush2.msra.mxu0 %v7324_v57  ;;  %2615 = vmatpush1.msra.mxu1 %v7327_v1  ;;  %v7334_v57 = vld [vmem:[#allocation79_spill] sm:$0xff]  ;;  %v7337_v1 = vld [vmem:[#allocation116_spill] sm:$0xff] }
 0x1c2   :  { %2453 = vmatprep.subr.mxu0 %v7326_v29  ;;  %2617 = vmatprep.subr.mxu1 %v7329_v39  ;;  %v7336_v29 = vld [vmem:[#allocation83_spill] sm:$0xff]  ;;  %v7339_v39 = vld [vmem:[#allocation105_spill] sm:$0xff] }
 0x1c3   :  { %2456 = vmatpush2.msra.mxu0 %v7328_v42  ;;  %2619 = vmatpush2.msra.mxu1 %v7331_v51  ;;  %v7338_v42 = vld [vmem:[#allocation85_spill] sm:$0xff]  ;;  %v7340_v51 = vld [vmem:[#allocation108_spill] sm:$0xff] }
 0x1c4   :  { %2459 = vmatprep.subr.mxu0 %v7330_v30  ;;  %2621 = vmatprep.subr.mxu1 %v5280_v13  ;;  %v7341_v13 = vld [vmem:[#allocation20_spill] sm:$0xff] }
 0x1c5   :  { %2462 = vmatpush2.msra.mxu0 %v7332_v49  ;;  %2623 = vmatpush2.msra.mxu1 %v7334_v57  ;;  %v7343_v57 = vld [vmem:[#allocation113_spill] sm:$0xff] }
 0x1c6   :  { %2465 = vmatprep.subr.mxu0 %v7333_v20  ;;  %2625 = vmatprep.subr.mxu1 %v7336_v29  ;;  %v7342_v20 = vld [vmem:[#allocation101_spill] sm:$0xff]  ;;  %v7344_v29 = vld [vmem:[#allocation112_spill] sm:$0xff] }
 0x1c7   :  { %2468 = vmatpush2.msra.mxu0 %v7335_v23  ;;  %2627 = vmatpush2.msra.mxu1 %v7338_v42  ;;  %v7346_v42 = vld [vmem:[#allocation35_spill] sm:$0xff] }
 0x1c8   :  { %2471 = vmatprep.subr.mxu0 %v7337_v1  ;;  %2629 = vmatprep.subr.mxu1 %v5379_v15  ;;  %v7345_v1 = vld [vmem:[#allocation117_spill] sm:$0xff]  ;;  %v7347_v15 = vld [vmem:[#allocation114_spill] sm:$0xff] }
 0x1c9   :  { %2474 = vmatpush2.msra.mxu0 %v7339_v39  ;;  %2631 = vmatpush2.msra.mxu1 %v5381_v46  ;;  %v7348_v46 = vld [vmem:[#allocation37_spill] sm:$0xff] }
 0x1ca   :  { %2477 = vmatprep.subr.mxu0 %v7340_v51  ;;  %2633 = vmatprep.subr.mxu1 %v7342_v20  ;;  %v7349_v20 = vld [vmem:[#allocation42_spill] sm:$0xff] }
 0x1cb   :  { %2480 = vmatpush2.msra.mxu0 %v7341_v13  ;;  %2635 = vmatpush2.msra.mxu1 %v5426_v18  ;;  %v7350_v18 = vld [vmem:[#allocation52_spill] sm:$0xff] }
 0x1cc   :  { %2483 = vmatprep.subr.mxu0 %v7343_v57  ;;  %2637 = vmatprep.subr.mxu1 %v7345_v1 }
 0x1cd   :  { %2486 = vmatpush2.msra.mxu0 %v7344_v29  ;;  %2639 = vmatpush2.msra.mxu1 %v5461_v31  ;;  %v7351_v31 = vld [vmem:[#allocation118_spill] sm:$0xff] }
 0x1ce   :  { %2489 = vmatprep.subr.mxu0 %v7346_v42  ;;  %2641 = vmatprep.subr.mxu1 %v5510_v34  ;;  %v7352_v34 = vld [vmem:[#allocation54_spill] sm:$0xff] }
 0x1cf   :  { %2492 = vmatpush2.msra.mxu0 %v7347_v15  ;;  %2643 = vmatpush2.msra.mxu1 %v5497_v8 }
 0x1d0   :  { %2495 = vmatprep.subr.mxu0 %v7348_v46  ;;  %2645 = vmatprep.subr.mxu1 %v5533_v62 }
 0x1d1   :  { %2498 = vmatpush2.msra.mxu0 %v7349_v20  ;;  %2647 = vmatpush2.msra.mxu1 %v5523_v11 }
 0x1d2   :  { %2501 = vmatprep.subr.mxu0 %v7350_v18  ;;  %2649 = vmatprep.subr.mxu1 %v5572_v7 }
 0x1d3   :  { %2504 = vmatpush2.msra.mxu0 %v5643_v17  ;;  %2651 = vmatpush2.msra.mxu1 %v5555_v56 }
 0x1d4   :  { %2507 = vmatprep.subr.mxu0 %v7351_v31  ;;  %2653 = vmatprep.subr.mxu1 %v5592_v28 }
 0x1d5   :  { %2510 = vmatpush2.msra.mxu0 %v7352_v34  ;;  %2655 = vmatpush2.msra.mxu1 %v5594_v37 }
 0x1d6   :  { %2513 = vmatprep.subr.mxu0 %v5718_v10  ;;  %2657 = vmatprep.subr.mxu1 %v5645_v27 }
 0x1d7   :  { %2516 = vmatpush2.msra.mxu0 %v5705_v40  ;;  %2659 = vmatpush2.msra.mxu1 %v5633_v48 }
 0x1d8   :  { %2519 = vmatprep.subr.mxu0 %v5747_v33  ;;  %2661 = vmatprep.subr.mxu1 %v5657_v12  ;;  %v7354_v12 = vand.u32 4294901760, %v7270_v24  ;;  %v7364_v24 = vld [vmem:[#allocation40_spill] sm:$0xff] }
 0x1d9   :  { %2522 = vmatpush2.msra.mxu0 %v5733_v32  ;;  %2543 = vmatprep.mubr.f32.mxu0 %v5728_v55 }
 0x1da   :  { %2525 = vmatprep.subr.mxu0 %v5764_v53  ;;  %2663 = vmatpush2.msra.mxu1 %v5659_v21  ;;  %v7353_v21 = vand.u32 4294901760, %v7269_v35  ;;  %v7361_v35 = vand.u32 4294901760, %v5811_v36 }
 0x1db   :  { %2528 = vmatpush2.msra.mxu0 %v5741_v2  ;;  %2665 = vmatprep.subr.mxu1 %v5707_v6 }
 0x1dc   :  { %2531 = vmatprep.subr.mxu0 %v5782_v16  ;;  %2667 = vmatpush2.msra.mxu1 %v5694_v22  ;;  %v7355_v22 = vand.u32 4294901760, %v7271_v3  ;;  %v7365_v3 = vand.u32 4294901760, %v7364_v24 }
 0x1dd   :  { %2534 = vmatpush2.msra.mxu0 %v5786_v54  ;;  %2669 = vmatprep.subr.mxu1 %v5724_v43  ;;  %v7356_v43 = vand.u32 4294901760, %v7272_v38  ;;  %v7367_v38 = vld [vmem:[#allocation107_spill] sm:$0xff] }
 0x1de   :  { %2537 = vmatprep.subr.mxu0 %v5798_v26  ;;  %2671 = vmatpush2.msra.mxu1 %v5709_v59  ;;  %v7357_v59 = vand.u32 4294901760, %v7273_v44  ;;  %v7368_v44 = vand.u32 4294901760, %v7367_v38 }
 0x1df   :  { %2540 = vmatpush2.msra.mxu0 %v5802_v0  ;;  %2673 = vmatprep.subr.mxu1 %v5743_v60 }
 0x1e0   :  { %2546 = vmatmul.mubr.f32.vlgmr.msra.gmra.mxu0 %v5811_v36  ;;  %2696 = vmatprep.subr.mxu0 %v7353_v21  ;;  %v7358_v21 = vand.u32 4294901760, %v7274_v61  ;;  %v7369_v36 = vld [vmem:[#allocation21_spill] sm:$0xff]  ;;  %v7370_v61 = vld [vmem:[#allocation106_spill] sm:$0xff] }
 0x1e1   :  { %2700 = vmatpush1.msra.mxu0 %v7354_v12  ;;  %2675 = vmatpush2.msra.mxu1 %v5753_v63  ;;  %v7359_v12 = vand.u32 4294901760, %v5728_v55  ;;  %v7366_v55 = vld [vmem:[#allocation22_spill] sm:$0xff] }
 0x1e2   :  { %2704 = vmatprep.subr.mxu0 %v7355_v22  ;;  %2677 = vmatprep.subr.mxu1 %v5760_v50  ;;  %v7360_v22 = vand.u32 4294901760, %v7275_v47  ;;  %v7371_v47 = vand.u32 4294901760, %v7370_v61  ;;  %v7389_v61 = vld [vmem:[#allocation94_spill] sm:$0xff] }
 0x1e3   :  { %2708 = vmatpush1.msra.mxu0 %v7356_v43  ;;  %2679 = vmatpush2.msra.mxu1 %v5770_v5  ;;  %v7362_v43 = vand.u32 4294901760, %v7276_v4  ;;  %v7372_v4 = vld [vmem:[#allocation24_spill] sm:$0xff] }
 0x1e4   :  { %2712 = vmatprep.subr.mxu0 %v7357_v59  ;;  %2683 = vmatprep.mubr.f32.mxu1 %v7359_v12  ;;  %v7363_v59 = vand.u32 4294901760, %v7278_v52  ;;  %v7377_v12 = vld [vmem:[#allocation27_spill] sm:$0xff] }
 0x1e5   :  { %2716 = vmatpush1.msra.mxu0 %v7358_v21  ;;  %2687 = vmatmul.mubr.f32.vlgmr.msra.gmra.mxu1 %v7361_v35  ;;  %v7375_v21 = vld [vmem:[#allocation23_spill] sm:$0xff] }
 0x1e6   :  { %2720 = vmatprep.subr.mxu0 %v7360_v22  ;;  %2959 = vmatprep.subr.mxu1 %v7113_v9  ;;  %v7373_v9 = vld [vmem:[#allocation46_spill] sm:$0xff]  ;;  %v7378_v22 = vld [vmem:[#allocation39_spill] sm:$0xff] }
 0x1e7   :  { %2724 = vmatpush1.msra.mxu0 %v7362_v43  ;;  %2961 = vmatpush1.msra.mxu1 %v7116_v41  ;;  %v7374_v52 = vand.u32 4294901760, %v7373_v9  ;;  %v7376_v41 = vand.u32 4294901760, %v7288_v58  ;;  %v7379_v35 = vand.u32 4294901760, %v7378_v22  ;;  %v7380_v43 = vld [vmem:[#allocation25_spill] sm:$0xff]  ;;  %v7392_v9 = vld [vmem:[#allocation98_spill] sm:$0xff] }
 0x1e8   :  { %2728 = vmatprep.subr.mxu0 %v7363_v59  ;;  %2963 = vmatprep.subr.mxu1 %v7366_v55  ;;  %v7381_v59 = vld [vmem:[#allocation48_spill] sm:$0xff]  ;;  %v7384_v55 = vld [vmem:[#allocation51_spill] sm:$0xff] }
 0x1e9   :  { %2732 = vmatpush1.msra.mxu0 %v7365_v3  ;;  %2965 = vmatpush1.msra.mxu1 %v7369_v36  ;;  %v7382_v24 = vand.u32 4294901760, %v7381_v59  ;;  %v7383_v3 = vld [vmem:[#allocation29_spill] sm:$0xff]  ;;  %v7385_v38 = vand.u32 4294901760, %v7384_v55  ;;  %v7387_v36 = vld [vmem:[#allocation56_spill] sm:$0xff]  ;;  %v7400_v59 = vld [vmem:[#allocation18_spill] sm:$0xff] }
 0x1ea   :  { %2736 = vmatprep.subr.mxu0 %v7368_v44  ;;  %2967 = vmatprep.subr.mxu1 %v7372_v4  ;;  %v7386_v44 = vld [vmem:[#allocation30_spill] sm:$0xff]  ;;  %v7388_v58 = vand.u32 4294901760, %v7387_v36  ;;  %v7403_v55 = vld [vmem:[#allocation33_spill] sm:$0xff] }
 0x1eb   :  { %2740 = vmatpush1.msra.mxu0 %v7371_v47  ;;  %2969 = vmatpush1.msra.mxu1 %v7375_v21  ;;  %v7390_v47 = vld [vmem:[#allocation61_spill] sm:$0xff] }
 0x1ec   :  { %2744 = vmatprep.subr.mxu0 %v7374_v52  ;;  %2971 = vmatprep.subr.mxu1 %v7377_v12  ;;  %v7391_v4 = vand.u32 4294901760, %v7390_v47  ;;  %v7393_v52 = vld [vmem:[#allocation62_spill] sm:$0xff]  ;;  %v7396_v12 = vld [vmem:[#allocation67_spill] sm:$0xff]  ;;  %v7406_v36 = vld [vmem:[#allocation41_spill] sm:$0xff] }
 0x1ed   :  { %2748 = vmatpush1.msra.mxu0 %v7376_v41  ;;  %2973 = vmatpush1.msra.mxu1 %v7380_v43  ;;  %v7394_v21 = vand.u32 4294901760, %v7393_v52  ;;  %v7395_v41 = vld [vmem:[#allocation110_spill] sm:$0xff]  ;;  %v7397_v22 = vand.u32 4294901760, %v7396_v12  ;;  %v7399_v43 = vand.u32 4294901760, %v7303_v25  ;;  %v7410_v25 = vand.u32 4294901760, %v7311_v19 }
 0x1ee   :  { %2752 = vmatprep.subr.mxu0 %v7379_v35  ;;  %2975 = vmatprep.subr.mxu1 %v7383_v3  ;;  %v7398_v35 = vld [vmem:[#allocation102_spill] sm:$0xff] }
 0x1ef   :  { %2756 = vmatpush1.msra.mxu0 %v7382_v24  ;;  %2977 = vmatpush1.msra.mxu1 %v7386_v44  ;;  %v7401_v24 = vld [vmem:[#allocation78_spill] sm:$0xff] }
 0x1f0   :  { %2760 = vmatprep.subr.mxu0 %v7385_v38  ;;  %2979 = vmatprep.subr.mxu1 %v7389_v61  ;;  %v7402_v3 = vand.u32 4294901760, %v7401_v24  ;;  %v7404_v38 = vld [vmem:[#allocation59_spill] sm:$0xff]  ;;  %v7409_v47 = vld [vmem:[#allocation50_spill] sm:$0xff]  ;;  %v7422_v24 = vld [vmem:[#allocation60_spill] sm:$0xff] }
 0x1f1   :  { %2764 = vmatpush1.msra.mxu0 %v7388_v58  ;;  %2981 = vmatpush1.msra.mxu1 %v7392_v9  ;;  %v7405_v44 = vand.u32 4294901760, %v7404_v38  ;;  %v7407_v58 = vld [vmem:[#allocation80_spill] sm:$0xff]  ;;  %v7412_v9 = vld [vmem:[#allocation86_spill] sm:$0xff]  ;;  %v7425_v38 = vld [vmem:[#allocation53_spill] sm:$0xff] }
 0x1f2   :  { %2768 = vmatprep.subr.mxu0 %v7391_v4  ;;  %2983 = vmatprep.subr.mxu1 %v7395_v41  ;;  %v7408_v61 = vand.u32 4294901760, %v7407_v58  ;;  %v7411_v4 = vld [vmem:[#allocation45_spill] sm:$0xff]  ;;  %v7413_v52 = vand.u32 4294901760, %v7412_v9  ;;  %v7415_v41 = vand.u32 4294901760, %v7314_v45  ;;  %v7416_v12 = vld [vmem:[#allocation58_spill] sm:$0xff]  ;;  %v7429_v58 = vand.u32 4294901760, %v7323_v14 }
 0x1f3   :  { %2772 = vmatpush1.msra.mxu0 %v7394_v21  ;;  %2985 = vmatpush1.msra.mxu1 %v7398_v35  ;;  %v7414_v21 = vld [vmem:[#allocation47_spill] sm:$0xff]  ;;  %v7440_v14 = vand.u32 4294901760, %v7330_v30 }
 0x1f4   :  { %2776 = vmatprep.subr.mxu0 %v7397_v22  ;;  %2987 = vmatprep.subr.mxu1 %v7400_v59  ;;  %v7417_v22 = vld [vmem:[#allocation88_spill] sm:$0xff]  ;;  %v7420_v59 = vld [vmem:[#allocation73_spill] sm:$0xff]  ;;  %v7434_v9 = vld [vmem:[#allocation91_spill] sm:$0xff] }
 0x1f5   :  { %2780 = vmatpush1.msra.mxu0 %v7399_v43  ;;  %2989 = vmatpush1.msra.mxu1 %v7403_v55  ;;  %v7418_v35 = vand.u32 4294901760, %v7417_v22  ;;  %v7419_v43 = vld [vmem:[#allocation49_spill] sm:$0xff]  ;;  %v7421_v19 = vand.u32 4294901760, %v7420_v59  ;;  %v7439_v22 = vld [vmem:[#allocation74_spill] sm:$0xff] }
 0x1f6   :  { %2784 = vmatprep.subr.mxu0 %v7402_v3  ;;  %2991 = vmatprep.subr.mxu1 %v7406_v36  ;;  %v7423_v3 = vld [vmem:[#allocation92_spill] sm:$0xff]  ;;  %v7428_v36 = vld [vmem:[#allocation55_spill] sm:$0xff]  ;;  %v7443_v59 = vld [vmem:[#allocation69_spill] sm:$0xff] }
 0x1f7   :  { %2788 = vmatpush1.msra.mxu0 %v7405_v44  ;;  %2993 = vmatpush1.msra.mxu1 %v7409_v47  ;;  %v7424_v55 = vand.u32 4294901760, %v7423_v3  ;;  %v7426_v44 = vld [vmem:[#allocation82_spill] sm:$0xff]  ;;  %v7431_v47 = vld [vmem:[#allocation81_spill] sm:$0xff]  ;;  %v7446_v3 = vld [vmem:[#allocation71_spill] sm:$0xff] }
 0x1f8   :  { %2792 = vmatprep.subr.mxu0 %v7408_v61  ;;  %2995 = vmatprep.subr.mxu1 %v7411_v4  ;;  %v7427_v45 = vand.u32 4294901760, %v7426_v44  ;;  %v7430_v61 = vld [vmem:[#allocation64_spill] sm:$0xff] }
 0x1f9   :  { %2796 = vmatpush1.msra.mxu0 %v7410_v25  ;;  %2997 = vmatpush1.msra.mxu1 %v7414_v21  ;;  %v7432_v25 = vand.u32 4294901760, %v7431_v47  ;;  %v7433_v4 = vld [vmem:[#allocation68_spill] sm:$0xff]  ;;  %v7436_v21 = vld [vmem:[#allocation70_spill] sm:$0xff]  ;;  %v7457_v47 = vld [vmem:[#allocation83_spill] sm:$0xff] }
 0x1fa   :  { %2800 = vmatprep.subr.mxu0 %v7413_v52  ;;  %2999 = vmatprep.subr.mxu1 %v7416_v12  ;;  %v7435_v52 = vand.u32 4294901760, %v7434_v9  ;;  %v7449_v44 = vld [vmem:[#allocation116_spill] sm:$0xff] }
 0x1fb   :  { %2804 = vmatpush1.msra.mxu0 %v7415_v41  ;;  %3001 = vmatpush1.msra.mxu1 %v7419_v43  ;;  %v7437_v41 = vld [vmem:[#allocation90_spill] sm:$0xff]  ;;  %v7442_v43 = vand.u32 4294901760, %v7332_v49  ;;  %v7450_v30 = vand.u32 4294901760, %v7449_v44  ;;  %v7452_v49 = vand.u32 4294901760, %v7339_v39  ;;  %v7460_v39 = vand.u32 4294901760, %v7344_v29  ;;  %v7461_v9 = vld [vmem:[#allocation96_spill] sm:$0xff] }
 0x1fc   :  { %2808 = vmatprep.subr.mxu0 %v7418_v35  ;;  %3003 = vmatprep.subr.mxu1 %v7422_v24  ;;  %v7438_v12 = vand.u32 4294901760, %v7437_v41  ;;  %v7441_v35 = vld [vmem:[#allocation76_spill] sm:$0xff]  ;;  %v7467_v41 = vld [vmem:[#allocation97_spill] sm:$0xff]  ;;  %v7468_v29 = vand.u32 4294901760, %v7349_v20  ;;  %v7474_v20 = vand.u32 4294901760, %v7352_v34  ;;  %v7480_v34 = vand.u32 4294901760, %v5741_v2  ;;  %v1049_v2 = vpop.f32.mrf.mxu1 }
 0x1fd   :  { %2812 = vmatpush1.msra.mxu0 %v7421_v19  ;;  %3005 = vmatpush1.msra.mxu1 %v7425_v38  ;;  %v7444_v19 = vld [vmem:[#allocation109_spill] sm:$0xff]  ;;  %v7448_v38 = vld [vmem:[#allocation75_spill] sm:$0xff] }
 0x1fe   :  { %2816 = vmatprep.subr.mxu0 %v7424_v55  ;;  %3007 = vmatprep.subr.mxu1 %v7428_v36  ;;  %v7445_v24 = vand.u32 4294901760, %v7444_v19  ;;  %v7447_v55 = vand.u32 4294901760, %v7335_v23  ;;  %v7453_v36 = vld [vmem:[#allocation77_spill] sm:$0xff]  ;;  %v7456_v23 = vand.u32 4294901760, %v7341_v13  ;;  %v7464_v13 = vand.u32 4294901760, %v7347_v15 }
 0x1ff   :  { %2820 = vmatpush1.msra.mxu0 %v7427_v45  ;;  %3009 = vmatpush1.msra.mxu1 %v7430_v61  ;;  %v7451_v45 = vld [vmem:[#allocation84_spill] sm:$0xff]  ;;  %v7455_v61 = vld [vmem:[#allocation79_spill] sm:$0xff]  ;;  %v7471_v15 = vand.u32 4294901760, %v5643_v17 }
 0x200   :  { %2824 = vmatprep.subr.mxu0 %v7429_v58  ;;  %3011 = vmatprep.subr.mxu1 %v7433_v4  ;;  %v7454_v58 = vand.u32 4294901760, %v7340_v51  ;;  %v7459_v4 = vld [vmem:[#allocation85_spill] sm:$0xff]  ;;  %v7462_v51 = vand.u32 4294901760, %v7346_v42  ;;  %v7469_v42 = vand.u32 4294901760, %v7350_v18  ;;  %v7476_v18 = vand.u32 4294901760, %v5705_v40  ;;  %v7487_v17 = vld [vmem:[#allocation43_spill] sm:$0xff] }
 0x201   :  { %2828 = vmatpush2.msra.mxu0 %v7432_v25  ;;  %3013 = vmatpush1.msra.mxu1 %v7436_v21  ;;  %v7458_v25 = vand.u32 4294901760, %v7343_v57  ;;  %v7465_v21 = vld [vmem:[#allocation101_spill] sm:$0xff]  ;;  %v7466_v57 = vand.u32 4294901760, %v7348_v46  ;;  %v7473_v46 = vand.u32 4294901760, %v7351_v31  ;;  %v7477_v31 = vand.u32 4294901760, %v5747_v33 }
 0x202   :  { %2832 = vmatprep.subr.mxu0 %v7435_v52  ;;  %3015 = vmatprep.subr.mxu1 %v7439_v22  ;;  %v7463_v52 = vld [vmem:[#allocation89_spill] sm:$0xff]  ;;  %v7472_v22 = vld [vmem:[#allocation19_spill] sm:$0xff]  ;;  %v7484_v40 = vand.u32 4294901760, %v5798_v26 }
 0x203   :  { %2836 = vmatpush2.msra.mxu0 %v7438_v12  ;;  %3017 = vmatpush1.msra.mxu1 %v7441_v35  ;;  %v7470_v12 = vld [vmem:[#allocation103_spill] sm:$0xff] }
 0x204   :  { %2840 = vmatprep.subr.mxu0 %v7440_v14  ;;  %3019 = vmatprep.subr.mxu1 %v7443_v59 }
 0x205   :  { %2844 = vmatpush2.msra.mxu0 %v7442_v43  ;;  %3021 = vmatpush1.msra.mxu1 %v7446_v3 }
 0x206   :  { %2848 = vmatprep.subr.mxu0 %v7445_v24  ;;  %3023 = vmatprep.subr.mxu1 %v7448_v38 }
 0x207   :  { %2852 = vmatpush2.msra.mxu0 %v7447_v55  ;;  %3025 = vmatpush2.msra.mxu1 %v7451_v45 }
 0x208   :  { %2856 = vmatprep.subr.mxu0 %v7450_v30  ;;  %3027 = vmatprep.subr.mxu1 %v7453_v36 }
 0x209   :  { %2860 = vmatpush2.msra.mxu0 %v7452_v49  ;;  %3029 = vmatpush2.msra.mxu1 %v7455_v61 }
 0x20a   :  { %2864 = vmatprep.subr.mxu0 %v7454_v58  ;;  %3031 = vmatprep.subr.mxu1 %v7457_v47 }
 0x20b   :  { %2868 = vmatpush2.msra.mxu0 %v7456_v23  ;;  %3033 = vmatpush2.msra.mxu1 %v7459_v4 }
 0x20c   :  { %2872 = vmatprep.subr.mxu0 %v7458_v25  ;;  %3035 = vmatprep.subr.mxu1 %v7461_v9 }
 0x20d   :  { %2876 = vmatpush2.msra.mxu0 %v7460_v39  ;;  %3037 = vmatpush2.msra.mxu1 %v7463_v52 }
 0x20e   :  { %2880 = vmatprep.subr.mxu0 %v7462_v51  ;;  %3039 = vmatprep.subr.mxu1 %v7465_v21 }
 0x20f   :  { %2884 = vmatpush2.msra.mxu0 %v7464_v13  ;;  %3041 = vmatpush2.msra.mxu1 %v7467_v41 }
 0x210   :  { %2888 = vmatprep.subr.mxu0 %v7466_v57  ;;  %3043 = vmatprep.subr.mxu1 %v7345_v1  ;;  %v7475_v1 = vand.u32 4294901760, %v5718_v10  ;;  %v656_v10 = vpop.f32.mrf.mxu0 }
 0x211   :  { %2892 = vmatpush2.msra.mxu0 %v7468_v29  ;;  %3045 = vmatpush2.msra.mxu1 %v7470_v12  ;;  %v3096_v12 = vstv %s3232_s29 }
 0x212   :  { %2896 = vmatprep.subr.mxu0 %v7469_v42  ;;  %3047 = vmatprep.subr.mxu1 %v7472_v22 }
 0x213   :  { %2900 = vmatpush2.msra.mxu0 %v7471_v15  ;;  %3049 = vmatpush2.msra.mxu1 %v5497_v8  ;;  %v7478_v8 = vand.u32 4294901760, %v5733_v32  ;;  %v7491_v32 = vld [vmem:[#allocation119_spill] sm:$0xff] }
 0x214   :  { %2904 = vmatprep.subr.mxu0 %v7473_v46  ;;  %3051 = vmatprep.subr.mxu1 %v5533_v62  ;;  %v7479_v62 = vand.u32 4294901760, %v5764_v53  ;;  %v1051_v53 = vpop.f32.mrf.mxu1 }
 0x215   :  { %2908 = vmatpush2.msra.mxu0 %v7474_v20  ;;  %3053 = vmatpush2.msra.mxu1 %v5523_v11  ;;  %v7482_v11 = vand.u32 4294901760, %v5786_v54  ;;  %v7490_v54 = vld [vmem:[#allocation120_spill] sm:$0xff] }
 0x216   :  { %2912 = vmatprep.subr.mxu0 %v7475_v1  ;;  %3055 = vmatprep.subr.mxu1 %v5572_v7  ;;  %v7481_v7 = vand.u32 4294901760, %v5782_v16  ;;  %v1393_v26 = vpop.f32.mrf.mxu1 }
 0x217   :  { %2916 = vmatpush2.msra.mxu0 %v7476_v18  ;;  %3057 = vmatpush2.msra.mxu1 %v5555_v56  ;;  %v7483_v56 = vld [vmem:[#allocation44_spill] sm:$0xff] }
 0x218   :  { %2920 = vmatprep.subr.mxu0 %v7477_v31  ;;  %3059 = vmatprep.subr.mxu1 %v5592_v28  ;;  %v7485_v28 = vld [vmem:[#allocation66_spill] sm:$0xff]  ;;  %v1395_v14 = vpop.f32.mrf.mxu1 }
 0x219   :  { %2924 = vmatpush2.msra.mxu0 %v7478_v8  ;;  %3061 = vmatpush2.msra.mxu1 %v5594_v37  ;;  %v7486_v37 = vand.u32 4294901760, %v5802_v0 }
 0x21a   :  { %2928 = vmatprep.subr.mxu0 %v7479_v62  ;;  %3063 = vmatprep.subr.mxu1 %v5645_v27  ;;  %v7488_v27 = vld [vmem:[#allocation121_spill] sm:$0xff]  ;;  %v1795_v43 = vpop.f32.mrf.mxu1 }
 0x21b   :  { %2932 = vmatpush2.msra.mxu0 %v7480_v34  ;;  %3065 = vmatpush2.msra.mxu1 %v5633_v48  ;;  %v7489_v48 = vld [vmem:[#allocation72_spill] sm:$0xff] }
 0x21c   :  { %2936 = vmatprep.subr.mxu0 %v7481_v7  ;;  %3067 = vmatprep.subr.mxu1 %v7483_v56  ;;  %v3114_v34 = vld [vmem:[#allocation2 + $0x4] sm:$0xf]  ;;  %v3117_v7 = vld [vmem:[#allocation2 + $0x8] sm:$0xf]  ;;  %v3123_v56 = vld [vmem:[#allocation6] sm:$0xf] }
 0x21d   :  { %2940 = vmatpush2.msra.mxu0 %v7482_v11  ;;  %2950 = vmatprep.mubr.f32.mxu0 %v7485_v28  ;;  %v3120_v11 = vld [vmem:[#allocation2 + $0xc] sm:$0xf] }
 0x21e   :  { %2944 = vmatprep.subr.mxu0 %v7484_v40  ;;  %3069 = vmatpush2.msra.mxu1 %v7487_v17  ;;  %v7492_v40 = vld [vmem:[#allocation115_spill] sm:$0xff] }
 0x21f   :  { %2948 = vmatpush2.msra.mxu0 %v7486_v37  ;;  %3071 = vmatprep.subr.mxu1 %v5707_v6  ;;  %v658_v6 = vpop.f32.mrf.mxu0  ;;  %v3126_v37 = vld [vmem:[#allocation6 + $0x4] sm:$0xf]  ;;  %v3129_v17 = vld [vmem:[#allocation6 + $0x8] sm:$0xf] }
 0x220   :  { %2952 = vmatmul.mubr.f32.vlgmr.msra.gmra.mxu0 %v7488_v27  ;;  %3073 = vmatpush2.msra.mxu1 %v7489_v48  ;;  %v3135_v48 = vld [vmem:[#allocation6 + $0x10] sm:$0xf] }
 0x221   :  { %3087 = vmatprep.mubr.f32.mxu1 %v7485_v28  ;;  %3075 = vmatprep.subr.mxu1 %v7490_v54  ;;  %v1252_v33 = vpop.f32.mrf.mxu0  ;;  %v3138_v54 = vld [vmem:[#allocation6 + $0x14] sm:$0xf] }
 0x222   :  { %3077 = vmatpush2.msra.mxu1 %v7491_v32  ;;  %v3242_v32 = vld [vmem:[#allocation2] sm:$0xf] }
 0x223   :  { %3079 = vmatprep.subr.mxu1 %v5743_v60  ;;  %v1254_v16 = vpop.f32.mrf.mxu0  ;;  %v1050_v60 = vadd.f32 %v1049_v2, %v656_v10 }
 0x224   :  { %3081 = vmatpush2.msra.mxu1 %v5753_v63  ;;  %v1052_v63 = vadd.f32 %v1051_v53, %v658_v6 }
 0x225   :  { %3083 = vmatprep.subr.mxu1 %v5760_v50  ;;  %v1658_v0 = vpop.f32.mrf.mxu0  ;;  %v1253_v19 = vadd.f32 %v1252_v33, %v1050_v60  ;;  %v1797_v50 = vpop.f32.mrf.mxu1 }
 0x226   :  { %3085 = vmatpush2.msra.mxu1 %v5770_v5  ;;  %v1255_v24 = vadd.f32 %v1254_v16, %v1052_v63 }
 0x227   :  { %3089 = vmatmul.mubr.f32.vlgmr.msra.gmra.mxu1 %v7488_v27  ;;  %v1660_v35 = vpop.f32.mrf.mxu0  ;;  %v1394_v5 = vadd.f32 %v1393_v26, %v1253_v19  ;;  %v3132_v27 = vld [vmem:[#allocation6 + $0xc] sm:$0xf] }
 0x228   :  { %v1396_v38 = vadd.f32 %v1395_v14, %v1255_v24 }
 0x229   :  { %v1659_v44 = vadd.f32 %v1658_v0, %v1394_v5 }
 0x22a   :  { %v1661_v45 = vadd.f32 %v1660_v35, %v1396_v38 }
 0x22b   :  { %v1796_v49 = vadd.f32 %v1795_v43, %v1659_v44 }
 0x22c   :  { %v1798_v58 = vadd.f32 %v1797_v50, %v1661_v45 }
 0x260   :  { %v1951_v59 = vpop.f32.mrf.mxu0 }
 0x261   :  { %v2344_v55 = vpop.f32.mrf.mxu1  ;;  %v1952_v61 = vadd.f32 %v1951_v59, %v1796_v49 }
 0x262   :  { %v1953_v3 = vpop.f32.mrf.mxu0 }
 0x263   :  { %v2346_v36 = vpop.f32.mrf.mxu1  ;;  %v1954_v25 = vadd.f32 %v1953_v3, %v1798_v58  ;;  %v2345_v4 = vadd.f32 %v2344_v55, %v1952_v61 }
 0x265   :  { %v2347_v9 = vadd.f32 %v2346_v36, %v1954_v25 }
 0x2a0   :  { %v2547_v30 = vpop.f32.mrf.mxu0 }
 0x2a1   :  { %v2548_v51 = vadd.f32 %v2547_v30, %v2345_v4 }
 0x2a2   :  { %v2549_v23 = vpop.f32.mrf.mxu0 }
 0x2a3   :  { %v2550_v13 = vadd.f32 %v2549_v23, %v2347_v9 }
 0x2a5   :  { %v2688_v47 = vpop.f32.mrf.mxu1 }
 0x2a6   :  { %v2689_v21 = vadd.f32 %v2688_v47, %v2548_v51 }
 0x2a7   :  { %v2690_v52 = vpop.f32.mrf.mxu1 }
 0x2a8   :  { %v2691_v41 = vadd.f32 %v2690_v52, %v2550_v13 }
 0x2e0   :  { %v2953_v39 = vpop.f32.mrf.mxu0 }
 0x2e1   :  { %v2954_v29 = vadd.f32 %v2953_v39, %v2689_v21 }
 0x2e2   :  { %v2955_v57 = vpop.f32.mrf.mxu0 }
 0x2e3   :  { %v2956_v15 = vadd.f32 %v2955_v57, %v2691_v41 }
 0x2e7   :  { %v3090_v42 = vpop.f32.mrf.mxu1 }
 0x2e8   :  { %v3091_v22 = vadd.f32 %v3090_v42, %v2954_v29 }
 0x2e9   :  { %v3092_v46 = vpop.f32.mrf.mxu1 }
 0x2ea   :  { %v3097_v20 = vadd.f32 %v3096_v12, %v3091_v22  ;;  %v3093_v1 = vadd.f32 %v3092_v46, %v2956_v15 }
 0x2ec   :  { %v3098_v18 = vadd.f32 %v3096_v12, %v3093_v1  ;;  %v3099_v31 = vmax.f32 %v3097_v20, 0.0 }
 0x2ee   :  { %v3100_v8 = vmax.f32 %v3098_v18, 0.0 }
 0x2f0   :  { %v3103_v62 = vcombine.low %v3099_v31, %v3100_v8 }
 0x2f2   :  { %v3110_v28 = vrot.slane %v3103_v62, %v7492_v40 }
 0x2f4   :  { %v3112_v10 = vmul.f32 %v3242_v32, %v3110_v28  ;;  %v3115_v6 = vmul.f32 %v3114_v34, %v3110_v28  ;;  %v3118_v2 = vmul.f32 %v3117_v7, %v3110_v28  ;;  %v3121_v33 = vmul.f32 %v3120_v11, %v3110_v28 }
 0x2f5   :  { %v3124_v53 = vmul.f32 %v3123_v56, %v3110_v28  ;;  %v3127_v16 = vmul.f32 %v3126_v37, %v3110_v28  ;;  %v3130_v26 = vmul.f32 %v3129_v17, %v3110_v28  ;;  %v3133_v0 = vmul.f32 %v3132_v27, %v3110_v28 }
 0x2f6   :  { %3113 = vst [vmem:[#allocation12] sm:$0xf] %v3112_v10  ;;  %3116 = vst [vmem:[#allocation12 + $0x4] sm:$0xf] %v3115_v6  ;;  %v3136_v14 = vmul.f32 %v3135_v48, %v3110_v28  ;;  %v3139_v35 = vmul.f32 %v3138_v54, %v3110_v28 }
 0x2f7   :  { %3119 = vst [vmem:[#allocation12 + $0x8] sm:$0xf] %v3118_v2  ;;  %3122 = vst [vmem:[#allocation12 + $0xc] sm:$0xf] %v3121_v33 }
 0x2f8   :  { %3125 = vst [vmem:[#allocation12 + $0x10] sm:$0xf] %v3124_v53  ;;  %3128 = vst [vmem:[#allocation12 + $0x14] sm:$0xf] %v3127_v16 }
 0x2f9   :  { %3131 = vst [vmem:[#allocation12 + $0x18] sm:$0xf] %v3130_v26  ;;  %3134 = vst [vmem:[#allocation12 + $0x1c] sm:$0xf] %v3133_v0 }
 0x2fa   :  { %3137 = vst [vmem:[#allocation12 + $0x20] sm:$0xf] %v3136_v14  ;;  %3140 = vst [vmem:[#allocation12 + $0x24] sm:$0xf] %v3139_v35 }
 0x2fb   :  { %3346 = shalt.err (!%p3343_p1)
}
 0x2fc   :  { %3150 = dma.vmem_to_hbm [thread:$0]  %s3148_s1, 640, %s6201_s5, [#allocation4]  }
 0x2fd   :  { %3363 = dma.done.wait [#allocation4], 640  }
 0x2fe   :  { %3364 = vsyncadd [#allocation4], 4294966656 }
 0x2ff   :  { %3154 = vsyncpa [#allocation3], 1 }
 0x300   :  { %3155 = vsyncpa [#allocation7], 1 }
 0x301   :  { %3156 = vsyncpa [#allocation10], 1 }
 0x302   :  { %3157 = vsyncpa [#allocation4], 1 }
 0x303   :  { %3158 = vsyncpa [#allocation5], 1 }

</bundles_post_ra>
